<compile_context>
chip_gen: v7x
topology: tpu7x:2x2x1
jax: 0.10.0
libtpu: 0.0.40
codegen_flags: <defaults>
</compile_context>

<pallas_src>
import jax
import jax.numpy as jnp
from jax import lax
from jax.experimental import pallas as pl
from jax.experimental.pallas import tpu as pltpu

FRAMES = 19      # self.frames
NFILT = 80       # self.F (n_filters)
ZDIM = 128       # z_dim ("Gauss: Units = 128")
LEAK = 0.1       # LeakyReLU slope
H2, H3 = 9, 4    # conv2 / conv3 output heights


def _leaky(v):
    return jnp.where(v >= 0, v, LEAK * v)


def encoder_kernel(x_ref,
                   w1_ref, b1_ref,
                   w2_ref, b2_ref,
                   w3_ref, b3_ref,
                   wfc_ref, bf_ref,
                   whead_ref,
                   out_ref):
    f32 = jnp.float32
    bf16 = jnp.bfloat16
    tb = out_ref.shape[0]                       # batch elements in this tile

    # Conv_1: 1x80 kernel == per-row matmul.  Rows ordered h*tb + b.
    # BN scale already folded into w1 columns; bias-add + LeakyReLU in f32.
    a1 = _leaky(jnp.dot(x_ref[...], w1_ref[...], preferred_element_type=f32)
                + b1_ref[...])                                    # (19*TB, 64) f32

    # Conv_2: 3x1 kernel, stride (2,1) -- fused across all 9 output heights as
    # ONE (19*TB, 64) x (64, 384) matmul, then 3 aligned adds per height.
    y2 = jnp.dot(a1.astype(bf16), w2_ref[...],
                 preferred_element_type=f32)                      # (19*TB, 384)
    a2_pre = [
        y2[(2 * o) * tb:(2 * o + 1) * tb, 0:128]
        + y2[(2 * o + 1) * tb:(2 * o + 2) * tb, 128:256]
        + y2[(2 * o + 2) * tb:(2 * o + 3) * tb, 256:384]
        for o in range(H2)
    ]
    a2 = _leaky(jnp.concatenate(a2_pre, axis=0) + b2_ref[...])    # (9*TB, 128)

    # Conv_3: same fusion -- ONE (9*TB, 128) x (128, 768) matmul + aligned adds.
    y3 = jnp.dot(a2.astype(bf16), w3_ref[...],
                 preferred_element_type=f32)                      # (9*TB, 768)
    a3_pre = [
        y3[(2 * o) * tb:(2 * o + 1) * tb, 0:256]
        + y3[(2 * o + 1) * tb:(2 * o + 2) * tb, 256:512]
        + y3[(2 * o + 2) * tb:(2 * o + 3) * tb, 512:768]
        for o in range(H3)
    ]
    # Lane-concat of the 4 height blocks == per-batch flatten (PyTorch
    # channel-major order baked into the wfc row permutation); b3 is pre-tiled
    # to 1024 lanes so there is exactly one bias broadcast here.
    flat = _leaky(jnp.concatenate(a3_pre, axis=1) + b3_ref[...])  # (TB, 1024)

    # Fc1: one (TB, 1024) x (1024, 512) matmul.
    hf = _leaky(jnp.dot(flat.astype(bf16), wfc_ref[...],
                        preferred_element_type=f32)
                + bf_ref[...])                                    # (TB, 512)

    # Fused [mu | log_var] head: one matmul, one lane-dense 256-wide store.
    out_ref[...] = jnp.dot(hf.astype(bf16), whead_ref[...],
                           preferred_element_type=f32)


def _replicated_spec(arr):
    # Grid-invariant operand (all kernel params are 2-D, full-array blocks).
    return pl.BlockSpec(arr.shape, lambda i: (0, 0))


def _round_up(n, m):
    return ((n + m - 1) // m) * m


def encoder_forward(x, kernel_params, *, max_tb=256):
    """x: (B, 19, 80) float32 -> (mu, log_var), each (B, ZDIM) float32."""
    B = x.shape[0]
    # >=2 grid steps when B allows (shards the "parallel" batch axis across the
    # two v7x TensorCores); rounded to a multiple of 16 so the bf16 input block
    # stays (16,128)-tile aligned.
    tb = _round_up(min(max_tb, _round_up(pl.cdiv(B, 2), 16)), 16)
    b_pad = _round_up(B, tb)
    nb = b_pad // tb

    xp = jnp.pad(x, ((0, b_pad - B), (0, 0), (0, 0)))
    # Reorder rows to: chunk-major, then frame (height), then batch-in-chunk,
    # so each grid block is one contiguous (19*TB, 80) slab; ship it as bf16.
    xr = (xp.reshape(nb, tb, FRAMES, NFILT)
            .transpose(0, 2, 1, 3)
            .reshape(nb * FRAMES * tb, NFILT)
            .astype(jnp.bfloat16))

    x_spec = pl.BlockSpec((FRAMES * tb, NFILT), lambda i: (i, 0))
    out_spec = pl.BlockSpec((tb, 2 * ZDIM), lambda i: (i, 0))

    grid_spec = pltpu.PrefetchScalarGridSpec(
        num_scalar_prefetch=0,
        grid=(nb,),
        in_specs=[x_spec] + [_replicated_spec(p) for p in kernel_params],
        out_specs=out_spec,
    )
    out = pl.pallas_call(
        encoder_kernel,
        out_shape=jax.ShapeDtypeStruct((b_pad, 2 * ZDIM), jnp.float32),
        grid_spec=grid_spec,
        compiler_params=pltpu.CompilerParams(
            dimension_semantics=("parallel",),        # shards across TCs (v7x)
            vmem_limit_bytes=40 * 1024 * 1024),       # cap sized for v7x 64 MiB
    )(xr, *kernel_params)
    return out[:B, :ZDIM], out[:B, ZDIM:]


# ----------------------- parameter setup (plain JAX glue) --------------------

def init_params(key):
    ks = jax.random.split(key, 10)
    p = {
        "w1": jax.random.normal(ks[0], (64, 1, 1, NFILT), jnp.float32) / jnp.sqrt(NFILT),
        "w2": jax.random.normal(ks[1], (128, 64, 3, 1), jnp.float32) / jnp.sqrt(64 * 3),
        "w3": jax.random.normal(ks[2], (256, 128, 3, 1), jnp.float32) / jnp.sqrt(128 * 3),
        "wfc": jax.random.normal(ks[3], (512, 1024), jnp.float32) / jnp.sqrt(1024),
        "wmu": jax.random.normal(ks[4], (ZDIM, 512), jnp.float32) / jnp.sqrt(512),
        "wlv": jax.random.normal(ks[5], (ZDIM, 512), jnp.float32) / jnp.sqrt(512),
    }

    def bn(k, c):
        kg, kb, km, kv = jax.random.split(k, 4)
        gamma = 1.0 + 0.1 * jax.random.normal(kg, (c,), jnp.float32)
        beta = 0.1 * jax.random.normal(kb, (c,), jnp.float32)
        mean = 0.1 * jax.random.normal(km, (c,), jnp.float32)
        var = jax.random.uniform(kv, (c,), jnp.float32, minval=0.5, maxval=1.5)
        return gamma, beta, mean, var

    p["bn1"] = bn(ks[6], 64)
    p["bn2"] = bn(ks[7], 128)
    p["bn3"] = bn(ks[8], 256)
    p["bnf"] = bn(ks[9], 512)
    return p


def _fold_bn(bn, eps=1e-5):
    g, b, m, v = bn
    scale = g / jnp.sqrt(v + eps)
    shift = b - m * scale
    return scale, shift


def pack_kernel_params(p):
    """Host-side packing: BN scale folded into weight columns, weights -> bf16."""
    bf16 = jnp.bfloat16
    s1, b1 = _fold_bn(p["bn1"])
    s2, b2 = _fold_bn(p["bn2"])
    s3, b3 = _fold_bn(p["bn3"])
    sf, bf = _fold_bn(p["bnf"])

    # Conv_1: (64,1,1,80) -> (80, 64); BN scale folded per output column.
    w1 = (p["w1"].reshape(64, NFILT).T * s1[None, :]).astype(bf16)

    # Conv_2 / Conv_3: the 3 height taps concatenated along the OUTPUT axis so
    # the kernel does one wide matmul per layer; scale folded per column.
    w2 = jnp.concatenate(
        [p["w2"][:, :, k, 0].T * s2[None, :] for k in range(3)], axis=1
    ).astype(bf16)                                                  # (64, 384)
    w3 = jnp.concatenate(
        [p["w3"][:, :, k, 0].T * s3[None, :] for k in range(3)], axis=1
    ).astype(bf16)                                                  # (128, 768)

    # Fc1: PyTorch flatten of (256, 4, 1) is channel-major (flat = c*4 + h);
    # kernel flatten is height-major (h*256 + c) -> permute rows accordingly.
    wfc = ((p["wfc"].T * sf[None, :])
           .reshape(256, H3, 512).transpose(1, 0, 2).reshape(1024, 512)
           .astype(bf16))                                           # (1024, 512)

    # Fused [mu | log_var] head.
    whead = jnp.concatenate([p["wmu"].T, p["wlv"].T], axis=1).astype(bf16)  # (512, 256)

    # Biases stay f32; b3 is tiled to match the lane-concat flatten order.
    b3t = jnp.tile(b3[None, :], (1, H3))                            # (1, 1024)
    return (w1, b1[None, :], w2, b2[None, :], w3, b3t, wfc, bf[None, :], whead)


# ------------------------- pure-JAX reference (NCHW, f32) --------------------

def reference_forward(x, p):
    B = x.shape[0]
    dn = ("NCHW", "OIHW", "NCHW")

    def bn4(h, bn):
        s, b = _fold_bn(bn)
        return h * s[None, :, None, None] + b[None, :, None, None]

    h = x.reshape(B, 1, FRAMES, NFILT)
    h = _leaky(bn4(lax.conv_general_dilated(h, p["w1"], (1, 1), "VALID",
                                            dimension_numbers=dn), p["bn1"]))
    h = _leaky(bn4(lax.conv_general_dilated(h, p["w2"], (2, 1), "VALID",
                                            dimension_numbers=dn), p["bn2"]))
    h = _leaky(bn4(lax.conv_general_dilated(h, p["w3"], (2, 1), "VALID",
                                            dimension_numbers=dn), p["bn3"]))
    h = h.reshape(B, 1024)
    sf, bf = _fold_bn(p["bnf"])
    h = _leaky(h @ p["wfc"].T * sf[None, :] + bf[None, :])
    return h @ p["wmu"].T, h @ p["wlv"].T


if __name__ == "__main__":
    ks = jax.random.split(jax.random.PRNGKey(0), 3)
    params = init_params(ks[1])
    kparams = pack_kernel_params(params)

    # bf16 MXU operands vs f32 reference -> slightly wider tolerance.
    ATOL = RTOL = 5e-2

    # Path 1: B=12 (not a multiple of 16 -> exercises batch padding), nb=1.
    B = 12
    x = jax.random.normal(ks[0], (B, FRAMES, NFILT), jnp.float32)
    mu_ref, lv_ref = reference_forward(x, params)
    mu, log_var = encoder_forward(x, kparams)
    mu = jax.block_until_ready(mu)
    log_var = jax.block_until_ready(log_var)
    assert mu.shape == (B, ZDIM) and log_var.shape == (B, ZDIM)
    assert jnp.allclose(mu, mu_ref, atol=ATOL, rtol=RTOL), "mu mismatch"
    assert jnp.allclose(log_var, lv_ref, atol=ATOL, rtol=RTOL), "log_var mismatch"

    # Path 2: multi-step grid (B=40, TB=16 -> 3 grid steps, batch padded to 48).
    B2 = 40
    x2 = jax.random.normal(ks[2], (B2, FRAMES, NFILT), jnp.float32)
    mu_ref2, lv_ref2 = reference_forward(x2, params)
    mu2, lv2 = encoder_forward(x2, kparams, max_tb=16)
    mu2 = jax.block_until_ready(mu2)
    lv2 = jax.block_until_ready(lv2)
    assert jnp.allclose(mu2, mu_ref2, atol=ATOL, rtol=RTOL), "mu mismatch (tiled)"
    assert jnp.allclose(lv2, lv_ref2, atol=ATOL, rtol=RTOL), "log_var mismatch (tiled)"

    print("KERNEL_OK")
</pallas_src>

<mosaic_0001>
module attributes {stable_mosaic.version = 11 : i64} {
  func.func @encoder_kernel(%arg0: i32, %arg1: memref<304x80xbf16, #tpu.memory_space<vmem>>, %arg2: memref<80x64xbf16, #tpu.memory_space<vmem>>, %arg3: memref<1x64xf32, #tpu.memory_space<vmem>>, %arg4: memref<64x384xbf16, #tpu.memory_space<vmem>>, %arg5: memref<1x128xf32, #tpu.memory_space<vmem>>, %arg6: memref<128x768xbf16, #tpu.memory_space<vmem>>, %arg7: memref<1x1024xf32, #tpu.memory_space<vmem>>, %arg8: memref<1024x512xbf16, #tpu.memory_space<vmem>>, %arg9: memref<1x512xf32, #tpu.memory_space<vmem>>, %arg10: memref<512x256xbf16, #tpu.memory_space<vmem>>, %arg11: memref<16x256xf32, #tpu.memory_space<vmem>>) attributes {dimension_semantics = [#tpu.dimension_semantics<parallel>], iteration_bounds = array<i64: 1>, scalar_prefetch = 0 : i64, scratch_operands = 0 : i64, tpu.core_type = #tpu.core_type<tc>, window_params = [{transform_indices = @transform_0, window_bounds = array<i64: 304, 80>}, {pipeline_mode = #tpu.pipeline_mode<synchronous>, transform_indices = @transform_1, window_bounds = array<i64: 80, 64>}, {pipeline_mode = #tpu.pipeline_mode<synchronous>, transform_indices = @transform_2, window_bounds = array<i64: 1, 64>}, {pipeline_mode = #tpu.pipeline_mode<synchronous>, transform_indices = @transform_3, window_bounds = array<i64: 64, 384>}, {pipeline_mode = #tpu.pipeline_mode<synchronous>, transform_indices = @transform_4, window_bounds = array<i64: 1, 128>}, {pipeline_mode = #tpu.pipeline_mode<synchronous>, transform_indices = @transform_5, window_bounds = array<i64: 128, 768>}, {pipeline_mode = #tpu.pipeline_mode<synchronous>, transform_indices = @transform_6, window_bounds = array<i64: 1, 1024>}, {pipeline_mode = #tpu.pipeline_mode<synchronous>, transform_indices = @transform_7, window_bounds = array<i64: 1024, 512>}, {pipeline_mode = #tpu.pipeline_mode<synchronous>, transform_indices = @transform_8, window_bounds = array<i64: 1, 512>}, {pipeline_mode = #tpu.pipeline_mode<synchronous>, transform_indices = @transform_9, window_bounds = array<i64: 512, 256>}, {transform_indices = @transform_10, window_bounds = array<i64: 16, 256>}]} {
    %c0 = arith.constant 0 : index
    %c0_0 = arith.constant 0 : index
    %0 = vector.load %arg1[%c0, %c0_0] : memref<304x80xbf16, #tpu.memory_space<vmem>>, vector<304x80xbf16>
    %c0_1 = arith.constant 0 : index
    %c0_2 = arith.constant 0 : index
    %1 = vector.load %arg2[%c0_1, %c0_2] : memref<80x64xbf16, #tpu.memory_space<vmem>>, vector<80x64xbf16>
    %cst = arith.constant dense<0.000000e+00> : vector<304x64xf32>
    %2 = tpu.matmul %0, %1, %cst {dimension_numbers = #tpu.dot_dimension_numbers<[1], [0], [0], [1], [0, 0, 1, 1], [], []>} : vector<304x80xbf16>, vector<80x64xbf16>, vector<304x64xf32> -> vector<304x64xf32>
    %c0_3 = arith.constant 0 : index
    %c0_4 = arith.constant 0 : index
    %3 = vector.load %arg3[%c0_3, %c0_4] : memref<1x64xf32, #tpu.memory_space<vmem>>, vector<1x64xf32>
    %4 = vector.broadcast %3 : vector<1x64xf32> to vector<304x64xf32>
    %5 = arith.addf %2, %4 : vector<304x64xf32>
    %cst_5 = arith.constant 0.000000e+00 : f32
    %6 = vector.broadcast %cst_5 : f32 to vector<304x64xf32>
    %7 = arith.cmpf oge, %5, %6 : vector<304x64xf32>
    %cst_6 = arith.constant 1.000000e-01 : f32
    %8 = vector.broadcast %cst_6 : f32 to vector<304x64xf32>
    %9 = arith.mulf %8, %5 : vector<304x64xf32>
    %10 = arith.select %7, %5, %9 : vector<304x64xi1>, vector<304x64xf32>
    %11 = arith.truncf %10 : vector<304x64xf32> to vector<304x64xbf16>
    %c0_7 = arith.constant 0 : index
    %c0_8 = arith.constant 0 : index
    %12 = vector.load %arg4[%c0_7, %c0_8] : memref<64x384xbf16, #tpu.memory_space<vmem>>, vector<64x384xbf16>
    %cst_9 = arith.constant dense<0.000000e+00> : vector<304x384xf32>
    %13 = tpu.matmul %11, %12, %cst_9 {dimension_numbers = #tpu.dot_dimension_numbers<[1], [0], [0], [1], [0, 0, 1, 1], [], []>} : vector<304x64xbf16>, vector<64x384xbf16>, vector<304x384xf32> -> vector<304x384xf32>
    %14 = vector.extract_strided_slice %13 {offsets = [0, 0], sizes = [16, 128], strides = [1, 1]} : vector<304x384xf32> to vector<16x128xf32>
    %15 = vector.extract_strided_slice %13 {offsets = [16, 128], sizes = [16, 128], strides = [1, 1]} : vector<304x384xf32> to vector<16x128xf32>
    %16 = arith.addf %14, %15 : vector<16x128xf32>
    %17 = vector.extract_strided_slice %13 {offsets = [32, 256], sizes = [16, 128], strides = [1, 1]} : vector<304x384xf32> to vector<16x128xf32>
    %18 = arith.addf %16, %17 : vector<16x128xf32>
    %19 = vector.extract_strided_slice %13 {offsets = [32, 0], sizes = [16, 128], strides = [1, 1]} : vector<304x384xf32> to vector<16x128xf32>
    %20 = vector.extract_strided_slice %13 {offsets = [48, 128], sizes = [16, 128], strides = [1, 1]} : vector<304x384xf32> to vector<16x128xf32>
    %21 = arith.addf %19, %20 : vector<16x128xf32>
    %22 = vector.extract_strided_slice %13 {offsets = [64, 256], sizes = [16, 128], strides = [1, 1]} : vector<304x384xf32> to vector<16x128xf32>
    %23 = arith.addf %21, %22 : vector<16x128xf32>
    %24 = vector.extract_strided_slice %13 {offsets = [64, 0], sizes = [16, 128], strides = [1, 1]} : vector<304x384xf32> to vector<16x128xf32>
    %25 = vector.extract_strided_slice %13 {offsets = [80, 128], sizes = [16, 128], strides = [1, 1]} : vector<304x384xf32> to vector<16x128xf32>
    %26 = arith.addf %24, %25 : vector<16x128xf32>
    %27 = vector.extract_strided_slice %13 {offsets = [96, 256], sizes = [16, 128], strides = [1, 1]} : vector<304x384xf32> to vector<16x128xf32>
    %28 = arith.addf %26, %27 : vector<16x128xf32>
    %29 = vector.extract_strided_slice %13 {offsets = [96, 0], sizes = [16, 128], strides = [1, 1]} : vector<304x384xf32> to vector<16x128xf32>
    %30 = vector.extract_strided_slice %13 {offsets = [112, 128], sizes = [16, 128], strides = [1, 1]} : vector<304x384xf32> to vector<16x128xf32>
    %31 = arith.addf %29, %30 : vector<16x128xf32>
    %32 = vector.extract_strided_slice %13 {offsets = [128, 256], sizes = [16, 128], strides = [1, 1]} : vector<304x384xf32> to vector<16x128xf32>
    %33 = arith.addf %31, %32 : vector<16x128xf32>
    %34 = vector.extract_strided_slice %13 {offsets = [128, 0], sizes = [16, 128], strides = [1, 1]} : vector<304x384xf32> to vector<16x128xf32>
    %35 = vector.extract_strided_slice %13 {offsets = [144, 128], sizes = [16, 128], strides = [1, 1]} : vector<304x384xf32> to vector<16x128xf32>
    %36 = arith.addf %34, %35 : vector<16x128xf32>
    %37 = vector.extract_strided_slice %13 {offsets = [160, 256], sizes = [16, 128], strides = [1, 1]} : vector<304x384xf32> to vector<16x128xf32>
    %38 = arith.addf %36, %37 : vector<16x128xf32>
    %39 = vector.extract_strided_slice %13 {offsets = [160, 0], sizes = [16, 128], strides = [1, 1]} : vector<304x384xf32> to vector<16x128xf32>
    %40 = vector.extract_strided_slice %13 {offsets = [176, 128], sizes = [16, 128], strides = [1, 1]} : vector<304x384xf32> to vector<16x128xf32>
    %41 = arith.addf %39, %40 : vector<16x128xf32>
    %42 = vector.extract_strided_slice %13 {offsets = [192, 256], sizes = [16, 128], strides = [1, 1]} : vector<304x384xf32> to vector<16x128xf32>
    %43 = arith.addf %41, %42 : vector<16x128xf32>
    %44 = vector.extract_strided_slice %13 {offsets = [192, 0], sizes = [16, 128], strides = [1, 1]} : vector<304x384xf32> to vector<16x128xf32>
    %45 = vector.extract_strided_slice %13 {offsets = [208, 128], sizes = [16, 128], strides = [1, 1]} : vector<304x384xf32> to vector<16x128xf32>
    %46 = arith.addf %44, %45 : vector<16x128xf32>
    %47 = vector.extract_strided_slice %13 {offsets = [224, 256], sizes = [16, 128], strides = [1, 1]} : vector<304x384xf32> to vector<16x128xf32>
    %48 = arith.addf %46, %47 : vector<16x128xf32>
    %49 = vector.extract_strided_slice %13 {offsets = [224, 0], sizes = [16, 128], strides = [1, 1]} : vector<304x384xf32> to vector<16x128xf32>
    %50 = vector.extract_strided_slice %13 {offsets = [240, 128], sizes = [16, 128], strides = [1, 1]} : vector<304x384xf32> to vector<16x128xf32>
    %51 = arith.addf %49, %50 : vector<16x128xf32>
    %52 = vector.extract_strided_slice %13 {offsets = [256, 256], sizes = [16, 128], strides = [1, 1]} : vector<304x384xf32> to vector<16x128xf32>
    %53 = arith.addf %51, %52 : vector<16x128xf32>
    %54 = vector.extract_strided_slice %13 {offsets = [256, 0], sizes = [16, 128], strides = [1, 1]} : vector<304x384xf32> to vector<16x128xf32>
    %55 = vector.extract_strided_slice %13 {offsets = [272, 128], sizes = [16, 128], strides = [1, 1]} : vector<304x384xf32> to vector<16x128xf32>
    %56 = arith.addf %54, %55 : vector<16x128xf32>
    %57 = vector.extract_strided_slice %13 {offsets = [288, 256], sizes = [16, 128], strides = [1, 1]} : vector<304x384xf32> to vector<16x128xf32>
    %58 = arith.addf %56, %57 : vector<16x128xf32>
    %59 = tpu.concatenate %18, %23, %28, %33, %38, %43, %48, %53, %58 in 0 : vector<16x128xf32>, vector<16x128xf32>, vector<16x128xf32>, vector<16x128xf32>, vector<16x128xf32>, vector<16x128xf32>, vector<16x128xf32>, vector<16x128xf32>, vector<16x128xf32> -> vector<144x128xf32>
    %c0_10 = arith.constant 0 : index
    %c0_11 = arith.constant 0 : index
    %60 = vector.load %arg5[%c0_10, %c0_11] : memref<1x128xf32, #tpu.memory_space<vmem>>, vector<1x128xf32>
    %61 = vector.broadcast %60 : vector<1x128xf32> to vector<144x128xf32>
    %62 = arith.addf %59, %61 : vector<144x128xf32>
    %cst_12 = arith.constant 0.000000e+00 : f32
    %63 = vector.broadcast %cst_12 : f32 to vector<144x128xf32>
    %64 = arith.cmpf oge, %62, %63 : vector<144x128xf32>
    %cst_13 = arith.constant 1.000000e-01 : f32
    %65 = vector.broadcast %cst_13 : f32 to vector<144x128xf32>
    %66 = arith.mulf %65, %62 : vector<144x128xf32>
    %67 = arith.select %64, %62, %66 : vector<144x128xi1>, vector<144x128xf32>
    %68 = arith.truncf %67 : vector<144x128xf32> to vector<144x128xbf16>
    %c0_14 = arith.constant 0 : index
    %c0_15 = arith.constant 0 : index
    %69 = vector.load %arg6[%c0_14, %c0_15] : memref<128x768xbf16, #tpu.memory_space<vmem>>, vector<128x768xbf16>
    %cst_16 = arith.constant dense<0.000000e+00> : vector<144x768xf32>
    %70 = tpu.matmul %68, %69, %cst_16 {dimension_numbers = #tpu.dot_dimension_numbers<[1], [0], [0], [1], [0, 0, 1, 1], [], []>} : vector<144x128xbf16>, vector<128x768xbf16>, vector<144x768xf32> -> vector<144x768xf32>
    %71 = vector.extract_strided_slice %70 {offsets = [0, 0], sizes = [16, 256], strides = [1, 1]} : vector<144x768xf32> to vector<16x256xf32>
    %72 = vector.extract_strided_slice %70 {offsets = [16, 256], sizes = [16, 256], strides = [1, 1]} : vector<144x768xf32> to vector<16x256xf32>
    %73 = arith.addf %71, %72 : vector<16x256xf32>
    %74 = vector.extract_strided_slice %70 {offsets = [32, 512], sizes = [16, 256], strides = [1, 1]} : vector<144x768xf32> to vector<16x256xf32>
    %75 = arith.addf %73, %74 : vector<16x256xf32>
    %76 = vector.extract_strided_slice %70 {offsets = [32, 0], sizes = [16, 256], strides = [1, 1]} : vector<144x768xf32> to vector<16x256xf32>
    %77 = vector.extract_strided_slice %70 {offsets = [48, 256], sizes = [16, 256], strides = [1, 1]} : vector<144x768xf32> to vector<16x256xf32>
    %78 = arith.addf %76, %77 : vector<16x256xf32>
    %79 = vector.extract_strided_slice %70 {offsets = [64, 512], sizes = [16, 256], strides = [1, 1]} : vector<144x768xf32> to vector<16x256xf32>
    %80 = arith.addf %78, %79 : vector<16x256xf32>
    %81 = vector.extract_strided_slice %70 {offsets = [64, 0], sizes = [16, 256], strides = [1, 1]} : vector<144x768xf32> to vector<16x256xf32>
    %82 = vector.extract_strided_slice %70 {offsets = [80, 256], sizes = [16, 256], strides = [1, 1]} : vector<144x768xf32> to vector<16x256xf32>
    %83 = arith.addf %81, %82 : vector<16x256xf32>
    %84 = vector.extract_strided_slice %70 {offsets = [96, 512], sizes = [16, 256], strides = [1, 1]} : vector<144x768xf32> to vector<16x256xf32>
    %85 = arith.addf %83, %84 : vector<16x256xf32>
    %86 = vector.extract_strided_slice %70 {offsets = [96, 0], sizes = [16, 256], strides = [1, 1]} : vector<144x768xf32> to vector<16x256xf32>
    %87 = vector.extract_strided_slice %70 {offsets = [112, 256], sizes = [16, 256], strides = [1, 1]} : vector<144x768xf32> to vector<16x256xf32>
    %88 = arith.addf %86, %87 : vector<16x256xf32>
    %89 = vector.extract_strided_slice %70 {offsets = [128, 512], sizes = [16, 256], strides = [1, 1]} : vector<144x768xf32> to vector<16x256xf32>
    %90 = arith.addf %88, %89 : vector<16x256xf32>
    %91 = tpu.concatenate %75, %80, %85, %90 in 1 : vector<16x256xf32>, vector<16x256xf32>, vector<16x256xf32>, vector<16x256xf32> -> vector<16x1024xf32>
    %c0_17 = arith.constant 0 : index
    %c0_18 = arith.constant 0 : index
    %92 = vector.load %arg7[%c0_17, %c0_18] : memref<1x1024xf32, #tpu.memory_space<vmem>>, vector<1x1024xf32>
    %93 = vector.broadcast %92 : vector<1x1024xf32> to vector<16x1024xf32>
    %94 = arith.addf %91, %93 : vector<16x1024xf32>
    %cst_19 = arith.constant 0.000000e+00 : f32
    %95 = vector.broadcast %cst_19 : f32 to vector<16x1024xf32>
    %96 = arith.cmpf oge, %94, %95 : vector<16x1024xf32>
    %cst_20 = arith.constant 1.000000e-01 : f32
    %97 = vector.broadcast %cst_20 : f32 to vector<16x1024xf32>
    %98 = arith.mulf %97, %94 : vector<16x1024xf32>
    %99 = arith.select %96, %94, %98 : vector<16x1024xi1>, vector<16x1024xf32>
    %100 = arith.truncf %99 : vector<16x1024xf32> to vector<16x1024xbf16>
    %c0_21 = arith.constant 0 : index
    %c0_22 = arith.constant 0 : index
    %101 = vector.load %arg8[%c0_21, %c0_22] : memref<1024x512xbf16, #tpu.memory_space<vmem>>, vector<1024x512xbf16>
    %cst_23 = arith.constant dense<0.000000e+00> : vector<16x512xf32>
    %102 = tpu.matmul %100, %101, %cst_23 {dimension_numbers = #tpu.dot_dimension_numbers<[1], [0], [0], [1], [0, 0, 1, 1], [], []>} : vector<16x1024xbf16>, vector<1024x512xbf16>, vector<16x512xf32> -> vector<16x512xf32>
    %c0_24 = arith.constant 0 : index
    %c0_25 = arith.constant 0 : index
    %103 = vector.load %arg9[%c0_24, %c0_25] : memref<1x512xf32, #tpu.memory_space<vmem>>, vector<1x512xf32>
    %104 = vector.broadcast %103 : vector<1x512xf32> to vector<16x512xf32>
    %105 = arith.addf %102, %104 : vector<16x512xf32>
    %cst_26 = arith.constant 0.000000e+00 : f32
    %106 = vector.broadcast %cst_26 : f32 to vector<16x512xf32>
    %107 = arith.cmpf oge, %105, %106 : vector<16x512xf32>
    %cst_27 = arith.constant 1.000000e-01 : f32
    %108 = vector.broadcast %cst_27 : f32 to vector<16x512xf32>
    %109 = arith.mulf %108, %105 : vector<16x512xf32>
    %110 = arith.select %107, %105, %109 : vector<16x512xi1>, vector<16x512xf32>
    %111 = arith.truncf %110 : vector<16x512xf32> to vector<16x512xbf16>
    %c0_28 = arith.constant 0 : index
    %c0_29 = arith.constant 0 : index
    %112 = vector.load %arg10[%c0_28, %c0_29] : memref<512x256xbf16, #tpu.memory_space<vmem>>, vector<512x256xbf16>
    %cst_30 = arith.constant dense<0.000000e+00> : vector<16x256xf32>
    %113 = tpu.matmul %111, %112, %cst_30 {dimension_numbers = #tpu.dot_dimension_numbers<[1], [0], [0], [1], [0, 0, 1, 1], [], []>} : vector<16x512xbf16>, vector<512x256xbf16>, vector<16x256xf32> -> vector<16x256xf32>
    %c0_31 = arith.constant 0 : index
    %c0_32 = arith.constant 0 : index
    %114 = vector.load %arg11[%c0_31, %c0_32] : memref<16x256xf32, #tpu.memory_space<vmem>>, vector<16x256xf32>
    tpu.vector_store %arg11[%c0_31, %c0_32], %113 {strides = array<i32>} : memref<16x256xf32, #tpu.memory_space<vmem>>, vector<16x256xf32>,
    return
  }
  func.func @transform_0(%arg0: i32) -> (i32, i32) {
    %c0_i32 = arith.constant 0 : i32
    %c0_i32_0 = arith.constant 0 : i32
    return %arg0, %c0_i32 : i32, i32
  }
  func.func @transform_1(%arg0: i32) -> (i32, i32) {
    %c0_i32 = arith.constant 0 : i32
    %c0_i32_0 = arith.constant 0 : i32
    %c0_i32_1 = arith.constant 0 : i32
    return %c0_i32, %c0_i32_0 : i32, i32
  }
  func.func @transform_2(%arg0: i32) -> (i32, i32) {
    %c0_i32 = arith.constant 0 : i32
    %c0_i32_0 = arith.constant 0 : i32
    %c0_i32_1 = arith.constant 0 : i32
    return %c0_i32, %c0_i32_0 : i32, i32
  }
  func.func @transform_3(%arg0: i32) -> (i32, i32) {
    %c0_i32 = arith.constant 0 : i32
    %c0_i32_0 = arith.constant 0 : i32
    %c0_i32_1 = arith.constant 0 : i32
    return %c0_i32, %c0_i32_0 : i32, i32
  }
  func.func @transform_4(%arg0: i32) -> (i32, i32) {
    %c0_i32 = arith.constant 0 : i32
    %c0_i32_0 = arith.constant 0 : i32
    %c0_i32_1 = arith.constant 0 : i32
    return %c0_i32, %c0_i32_0 : i32, i32
  }
  func.func @transform_5(%arg0: i32) -> (i32, i32) {
    %c0_i32 = arith.constant 0 : i32
    %c0_i32_0 = arith.constant 0 : i32
    %c0_i32_1 = arith.constant 0 : i32
    return %c0_i32, %c0_i32_0 : i32, i32
  }
  func.func @transform_6(%arg0: i32) -> (i32, i32) {
    %c0_i32 = arith.constant 0 : i32
    %c0_i32_0 = arith.constant 0 : i32
    %c0_i32_1 = arith.constant 0 : i32
    return %c0_i32, %c0_i32_0 : i32, i32
  }
  func.func @transform_7(%arg0: i32) -> (i32, i32) {
    %c0_i32 = arith.constant 0 : i32
    %c0_i32_0 = arith.constant 0 : i32
    %c0_i32_1 = arith.constant 0 : i32
    return %c0_i32, %c0_i32_0 : i32, i32
  }
  func.func @transform_8(%arg0: i32) -> (i32, i32) {
    %c0_i32 = arith.constant 0 : i32
    %c0_i32_0 = arith.constant 0 : i32
    %c0_i32_1 = arith.constant 0 : i32
    return %c0_i32, %c0_i32_0 : i32, i32
  }
  func.func @transform_9(%arg0: i32) -> (i32, i32) {
    %c0_i32 = arith.constant 0 : i32
    %c0_i32_0 = arith.constant 0 : i32
    %c0_i32_1 = arith.constant 0 : i32
    return %c0_i32, %c0_i32_0 : i32, i32
  }
  func.func @transform_10(%arg0: i32) -> (i32, i32) {
    %c0_i32 = arith.constant 0 : i32
    %c0_i32_0 = arith.constant 0 : i32
    return %arg0, %c0_i32 : i32, i32
  }
}

</mosaic_0001>

<bundles_post_ra>
// kernel: tpu_custom_call.1
= control target key start
LH: loop header
LB: loop body
LE: loop exit
PB: predicated region body
PF: predicated region fallthrough
CT: control target
= control target key end

     0   :  { %15 = vsyncpa [#allocation3], 0  ;;  %s6605_s0 = inlined_call_operand.vmem [shape: bf16[304,80], index: 0, kind: input, shape index: {}]   ;;  %s6606_s1 = inlined_call_operand.vmem [shape: bf16[80,64], index: 1, kind: input, shape index: {}]   ;;  %s6607_s2 = inlined_call_operand.vmem [shape: f32[1,64], index: 2, kind: input, shape index: {}]   ;;  %s6608_s3 = inlined_call_operand.vmem [shape: bf16[64,384], index: 3, kind: input, shape index: {}]   ;;  %s6609_s4 = inlined_call_operand.vmem [shape: f32[1,128], index: 4, kind: input, shape index: {}]   ;;  %s6610_s5 = inlined_call_operand.hbm [shape: bf16[128,768], index: 5, kind: input, shape index: {}]   ;;  %s6611_s6 = inlined_call_operand.vmem [shape: f32[1,1024], index: 6, kind: input, shape index: {}]   ;;  %s6612_s7 = inlined_call_operand.hbm [shape: bf16[1024,512], index: 7, kind: input, shape index: {}]   ;;  %s6613_s8 = inlined_call_operand.vmem [shape: f32[1,512], index: 8, kind: input, shape index: {}]   ;;  %s6614_s9 = inlined_call_operand.hbm [shape: bf16[512,256], index: 9, kind: input, shape index: {}]   ;;  %s6615_s10 = inlined_call_operand.hbm [shape: f32[16,256], index: 10, kind: output, shape index: {}]  }
   0x1   :  { %16 = vsyncpa [#allocation6], 0 }
   0x2   :  { %17 = vsyncpa [#allocation4], 0  ;;  %s5856_s13 = smov [#allocation5]   ;;  %s5762_s17 = scalar_lea.hbm %s6612_s7, 32768 }
   0x3   :  { %s47_s14 = sshll.u32 %s5856_s13, 4  ;;  %p5763_p0 = scmp.ne.s32.totalorder %s6612_s7, %s5762_s17  ;;  %s48_s14 = int_to_ptr.vmem [resolvable:$true] %s47_s14 }
   0x4   :  { %p5766_p1 = scmp.lt.u32.totalorder %s5762_s17, %s6612_s7 }
   0x6   :  { %p5768_p2 = pnand %p5766_p1, %p5763_p0 }
   0x8   :  { %5771 = shalt.err (!%p5768_p2)
}
   0x9   :  { %s5772_s22 = scalar_lea.vmem %s48_s14, 32768  ;;  %p5777_p4 = scmp.lt.s32.totalorder %s48_s14, %s48_s14 }
   0xa   :  { %p5773_p3 = scmp.ne.s32.totalorder %s48_s14, %s5772_s22  ;;  %p5778_p5 = scmp.lt.s32.totalorder %s5772_s22, %s5772_s22 }
   0xc   :  { %p5779_p6 = por %p5778_p5, %p5777_p4 }
   0xe   :  { %p5780_p7 = pnand %p5779_p6, %p5773_p3 }
  0x10   :  { %5783 = shalt.err (!%p5780_p7)
}
  0x11   :  { %s5857_s23 = smov 256   ;;  %s5858_s24 = smov 16  }
  0x12   :  { %53 = dma.hbm_to_vmem [thread:$0]  %s6612_s7, 32768, %s48_s14, [#allocation6], %s5857_s23, %s5857_s23, %s5858_s24  }
  0x13   :  { %s5859_s27 = smov [#allocation2]   ;;  %s5784_s11 = scalar_lea.hbm %s6610_s5, 6144 }
  0x14   :  { %s33_s28 = sshll.u32 %s5859_s27, 4  ;;  %p5785_p8 = scmp.ne.s32.totalorder %s6610_s5, %s5784_s11  ;;  %s34_s28 = int_to_ptr.vmem [resolvable:$true] %s33_s28 }
  0x15   :  { %p5788_p9 = scmp.lt.u32.totalorder %s5784_s11, %s6610_s5 }
  0x17   :  { %p5790_p10 = pnand %p5788_p9, %p5785_p8 }
  0x19   :  { %5793 = shalt.err (!%p5790_p10)
}
  0x1a   :  { %s5794_s17 = scalar_lea.vmem %s34_s28, 6144  ;;  %p5799_p12 = scmp.lt.s32.totalorder %s34_s28, %s34_s28 }
  0x1b   :  { %p5795_p11 = scmp.ne.s32.totalorder %s34_s28, %s5794_s17  ;;  %p5800_p13 = scmp.lt.s32.totalorder %s5794_s17, %s5794_s17 }
  0x1d   :  { %p5801_p0 = por %p5800_p13, %p5799_p12 }
  0x1f   :  { %p5802_p1 = pnand %p5801_p0, %p5795_p11 }
  0x21   :  { %5805 = shalt.err (!%p5802_p1)
}
  0x22   :  { %s5860_s7 = smov 384   ;;  %s5861_s14 = smov 24  }
  0x23   :  { %39 = dma.hbm_to_vmem [thread:$0]  %s6610_s5, 6144, %s34_s28, [#allocation3], %s5860_s7, %s5860_s7, %s5861_s14  }
  0x24   :  { %s5862_s20 = smov [#allocation7]   ;;  %s5806_s26 = scalar_lea.hbm %s6614_s9, 8192 }
  0x25   :  { %s61_s21 = sshll.u32 %s5862_s20, 4  ;;  %p5807_p2 = scmp.ne.s32.totalorder %s6614_s9, %s5806_s26  ;;  %s62_s21 = int_to_ptr.vmem [resolvable:$true] %s61_s21 }
  0x26   :  { %p5810_p3 = scmp.lt.u32.totalorder %s5806_s26, %s6614_s9 }
  0x28   :  { %p5812_p4 = pnand %p5810_p3, %p5807_p2 }
  0x2a   :  { %5815 = shalt.err (!%p5812_p4)
}
  0x2b   :  { %s5816_s12 = scalar_lea.vmem %s62_s21, 8192  ;;  %p5821_p6 = scmp.lt.s32.totalorder %s62_s21, %s62_s21 }
  0x2c   :  { %p5817_p5 = scmp.ne.s32.totalorder %s62_s21, %s5816_s12  ;;  %p5822_p7 = scmp.lt.s32.totalorder %s5816_s12, %s5816_s12 }
  0x2e   :  { %p5823_p8 = por %p5822_p7, %p5821_p6 }
  0x30   :  { %p5824_p9 = pnand %p5823_p8, %p5817_p5 }
  0x32   :  { %5827 = shalt.err (!%p5824_p9)
}
  0x33   :  { %s5863_s5 = smov 128   ;;  %s5864_s28 = smov 8  }
  0x34   :  { %67 = dma.hbm_to_vmem [thread:$0]  %s6614_s9, 8192, %s62_s21, [#allocation6], %s5863_s5, %s5863_s5, %s5864_s28  }
  0x35   :  { %5850 = dma.done.wait [#allocation3], 6144  }
  0x36   :  { %5851 = vsyncadd [#allocation3], 4294961152 }
  0x37   :  { %5852 = dma.done.wait [#allocation6], 40960  }
  0x38   :  { %5853 = vsyncadd [#allocation6], 4294926336  ;;  %v5865_v0 = vmov 0.0   ;;  %vm5866_vm0 = vmmov 0   ;;  %v5170_v1 = vld [vmem:[%s6606_s1] sm:$0xff]   ;;  %v5171_v2 = vld [vmem:[%s6606_s1 + $0x8] sm:$0xff]  }
  0x39   :  { %4919 = vmatprep.subr.bf16.mxu0 %v5865_v0  ;;  %4929 = vmatprep.mubr.msk.bf16.mxu0 %vm5866_vm0, %v5865_v0  ;;  %v5172_v3 = vld [vmem:[%s6606_s1 + $0x10] sm:$0xff]   ;;  %v5173_v4 = vld [vmem:[%s6606_s1 + $0x18] sm:$0xff]   ;;  %v5174_v5 = vld [vmem:[%s6606_s1 + $0x20] sm:$0xff]   ;;  %vm258_vm1 = vcmask 654336   ;;  %v5867_v27 = vmov 0   ;;  %vm714_vm4 = vcmask 523264  }
  0x3a   :  { %4920 = vmatpush3.bf16.msra.mxu0 %v5170_v1  ;;  %v5175_v6 = vld [vmem:[%s6605_s0] sm:$0xff]   ;;  %v5176_v7 = vld [vmem:[%s6605_s0 + $0x8] sm:$0xff]   ;;  %v5177_v8 = vld [vmem:[%s6605_s0 + $0x10] sm:$0xff]   ;;  %804 = vmatprep.mubr.bf16.mxu1 %v5867_v27 }
  0x3b   :  { %4921 = vmatprep.subr.bf16.mxu0 %v5865_v0  ;;  %v5194_v9 = vld [vmem:[%s6608_s3 + $0x4] ss:$12 sps:$4 sm:$0xff]   ;;  %v5196_v10 = vld [vmem:[%s6608_s3] ss:$12 sps:$4 sm:$0xff]   ;;  %v5197_v11 = vld [vmem:[%s6608_s3 + $0x1c] ss:$12 sps:$4 sm:$0xff]  }
  0x3c   :  { %v5199_v12 = vld [vmem:[%s6608_s3 + $0x18] ss:$12 sps:$4 sm:$0xff]   ;;  %772 = vmatprep.subr.bf16.mxu1 %v5194_v9  ;;  %v5180_v15 = vld [vmem:[%s6605_s0 + $0x28] sm:$0xff]   ;;  %v5181_v16 = vld [vmem:[%s6605_s0 + $0x30] sm:$0xff]  }
  0x3d   :  { %v5178_v13 = vld [vmem:[%s6605_s0 + $0x18] sm:$0xff]   ;;  %773 = vmatpush1.bf16.msra.mxu1 %v5196_v10  ;;  %v5179_v14 = vld [vmem:[%s6605_s0 + $0x20] sm:$0xff]   ;;  %v5184_v19 = vld [vmem:[%s6605_s0 + $0x48] sm:$0xff]  }
  0x3e   :  { %4922 = vmatpush3.bf16.msra.mxu0 %v5171_v2  ;;  %774 = vmatprep.subr.bf16.mxu1 %v5197_v11  ;;  %v5182_v17 = vld [vmem:[%s6605_s0 + $0x38] sm:$0xff]   ;;  %v5183_v18 = vld [vmem:[%s6605_s0 + $0x40] sm:$0xff]   ;;  %v5185_v20 = vld [vmem:[%s6605_s0 + $0x50] sm:$0xff]  }
  0x3f   :  { %4923 = vmatprep.subr.bf16.mxu0 %v5865_v0  ;;  %v5186_v21 = vld [vmem:[%s6605_s0 + $0x58] sm:$0xff]   ;;  %v5200_v22 = vld [vmem:[%s6608_s3 + $0x34] ss:$12 sps:$4 sm:$0xff]   ;;  %v5188_v28 = vld [vmem:[%s6605_s0 + $0x68] sm:$0xff]  }
  0x40   :  { %v5202_v23 = vld [vmem:[%s6608_s3 + $0x30] ss:$12 sps:$4 sm:$0xff]   ;;  %v5203_v24 = vld [vmem:[%s6608_s3 + $0x4c] ss:$12 sps:$4 sm:$0xff]   ;;  %v5205_v25 = vld [vmem:[%s6608_s3 + $0x48] ss:$12 sps:$4 sm:$0xff]  }
  0x41   :  { %775 = vmatpush1.bf16.msra.mxu1 %v5199_v12  ;;  %v5187_v26 = vld [vmem:[%s6605_s0 + $0x60] sm:$0xff]   ;;  %v5189_v29 = vld [vmem:[%s6605_s0 + $0x70] sm:$0xff]   ;;  %v5190_v30 = vld [vmem:[%s6605_s0 + $0x78] sm:$0xff]  }
  0x42   :  { %4924 = vmatpush3.bf16.msra.mxu0 %v5172_v3  ;;  %776 = vmatprep.subr.bf16.mxu1 %v5200_v22  ;;  %v5191_v31 = vld [vmem:[%s6605_s0 + $0x80] sm:$0xff]   ;;  %v5192_v32 = vld [vmem:[%s6605_s0 + $0x88] sm:$0xff]   ;;  %v5193_v33 = vld [vmem:[%s6605_s0 + $0x90] sm:$0xff]  }
  0x43   :  { %4925 = vmatprep.subr.bf16.mxu0 %v5865_v0  ;;  %v6127_v34 = vld [vmem:[%s6607_s2] ss:$0 sm:$0xff]  ;;  %v5206_v45 = vld [vmem:[%s6608_s3 + $0x8] ss:$12 sps:$4 sm:$0xff]   ;;  %v5208_v58 = vld [vmem:[%s6608_s3 + $0x38] ss:$12 sps:$4 sm:$0xff]  }
  0x44   :  { %v5207_v54 = vld [vmem:[%s6608_s3 + $0x20] ss:$12 sps:$4 sm:$0xff]  }
  0x45   :  { %777 = vmatpush1.bf16.msra.mxu1 %v5202_v23 }
  0x46   :  { %4926 = vmatpush3.bf16.msra.mxu0 %v5173_v4  ;;  %778 = vmatprep.subr.bf16.mxu1 %v5203_v24  ;;  %v5209_v4 = vld [vmem:[%s6608_s3 + $0x50] ss:$12 sps:$4 sm:$0xff]  }
  0x47   :  { %4927 = vmatprep.subr.bf16.mxu0 %v5865_v0 }
  0x49   :  { %779 = vmatpush1.bf16.msra.mxu1 %v5205_v25 }
  0x4a   :  { %4928 = vmatpush3.bf16.msra.mxu0 %v5174_v5  ;;  %5005 = vmatprep.subr.bf16.mxu1 %v5865_v0 }
  0x4d   :  { %4930 = vmatmul.mubr.msk.bf16.vlgmr.msra.gmra.mrb[0].mxu0 %vm258_vm1, %v5175_v6 }
  0x4e   :  { %4933 = vmatprep.mubr.msk.bf16.mxu0 %vm5866_vm0, %v5865_v0 }
  0x55   :  { %4934 = vmatmul.mubr.msk.bf16.gmra.mrb[4].mxu0 %vm258_vm1, %v5176_v7 }
  0x56   :  { %4937 = vmatprep.mubr.msk.bf16.mxu0 %vm5866_vm0, %v5865_v0 }
  0x5d   :  { %4938 = vmatmul.mubr.msk.bf16.gmra.mrb[8].mxu0 %vm258_vm1, %v5177_v8 }
  0x5e   :  { %4941 = vmatprep.mubr.msk.bf16.mxu0 %vm5866_vm0, %v5865_v0 }
  0x65   :  { %4942 = vmatmul.mubr.msk.bf16.gmra.mrb[12].mxu0 %vm258_vm1, %v5178_v13 }
  0x66   :  { %4945 = vmatprep.mubr.msk.bf16.mxu0 %vm5866_vm0, %v5865_v0 }
  0x6d   :  { %4946 = vmatmul.mubr.msk.bf16.gmra.mrb[16].mxu0 %vm258_vm1, %v5179_v14 }
  0x6e   :  { %4949 = vmatprep.mubr.msk.bf16.mxu0 %vm5866_vm0, %v5865_v0 }
  0x75   :  { %4950 = vmatmul.mubr.msk.bf16.gmra.mrb[20].mxu0 %vm258_vm1, %v5180_v15 }
  0x76   :  { %4953 = vmatprep.mubr.msk.bf16.mxu0 %vm5866_vm0, %v5865_v0 }
  0x7d   :  { %4954 = vmatmul.mubr.msk.bf16.gmra.mrb[24].mxu0 %vm258_vm1, %v5181_v16 }
  0x7e   :  { %4957 = vmatprep.mubr.msk.bf16.mxu0 %vm5866_vm0, %v5865_v0 }
  0x85   :  { %4958 = vmatmul.mubr.msk.bf16.gmra.mrb[28].mxu0 %vm258_vm1, %v5182_v17 }
  0x86   :  { %4961 = vmatprep.mubr.msk.bf16.mxu0 %vm5866_vm0, %v5865_v0 }
  0x8d   :  { %4962 = vmatmul.mubr.msk.bf16.gmra.mrb[32].mxu0 %vm258_vm1, %v5183_v18 }
  0x8e   :  { %4965 = vmatprep.mubr.msk.bf16.mxu0 %vm5866_vm0, %v5865_v0 }
  0x95   :  { %4966 = vmatmul.mubr.msk.bf16.gmra.mrb[36].mxu0 %vm258_vm1, %v5184_v19 }
  0x96   :  { %4969 = vmatprep.mubr.msk.bf16.mxu0 %vm5866_vm0, %v5865_v0 }
  0x9d   :  { %4970 = vmatmul.mubr.msk.bf16.gmra.mrb[40].mxu0 %vm258_vm1, %v5185_v20 }
  0x9e   :  { %4973 = vmatprep.mubr.msk.bf16.mxu0 %vm5866_vm0, %v5865_v0 }
  0xa5   :  { %4974 = vmatmul.mubr.msk.bf16.gmra.mrb[44].mxu0 %vm258_vm1, %v5186_v21 }
  0xa6   :  { %4977 = vmatprep.mubr.msk.bf16.mxu0 %vm5866_vm0, %v5865_v0 }
  0xad   :  { %4978 = vmatmul.mubr.msk.bf16.gmra.mrb[48].mxu0 %vm258_vm1, %v5187_v26 }
  0xae   :  { %4981 = vmatprep.mubr.msk.bf16.mxu0 %vm5866_vm0, %v5865_v0 }
  0xb5   :  { %4982 = vmatmul.mubr.msk.bf16.gmra.mrb[52].mxu0 %vm258_vm1, %v5188_v28 }
  0xb6   :  { %4985 = vmatprep.mubr.msk.bf16.mxu0 %vm5866_vm0, %v5865_v0 }
  0xbd   :  { %4986 = vmatmul.mubr.msk.bf16.gmra.mrb[56].mxu0 %vm258_vm1, %v5189_v29 }
  0xbe   :  { %4989 = vmatprep.mubr.msk.bf16.mxu0 %vm5866_vm0, %v5865_v0 }
  0xc5   :  { %4990 = vmatmul.mubr.msk.bf16.gmra.mrb[60].mxu0 %vm258_vm1, %v5190_v30 }
  0xc6   :  { %4993 = vmatprep.mubr.msk.bf16.mxu0 %vm5866_vm0, %v5865_v0 }
  0xcd   :  { %4994 = vmatmul.mubr.msk.bf16.gmra.mrb[64].mxu0 %vm258_vm1, %v5191_v31 }
  0xce   :  { %4997 = vmatprep.mubr.msk.bf16.mxu0 %vm5866_vm0, %v5865_v0 }
  0xd5   :  { %4998 = vmatmul.mubr.msk.bf16.gmra.mrb[68].mxu0 %vm258_vm1, %v5192_v32 }
  0xd6   :  { %5001 = vmatprep.mubr.msk.bf16.mxu0 %vm5866_vm0, %v5865_v0 }
  0xdd   :  { %5002 = vmatmul.mubr.msk.bf16.gmra.mrb[72].mxu0 %vm258_vm1, %v5193_v33 }
  0xde   :  { %1564 = vmatprep.mubr.bf16.mxu0 %v5867_v27 }
 0x120   :  { %v350_v35 = vpop.f32.mrb[0].mxu0 }
 0x121   :  { %v351_v36 = vadd.f32 %v6127_v34, %v350_v35  ;;  %v4931_v37 = vpop.f32.mrb[1].mxu0 }
 0x122   :  { %v353_v38 = vpop.f32.mrb[2].mxu0 }
 0x123   :  { %v539_v39 = vmul.f32 0.1, %v351_v36  ;;  %v354_v40 = vadd.f32 %v6127_v34, %v353_v38  ;;  %v4932_v41 = vpop.f32.mrb[3].mxu0  ;;  %vm501_vm2 = vcmp.ge.f32.partialorder %v351_v36, 0.0 }
 0x125   :  { %vm502_vm3 = vcmp.ge.f32.partialorder %v354_v40, 0.0  ;;  %v540_v42 = vmul.f32 0.1, %v354_v40  ;;  %v577_v43 = vsel %vm501_vm2, %v351_v36, %v539_v39 }
 0x127   :  { %v578_v44 = vsel %vm502_vm3, %v354_v40, %v540_v42 }
 0x128   :  { %v6134_v46 = vpack.c.bf16 %v578_v44, %v577_v43  ;;  %v358_v47 = vpop.f32.mrb[4].mxu0 }
 0x129   :  { %v359_v48 = vadd.f32 %v6127_v34, %v358_v47  ;;  %v4935_v49 = vpop.f32.mrb[5].mxu0 }
 0x12a   :  { %v361_v50 = vpop.f32.mrb[6].mxu0  ;;  %4465 = vmatmul.mubr.msk.bf16.vlgmr.msra.gmra.mrb[0].mxu1 %vm714_vm4, %v6134_v46 }
 0x12b   :  { %v541_v51 = vmul.f32 0.1, %v359_v48  ;;  %v362_v52 = vadd.f32 %v6127_v34, %v361_v50  ;;  %5006 = vmatpush3.bf16.msra.mxu1 %v5206_v45  ;;  %v4936_v53 = vpop.f32.mrb[7].mxu0  ;;  %812 = vmatprep.mubr.bf16.mxu1 %v5867_v27  ;;  %vm503_vm5 = vcmp.ge.f32.partialorder %v359_v48, 0.0 }
 0x12c   :  { %5007 = vmatprep.subr.bf16.mxu1 %v5865_v0 }
 0x12d   :  { %vm504_vm6 = vcmp.ge.f32.partialorder %v362_v52, 0.0  ;;  %v542_v55 = vmul.f32 0.1, %v362_v52  ;;  %v579_v56 = vsel %vm503_vm5, %v359_v48, %v541_v51 }
 0x12f   :  { %v580_v57 = vsel %vm504_vm6, %v362_v52, %v542_v55  ;;  %5008 = vmatpush3.bf16.msra.mxu1 %v5207_v54 }
 0x130   :  { %v6148_v59 = vpack.c.bf16 %v580_v57, %v579_v56  ;;  %v366_v60 = vpop.f32.mrb[8].mxu0  ;;  %5009 = vmatprep.subr.bf16.mxu1 %v5865_v0 }
 0x131   :  { %v367_v61 = vadd.f32 %v6127_v34, %v366_v60  ;;  %v4939_v62 = vpop.f32.mrb[9].mxu0 }
 0x132   :  { %v369_v63 = vpop.f32.mrb[10].mxu0  ;;  %4466 = vmatmul.mubr.msk.bf16.gmra.mrb[4].mxu1 %vm714_vm4, %v6148_v59 }
 0x133   :  { %v543_v1 = vmul.f32 0.1, %v367_v61  ;;  %v370_v2 = vadd.f32 %v6127_v34, %v369_v63  ;;  %v4940_v3 = vpop.f32.mrb[11].mxu0  ;;  %820 = vmatprep.mubr.bf16.mxu1 %v5867_v27  ;;  %5010 = vmatpush3.bf16.msra.mxu1 %v5208_v58  ;;  %vm505_vm7 = vcmp.ge.f32.partialorder %v367_v61, 0.0 }
 0x134   :  { %5011 = vmatprep.subr.bf16.mxu1 %v5865_v0 }
 0x135   :  { %vm506_vm8 = vcmp.ge.f32.partialorder %v370_v2, 0.0  ;;  %v544_v5 = vmul.f32 0.1, %v370_v2  ;;  %v581_v6 = vsel %vm505_vm7, %v367_v61, %v543_v1 }
 0x137   :  { %v582_v7 = vsel %vm506_vm8, %v370_v2, %v544_v5  ;;  %5012 = vmatpush3.bf16.msra.mxu1 %v5209_v4 }
 0x138   :  { %v6160_v8 = vpack.c.bf16 %v582_v7, %v581_v6  ;;  %v374_v9 = vpop.f32.mrb[12].mxu0 }
 0x139   :  { %v375_v10 = vadd.f32 %v6127_v34, %v374_v9  ;;  %v4943_v11 = vpop.f32.mrb[13].mxu0 }
 0x13a   :  { %v377_v12 = vpop.f32.mrb[14].mxu0  ;;  %4467 = vmatmul.mubr.msk.bf16.gmra.mrb[8].mxu1 %vm714_vm4, %v6160_v8 }
 0x13b   :  { %v545_v13 = vmul.f32 0.1, %v375_v10  ;;  %v378_v14 = vadd.f32 %v6127_v34, %v377_v12  ;;  %v4944_v15 = vpop.f32.mrb[15].mxu0  ;;  %828 = vmatprep.mubr.bf16.mxu1 %v5867_v27  ;;  %vm507_vm9 = vcmp.ge.f32.partialorder %v375_v10, 0.0 }
 0x13d   :  { %vm508_vm10 = vcmp.ge.f32.partialorder %v378_v14, 0.0  ;;  %v546_v16 = vmul.f32 0.1, %v378_v14  ;;  %v583_v17 = vsel %vm507_vm9, %v375_v10, %v545_v13 }
 0x13f   :  { %v584_v18 = vsel %vm508_vm10, %v378_v14, %v546_v16 }
 0x140   :  { %v6167_v19 = vpack.c.bf16 %v584_v18, %v583_v17  ;;  %v382_v20 = vpop.f32.mrb[16].mxu0 }
 0x141   :  { %v383_v21 = vadd.f32 %v6127_v34, %v382_v20  ;;  %v4947_v22 = vpop.f32.mrb[17].mxu0 }
 0x142   :  { %v385_v23 = vpop.f32.mrb[18].mxu0  ;;  %4468 = vmatmul.mubr.msk.bf16.gmra.mrb[12].mxu1 %vm714_vm4, %v6167_v19 }
 0x143   :  { %v547_v24 = vmul.f32 0.1, %v383_v21  ;;  %v386_v25 = vadd.f32 %v6127_v34, %v385_v23  ;;  %v4948_v26 = vpop.f32.mrb[19].mxu0  ;;  %836 = vmatprep.mubr.bf16.mxu1 %v5867_v27  ;;  %vm509_vm11 = vcmp.ge.f32.partialorder %v383_v21, 0.0 }
 0x145   :  { %vm510_vm12 = vcmp.ge.f32.partialorder %v386_v25, 0.0  ;;  %v548_v28 = vmul.f32 0.1, %v386_v25  ;;  %v585_v29 = vsel %vm509_vm11, %v383_v21, %v547_v24 }
 0x147   :  { %v586_v30 = vsel %vm510_vm12, %v386_v25, %v548_v28 }
 0x148   :  { %v6174_v31 = vpack.c.bf16 %v586_v30, %v585_v29  ;;  %v390_v32 = vpop.f32.mrb[20].mxu0 }
 0x149   :  { %v391_v33 = vadd.f32 %v6127_v34, %v390_v32  ;;  %v4951_v35 = vpop.f32.mrb[21].mxu0 }
 0x14a   :  { %v393_v36 = vpop.f32.mrb[22].mxu0  ;;  %4469 = vmatmul.mubr.msk.bf16.gmra.mrb[16].mxu1 %vm714_vm4, %v6174_v31 }
 0x14b   :  { %v549_v37 = vmul.f32 0.1, %v391_v33  ;;  %v394_v38 = vadd.f32 %v6127_v34, %v393_v36  ;;  %v4952_v39 = vpop.f32.mrb[23].mxu0  ;;  %844 = vmatprep.mubr.bf16.mxu1 %v5867_v27  ;;  %vm511_vm13 = vcmp.ge.f32.partialorder %v391_v33, 0.0 }
 0x14d   :  { %vm512_vm14 = vcmp.ge.f32.partialorder %v394_v38, 0.0  ;;  %v550_v40 = vmul.f32 0.1, %v394_v38  ;;  %v587_v41 = vsel %vm511_vm13, %v391_v33, %v549_v37 }
 0x14f   :  { %v588_v42 = vsel %vm512_vm14, %v394_v38, %v550_v40 }
 0x150   :  { %v6181_v43 = vpack.c.bf16 %v588_v42, %v587_v41  ;;  %v398_v44 = vpop.f32.mrb[24].mxu0 }
 0x151   :  { %v399_v45 = vadd.f32 %v6127_v34, %v398_v44  ;;  %v4955_v47 = vpop.f32.mrb[25].mxu0 }
 0x152   :  { %v401_v48 = vpop.f32.mrb[26].mxu0  ;;  %4470 = vmatmul.mubr.msk.bf16.gmra.mrb[20].mxu1 %vm714_vm4, %v6181_v43 }
 0x153   :  { %v551_v49 = vmul.f32 0.1, %v399_v45  ;;  %v402_v50 = vadd.f32 %v6127_v34, %v401_v48  ;;  %v4956_v51 = vpop.f32.mrb[27].mxu0  ;;  %852 = vmatprep.mubr.bf16.mxu1 %v5867_v27  ;;  %vm513_vm15 = vcmp.ge.f32.partialorder %v399_v45, 0.0 }
 0x155   :  { %vm514_vm1 = vcmp.ge.f32.partialorder %v402_v50, 0.0  ;;  %v552_v52 = vmul.f32 0.1, %v402_v50  ;;  %v589_v53 = vsel %vm513_vm15, %v399_v45, %v551_v49 }
 0x157   :  { %v590_v54 = vsel %vm514_vm1, %v402_v50, %v552_v52 }
 0x158   :  { %v6188_v55 = vpack.c.bf16 %v590_v54, %v589_v53  ;;  %v406_v56 = vpop.f32.mrb[28].mxu0 }
 0x159   :  { %v407_v57 = vadd.f32 %v6127_v34, %v406_v56  ;;  %v4959_v58 = vpop.f32.mrb[29].mxu0 }
 0x15a   :  { %v409_v60 = vpop.f32.mrb[30].mxu0  ;;  %4471 = vmatmul.mubr.msk.bf16.gmra.mrb[24].mxu1 %vm714_vm4, %v6188_v55 }
 0x15b   :  { %v553_v61 = vmul.f32 0.1, %v407_v57  ;;  %v410_v62 = vadd.f32 %v6127_v34, %v409_v60  ;;  %v4960_v63 = vpop.f32.mrb[31].mxu0  ;;  %860 = vmatprep.mubr.bf16.mxu1 %v5867_v27  ;;  %vm515_vm2 = vcmp.ge.f32.partialorder %v407_v57, 0.0 }
 0x15d   :  { %vm516_vm3 = vcmp.ge.f32.partialorder %v410_v62, 0.0  ;;  %v554_v1 = vmul.f32 0.1, %v410_v62  ;;  %v591_v2 = vsel %vm515_vm2, %v407_v57, %v553_v61 }
 0x15f   :  { %v592_v3 = vsel %vm516_vm3, %v410_v62, %v554_v1 }
 0x160   :  { %v6195_v4 = vpack.c.bf16 %v592_v3, %v591_v2  ;;  %v414_v5 = vpop.f32.mrb[32].mxu0 }
 0x161   :  { %v415_v6 = vadd.f32 %v6127_v34, %v414_v5  ;;  %v4963_v7 = vpop.f32.mrb[33].mxu0 }
 0x162   :  { %v417_v9 = vpop.f32.mrb[34].mxu0  ;;  %4472 = vmatmul.mubr.msk.bf16.gmra.mrb[28].mxu1 %vm714_vm4, %v6195_v4 }
 0x163   :  { %v555_v10 = vmul.f32 0.1, %v415_v6  ;;  %v418_v11 = vadd.f32 %v6127_v34, %v417_v9  ;;  %v4964_v12 = vpop.f32.mrb[35].mxu0  ;;  %868 = vmatprep.mubr.bf16.mxu1 %v5867_v27  ;;  %vm517_vm5 = vcmp.ge.f32.partialorder %v415_v6, 0.0 }
 0x165   :  { %vm518_vm6 = vcmp.ge.f32.partialorder %v418_v11, 0.0  ;;  %v556_v13 = vmul.f32 0.1, %v418_v11  ;;  %v593_v14 = vsel %vm517_vm5, %v415_v6, %v555_v10 }
 0x167   :  { %v594_v15 = vsel %vm518_vm6, %v418_v11, %v556_v13 }
 0x168   :  { %v6202_v16 = vpack.c.bf16 %v594_v15, %v593_v14  ;;  %v422_v17 = vpop.f32.mrb[36].mxu0 }
 0x169   :  { %v423_v18 = vadd.f32 %v6127_v34, %v422_v17  ;;  %v4967_v20 = vpop.f32.mrb[37].mxu0 }
 0x16a   :  { %v425_v21 = vpop.f32.mrb[38].mxu0  ;;  %4473 = vmatmul.mubr.msk.bf16.gmra.mrb[32].mxu1 %vm714_vm4, %v6202_v16 }
 0x16b   :  { %v557_v22 = vmul.f32 0.1, %v423_v18  ;;  %v426_v23 = vadd.f32 %v6127_v34, %v425_v21  ;;  %v4968_v24 = vpop.f32.mrb[39].mxu0  ;;  %876 = vmatprep.mubr.bf16.mxu1 %v5867_v27  ;;  %vm519_vm7 = vcmp.ge.f32.partialorder %v423_v18, 0.0 }
 0x16d   :  { %vm520_vm8 = vcmp.ge.f32.partialorder %v426_v23, 0.0  ;;  %v558_v25 = vmul.f32 0.1, %v426_v23  ;;  %v595_v26 = vsel %vm519_vm7, %v423_v18, %v557_v22 }
 0x16f   :  { %v596_v28 = vsel %vm520_vm8, %v426_v23, %v558_v25 }
 0x170   :  { %v6209_v29 = vpack.c.bf16 %v596_v28, %v595_v26  ;;  %v430_v30 = vpop.f32.mrb[40].mxu0 }
 0x171   :  { %v431_v32 = vadd.f32 %v6127_v34, %v430_v30  ;;  %v4971_v33 = vpop.f32.mrb[41].mxu0 }
 0x172   :  { %v433_v35 = vpop.f32.mrb[42].mxu0  ;;  %4474 = vmatmul.mubr.msk.bf16.gmra.mrb[36].mxu1 %vm714_vm4, %v6209_v29 }
 0x173   :  { %v559_v36 = vmul.f32 0.1, %v431_v32  ;;  %v434_v37 = vadd.f32 %v6127_v34, %v433_v35  ;;  %v4972_v38 = vpop.f32.mrb[43].mxu0  ;;  %884 = vmatprep.mubr.bf16.mxu1 %v5867_v27  ;;  %vm521_vm9 = vcmp.ge.f32.partialorder %v431_v32, 0.0 }
 0x175   :  { %vm522_vm10 = vcmp.ge.f32.partialorder %v434_v37, 0.0  ;;  %v560_v39 = vmul.f32 0.1, %v434_v37  ;;  %v597_v40 = vsel %vm521_vm9, %v431_v32, %v559_v36 }
 0x177   :  { %v598_v41 = vsel %vm522_vm10, %v434_v37, %v560_v39 }
 0x178   :  { %v6216_v42 = vpack.c.bf16 %v598_v41, %v597_v40  ;;  %v438_v44 = vpop.f32.mrb[44].mxu0 }
 0x179   :  { %v439_v45 = vadd.f32 %v6127_v34, %v438_v44  ;;  %v4975_v47 = vpop.f32.mrb[45].mxu0 }
 0x17a   :  { %v441_v48 = vpop.f32.mrb[46].mxu0  ;;  %4475 = vmatmul.mubr.msk.bf16.gmra.mrb[40].mxu1 %vm714_vm4, %v6216_v42 }
 0x17b   :  { %v561_v49 = vmul.f32 0.1, %v439_v45  ;;  %v442_v50 = vadd.f32 %v6127_v34, %v441_v48  ;;  %v4976_v51 = vpop.f32.mrb[47].mxu0  ;;  %892 = vmatprep.mubr.bf16.mxu1 %v5867_v27  ;;  %vm523_vm11 = vcmp.ge.f32.partialorder %v439_v45, 0.0 }
 0x17d   :  { %vm524_vm12 = vcmp.ge.f32.partialorder %v442_v50, 0.0  ;;  %v562_v52 = vmul.f32 0.1, %v442_v50  ;;  %v599_v53 = vsel %vm523_vm11, %v439_v45, %v561_v49 }
 0x17f   :  { %v600_v54 = vsel %vm524_vm12, %v442_v50, %v562_v52 }
 0x180   :  { %v6223_v56 = vpack.c.bf16 %v600_v54, %v599_v53  ;;  %v446_v57 = vpop.f32.mrb[48].mxu0 }
 0x181   :  { %v447_v58 = vadd.f32 %v6127_v34, %v446_v57  ;;  %v4979_v60 = vpop.f32.mrb[49].mxu0 }
 0x182   :  { %v449_v61 = vpop.f32.mrb[50].mxu0  ;;  %4476 = vmatmul.mubr.msk.bf16.gmra.mrb[44].mxu1 %vm714_vm4, %v6223_v56 }
 0x183   :  { %v563_v62 = vmul.f32 0.1, %v447_v58  ;;  %v450_v63 = vadd.f32 %v6127_v34, %v449_v61  ;;  %v4980_v1 = vpop.f32.mrb[51].mxu0  ;;  %900 = vmatprep.mubr.bf16.mxu1 %v5867_v27  ;;  %vm525_vm13 = vcmp.ge.f32.partialorder %v447_v58, 0.0 }
 0x185   :  { %vm526_vm14 = vcmp.ge.f32.partialorder %v450_v63, 0.0  ;;  %v564_v2 = vmul.f32 0.1, %v450_v63  ;;  %v601_v3 = vsel %vm525_vm13, %v447_v58, %v563_v62 }
 0x187   :  { %v602_v5 = vsel %vm526_vm14, %v450_v63, %v564_v2 }
 0x188   :  { %v6230_v6 = vpack.c.bf16 %v602_v5, %v601_v3  ;;  %v454_v7 = vpop.f32.mrb[52].mxu0 }
 0x189   :  { %v455_v9 = vadd.f32 %v6127_v34, %v454_v7  ;;  %v4983_v10 = vpop.f32.mrb[53].mxu0 }
 0x18a   :  { %v457_v11 = vpop.f32.mrb[54].mxu0  ;;  %4477 = vmatmul.mubr.msk.bf16.gmra.mrb[48].mxu1 %vm714_vm4, %v6230_v6 }
 0x18b   :  { %v565_v12 = vmul.f32 0.1, %v455_v9  ;;  %v458_v13 = vadd.f32 %v6127_v34, %v457_v11  ;;  %v4984_v14 = vpop.f32.mrb[55].mxu0  ;;  %908 = vmatprep.mubr.bf16.mxu1 %v5867_v27  ;;  %vm527_vm15 = vcmp.ge.f32.partialorder %v455_v9, 0.0 }
 0x18d   :  { %vm528_vm1 = vcmp.ge.f32.partialorder %v458_v13, 0.0  ;;  %v566_v15 = vmul.f32 0.1, %v458_v13  ;;  %v603_v17 = vsel %vm527_vm15, %v455_v9, %v565_v12 }
 0x18f   :  { %v604_v18 = vsel %vm528_vm1, %v458_v13, %v566_v15 }
 0x190   :  { %v6237_v20 = vpack.c.bf16 %v604_v18, %v603_v17  ;;  %v462_v21 = vpop.f32.mrb[56].mxu0 }
 0x191   :  { %v463_v22 = vadd.f32 %v6127_v34, %v462_v21  ;;  %v4987_v23 = vpop.f32.mrb[57].mxu0 }
 0x192   :  { %v465_v24 = vpop.f32.mrb[58].mxu0  ;;  %4478 = vmatmul.mubr.msk.bf16.gmra.mrb[52].mxu1 %vm714_vm4, %v6237_v20 }
 0x193   :  { %v567_v25 = vmul.f32 0.1, %v463_v22  ;;  %v466_v26 = vadd.f32 %v6127_v34, %v465_v24  ;;  %v4988_v28 = vpop.f32.mrb[59].mxu0  ;;  %916 = vmatprep.mubr.bf16.mxu1 %v5867_v27  ;;  %vm529_vm2 = vcmp.ge.f32.partialorder %v463_v22, 0.0 }
 0x195   :  { %vm530_vm3 = vcmp.ge.f32.partialorder %v466_v26, 0.0  ;;  %v568_v30 = vmul.f32 0.1, %v466_v26  ;;  %v605_v32 = vsel %vm529_vm2, %v463_v22, %v567_v25 }
 0x197   :  { %v606_v33 = vsel %vm530_vm3, %v466_v26, %v568_v30 }
 0x198   :  { %v6244_v35 = vpack.c.bf16 %v606_v33, %v605_v32  ;;  %v470_v36 = vpop.f32.mrb[60].mxu0  ;;  %v5212_v32 = vld [vmem:[#allocation2 + $0x4] ss:$24 sps:$4 sm:$0xff]  }
 0x199   :  { %v471_v37 = vadd.f32 %v6127_v34, %v470_v36  ;;  %v4991_v38 = vpop.f32.mrb[61].mxu0  ;;  %1532 = vmatprep.subr.bf16.mxu0 %v5212_v32 }
 0x19a   :  { %v473_v39 = vpop.f32.mrb[62].mxu0  ;;  %4479 = vmatmul.mubr.msk.bf16.gmra.mrb[56].mxu1 %vm714_vm4, %v6244_v35 }
 0x19b   :  { %v569_v40 = vmul.f32 0.1, %v471_v37  ;;  %v474_v41 = vadd.f32 %v6127_v34, %v473_v39  ;;  %v4992_v44 = vpop.f32.mrb[63].mxu0  ;;  %924 = vmatprep.mubr.bf16.mxu1 %v5867_v27  ;;  %vm531_vm5 = vcmp.ge.f32.partialorder %v471_v37, 0.0 }
 0x19d   :  { %vm532_vm6 = vcmp.ge.f32.partialorder %v474_v41, 0.0  ;;  %v570_v45 = vmul.f32 0.1, %v474_v41  ;;  %v607_v47 = vsel %vm531_vm5, %v471_v37, %v569_v40 }
 0x19f   :  { %v608_v48 = vsel %vm532_vm6, %v474_v41, %v570_v45 }
 0x1a0   :  { %v6251_v49 = vpack.c.bf16 %v608_v48, %v607_v47  ;;  %v478_v50 = vpop.f32.mrb[64].mxu0  ;;  %v5219_v47 = vld [vmem:[#allocation2 + $0x90] ss:$24 sps:$4 sm:$0xff]   ;;  %v5221_v48 = vld [vmem:[#allocation2 + $0x94] ss:$24 sps:$4 sm:$0xff]  }
 0x1a1   :  { %v479_v51 = vadd.f32 %v6127_v34, %v478_v50  ;;  %v4995_v52 = vpop.f32.mrb[65].mxu0 }
 0x1a2   :  { %v481_v53 = vpop.f32.mrb[66].mxu0  ;;  %4480 = vmatmul.mubr.msk.bf16.gmra.mrb[60].mxu1 %vm714_vm4, %v6251_v49 }
 0x1a3   :  { %v571_v54 = vmul.f32 0.1, %v479_v51  ;;  %v482_v57 = vadd.f32 %v6127_v34, %v481_v53  ;;  %v4996_v58 = vpop.f32.mrb[67].mxu0  ;;  %932 = vmatprep.mubr.bf16.mxu1 %v5867_v27  ;;  %vm533_vm7 = vcmp.ge.f32.partialorder %v479_v51, 0.0 }
 0x1a5   :  { %vm534_vm8 = vcmp.ge.f32.partialorder %v482_v57, 0.0  ;;  %v572_v60 = vmul.f32 0.1, %v482_v57  ;;  %v609_v61 = vsel %vm533_vm7, %v479_v51, %v571_v54 }
 0x1a7   :  { %v610_v62 = vsel %vm534_vm8, %v482_v57, %v572_v60  ;;  %v5224_v60 = vld [vmem:[#allocation2 + $0xc4] ss:$24 sps:$4 sm:$0xff]  }
 0x1a8   :  { %v6258_v63 = vpack.c.bf16 %v610_v62, %v609_v61  ;;  %v486_v1 = vpop.f32.mrb[68].mxu0  ;;  %v5222_v62 = vld [vmem:[#allocation2 + $0xc0] ss:$24 sps:$4 sm:$0xff]  }
 0x1a9   :  { %v487_v2 = vadd.f32 %v6127_v34, %v486_v1  ;;  %v4999_v3 = vpop.f32.mrb[69].mxu0  ;;  %v5227_v1 = vld [vmem:[#allocation2 + $0xf4] ss:$24 sps:$4 sm:$0xff]  }
 0x1aa   :  { %v489_v5 = vpop.f32.mrb[70].mxu0  ;;  %4481 = vmatmul.mubr.msk.bf16.gmra.mrb[64].mxu1 %vm714_vm4, %v6258_v63 }
 0x1ab   :  { %v573_v7 = vmul.f32 0.1, %v487_v2  ;;  %v490_v9 = vadd.f32 %v6127_v34, %v489_v5  ;;  %v5000_v10 = vpop.f32.mrb[71].mxu0  ;;  %940 = vmatprep.mubr.bf16.mxu1 %v5867_v27  ;;  %vm535_vm9 = vcmp.ge.f32.partialorder %v487_v2, 0.0 }
 0x1ad   :  { %vm536_vm10 = vcmp.ge.f32.partialorder %v490_v9, 0.0  ;;  %v574_v11 = vmul.f32 0.1, %v490_v9  ;;  %v611_v12 = vsel %vm535_vm9, %v487_v2, %v573_v7  ;;  %v5225_v2 = vld [vmem:[#allocation2 + $0xf0] ss:$24 sps:$4 sm:$0xff]  }
 0x1af   :  { %v612_v13 = vsel %vm536_vm10, %v490_v9, %v574_v11  ;;  %v5230_v9 = vld [vmem:[#allocation2 + $0x124] ss:$24 sps:$4 sm:$0xff]   ;;  %v5228_v11 = vld [vmem:[#allocation2 + $0x120] ss:$24 sps:$4 sm:$0xff]  }
 0x1b0   :  { %v6265_v14 = vpack.c.bf16 %v612_v13, %v611_v12  ;;  %v494_v15 = vpop.f32.mrb[72].mxu0  ;;  %v5231_v13 = vld [vmem:[#allocation2 + $0x150] ss:$24 sps:$4 sm:$0xff]  }
 0x1b1   :  { %v495_v17 = vadd.f32 %v6127_v34, %v494_v15  ;;  %v5003_v18 = vpop.f32.mrb[73].mxu0 }
 0x1b2   :  { %v497_v21 = vpop.f32.mrb[74].mxu0  ;;  %4482 = vmatmul.mubr.msk.bf16.gmra.mrb[68].mxu1 %vm714_vm4, %v6265_v14 }
 0x1b3   :  { %v575_v22 = vmul.f32 0.1, %v495_v17  ;;  %v498_v23 = vadd.f32 %v6127_v34, %v497_v21  ;;  %v5004_v24 = vpop.f32.mrb[75].mxu0  ;;  %948 = vmatprep.mubr.bf16.mxu1 %v5867_v27  ;;  %vm537_vm11 = vcmp.ge.f32.partialorder %v495_v17, 0.0  ;;  %v5210_v34 = vld [vmem:[#allocation2] ss:$24 sps:$4 sm:$0xff]  }
 0x1b4   :  { %1533 = vmatpush1.bf16.msra.mxu0 %v5210_v34 }
 0x1b5   :  { %vm538_vm12 = vcmp.ge.f32.partialorder %v498_v23, 0.0  ;;  %v576_v25 = vmul.f32 0.1, %v498_v23  ;;  %v613_v26 = vsel %vm537_vm11, %v495_v17, %v575_v22 }
 0x1b7   :  { %v614_v28 = vsel %vm538_vm12, %v498_v23, %v576_v25 }
 0x1b8   :  { %v6272_v30 = vpack.c.bf16 %v614_v28, %v613_v26 }
 0x1ba   :  { %4483 = vmatmul.mubr.msk.bf16.gmra.mrb[72].mxu1 %vm714_vm4, %v6272_v30 }
 0x1bb   :  { %5013 = vmatprep.mubr.msk.bf16.mxu1 %vm5866_vm0, %v5865_v0 }
 0x1c2   :  { %5014 = vmatmul.mubr.msk.bf16.vlgmr.msra.gmra.mrb[76].mxu1 %vm714_vm4, %v6134_v46  ;;  %v5213_v46 = vld [vmem:[#allocation2 + $0x30] ss:$24 sps:$4 sm:$0xff]  }
 0x1c3   :  { %5017 = vmatprep.mubr.msk.bf16.mxu1 %vm5866_vm0, %v5865_v0 }
 0x1ca   :  { %5018 = vmatmul.mubr.msk.bf16.gmra.mrb[80].mxu1 %vm714_vm4, %v6148_v59  ;;  %v5215_v59 = vld [vmem:[#allocation2 + $0x34] ss:$24 sps:$4 sm:$0xff]  }
 0x1cb   :  { %5021 = vmatprep.mubr.msk.bf16.mxu1 %vm5866_vm0, %v5865_v0  ;;  %1534 = vmatprep.subr.bf16.mxu0 %v5215_v59 }
 0x1cc   :  { %1535 = vmatpush1.bf16.msra.mxu0 %v5213_v46 }
 0x1d2   :  { %5022 = vmatmul.mubr.msk.bf16.gmra.mrb[84].mxu1 %vm714_vm4, %v6160_v8 }
 0x1d3   :  { %5025 = vmatprep.mubr.msk.bf16.mxu1 %vm5866_vm0, %v5865_v0 }
 0x1da   :  { %5026 = vmatmul.mubr.msk.bf16.gmra.mrb[88].mxu1 %vm714_vm4, %v6167_v19 }
 0x1db   :  { %5029 = vmatprep.mubr.msk.bf16.mxu1 %vm5866_vm0, %v5865_v0 }
 0x1e2   :  { %5030 = vmatmul.mubr.msk.bf16.gmra.mrb[92].mxu1 %vm714_vm4, %v6174_v31  ;;  %v5216_v31 = vld [vmem:[#allocation2 + $0x60] ss:$24 sps:$4 sm:$0xff]  }
 0x1e3   :  { %5033 = vmatprep.mubr.msk.bf16.mxu1 %vm5866_vm0, %v5865_v0 }
 0x1ea   :  { %5034 = vmatmul.mubr.msk.bf16.gmra.mrb[96].mxu1 %vm714_vm4, %v6181_v43  ;;  %v5218_v43 = vld [vmem:[#allocation2 + $0x64] ss:$24 sps:$4 sm:$0xff]  }
 0x1eb   :  { %5037 = vmatprep.mubr.msk.bf16.mxu1 %vm5866_vm0, %v5865_v0  ;;  %1536 = vmatprep.subr.bf16.mxu0 %v5218_v43 }
 0x1ec   :  { %1537 = vmatpush1.bf16.msra.mxu0 %v5216_v31 }
 0x1ed   :  { %1538 = vmatprep.subr.bf16.mxu0 %v5221_v48 }
 0x1f0   :  { %1539 = vmatpush1.bf16.msra.mxu0 %v5219_v47 }
 0x1f1   :  { %1540 = vmatprep.subr.bf16.mxu0 %v5224_v60  ;;  %v5236_v60 = vld [vmem:[#allocation2 + $0xc] ss:$24 sps:$4 sm:$0xff]  }
 0x1f2   :  { %5038 = vmatmul.mubr.msk.bf16.gmra.mrb[100].mxu1 %vm714_vm4, %v6188_v55 }
 0x1f3   :  { %5041 = vmatprep.mubr.msk.bf16.mxu1 %vm5866_vm0, %v5865_v0 }
 0x1f4   :  { %1541 = vmatpush1.bf16.msra.mxu0 %v5222_v62 }
 0x1f5   :  { %1542 = vmatprep.subr.bf16.mxu0 %v5227_v1 }
 0x1f8   :  { %1543 = vmatpush1.bf16.msra.mxu0 %v5225_v2 }
 0x1f9   :  { %1544 = vmatprep.subr.bf16.mxu0 %v5230_v9 }
 0x1fa   :  { %5042 = vmatmul.mubr.msk.bf16.gmra.mrb[104].mxu1 %vm714_vm4, %v6195_v4 }
 0x1fb   :  { %5045 = vmatprep.mubr.msk.bf16.mxu1 %vm5866_vm0, %v5865_v0 }
 0x1fc   :  { %1545 = vmatpush1.bf16.msra.mxu0 %v5228_v11 }
 0x1fd   :  { %v806_v8 = vpop.f32.mrb[0].mxu1 }
 0x1fe   :  { %v808_v19 = vpop.f32.mrb[1].mxu1 }
 0x1ff   :  { %v809_v33 = vpop.f32.mrb[2].mxu1 }
 0x200   :  { %v811_v36 = vpop.f32.mrb[3].mxu1 }
 0x202   :  { %5046 = vmatmul.mubr.msk.bf16.gmra.mrb[108].mxu1 %vm714_vm4, %v6202_v16 }
 0x203   :  { %5049 = vmatprep.mubr.msk.bf16.mxu1 %vm5866_vm0, %v5865_v0 }
 0x205   :  { %v814_v55 = vpop.f32.mrb[4].mxu1 }
 0x206   :  { %v815_v37 = vpop.f32.mrb[5].mxu1 }
 0x207   :  { %v6314_v4 = vadd.f32 %v815_v37, %v806_v8  ;;  %v817_v38 = vpop.f32.mrb[6].mxu1 }
 0x208   :  { %v818_v39 = vpop.f32.mrb[7].mxu1 }
 0x209   :  { %v6316_v40 = vadd.f32 %v818_v39, %v809_v33 }
 0x20a   :  { %5050 = vmatmul.mubr.msk.bf16.gmra.mrb[112].mxu1 %vm714_vm4, %v6209_v29 }
 0x20b   :  { %5053 = vmatprep.mubr.msk.bf16.mxu1 %vm5866_vm0, %v5865_v0 }
 0x20d   :  { %v822_v41 = vpop.f32.mrb[8].mxu1 }
 0x20e   :  { %v824_v44 = vpop.f32.mrb[9].mxu1 }
 0x20f   :  { %v825_v16 = vpop.f32.mrb[10].mxu1 }
 0x210   :  { %v827_v45 = vpop.f32.mrb[11].mxu1 }
 0x212   :  { %5054 = vmatmul.mubr.msk.bf16.gmra.mrb[116].mxu1 %vm714_vm4, %v6216_v42 }
 0x213   :  { %5057 = vmatprep.mubr.msk.bf16.mxu1 %vm5866_vm0, %v5865_v0 }
 0x215   :  { %v830_v50 = vpop.f32.mrb[12].mxu1 }
 0x216   :  { %v831_v51 = vpop.f32.mrb[13].mxu1 }
 0x217   :  { %v6326_v29 = vadd.f32 %v831_v51, %v822_v41  ;;  %v833_v52 = vpop.f32.mrb[14].mxu1 }
 0x218   :  { %v834_v53 = vpop.f32.mrb[15].mxu1 }
 0x219   :  { %v6328_v54 = vadd.f32 %v834_v53, %v825_v16 }
 0x21a   :  { %5058 = vmatmul.mubr.msk.bf16.gmra.mrb[120].mxu1 %vm714_vm4, %v6223_v56 }
 0x21b   :  { %5061 = vmatprep.mubr.msk.bf16.mxu1 %vm5866_vm0, %v5865_v0 }
 0x21d   :  { %v838_v42 = vpop.f32.mrb[16].mxu1 }
 0x21e   :  { %v840_v57 = vpop.f32.mrb[17].mxu1 }
 0x21f   :  { %v841_v58 = vpop.f32.mrb[18].mxu1 }
 0x220   :  { %v843_v61 = vpop.f32.mrb[19].mxu1 }
 0x222   :  { %5062 = vmatmul.mubr.msk.bf16.gmra.mrb[124].mxu1 %vm714_vm4, %v6230_v6  ;;  %v5233_v6 = vld [vmem:[#allocation2 + $0x154] ss:$24 sps:$4 sm:$0xff]  }
 0x223   :  { %5065 = vmatprep.mubr.msk.bf16.mxu1 %vm5866_vm0, %v5865_v0  ;;  %1546 = vmatprep.subr.bf16.mxu0 %v5233_v6 }
 0x224   :  { %1547 = vmatpush1.bf16.msra.mxu0 %v5231_v13 }
 0x225   :  { %v846_v56 = vpop.f32.mrb[20].mxu1  ;;  %1635 = vmatprep.subr.bf16.mxu0 %v5236_v60 }
 0x226   :  { %v847_v3 = vpop.f32.mrb[21].mxu1 }
 0x227   :  { %v6338_v5 = vadd.f32 %v847_v3, %v838_v42  ;;  %v849_v7 = vpop.f32.mrb[22].mxu1 }
 0x228   :  { %v850_v10 = vpop.f32.mrb[23].mxu1 }
 0x229   :  { %v6340_v12 = vadd.f32 %v850_v10, %v841_v58 }
 0x22a   :  { %5066 = vmatmul.mubr.msk.bf16.gmra.mrb[128].mxu1 %vm714_vm4, %v6237_v20 }
 0x22b   :  { %5069 = vmatprep.mubr.msk.bf16.mxu1 %vm5866_vm0, %v5865_v0 }
 0x22d   :  { %v854_v15 = vpop.f32.mrb[24].mxu1 }
 0x22e   :  { %v856_v17 = vpop.f32.mrb[25].mxu1 }
 0x22f   :  { %v857_v18 = vpop.f32.mrb[26].mxu1 }
 0x230   :  { %v859_v21 = vpop.f32.mrb[27].mxu1 }
 0x232   :  { %5070 = vmatmul.mubr.msk.bf16.gmra.mrb[132].mxu1 %vm714_vm4, %v6244_v35 }
 0x233   :  { %5073 = vmatprep.mubr.msk.bf16.mxu1 %vm5866_vm0, %v5865_v0 }
 0x235   :  { %v862_v22 = vpop.f32.mrb[28].mxu1 }
 0x236   :  { %v863_v20 = vpop.f32.mrb[29].mxu1 }
 0x237   :  { %v6350_v23 = vadd.f32 %v863_v20, %v854_v15  ;;  %v865_v24 = vpop.f32.mrb[30].mxu1 }
 0x238   :  { %v866_v25 = vpop.f32.mrb[31].mxu1 }
 0x239   :  { %v6352_v26 = vadd.f32 %v866_v25, %v857_v18 }
 0x23a   :  { %5074 = vmatmul.mubr.msk.bf16.gmra.mrb[136].mxu1 %vm714_vm4, %v6251_v49 }
 0x23b   :  { %5077 = vmatprep.mubr.msk.bf16.mxu1 %vm5866_vm0, %v5865_v0 }
 0x23d   :  { %v870_v28 = vpop.f32.mrb[32].mxu1 }
 0x23e   :  { %v872_v34 = vpop.f32.mrb[33].mxu1 }
 0x23f   :  { %v873_v35 = vpop.f32.mrb[34].mxu1 }
 0x240   :  { %v875_v32 = vpop.f32.mrb[35].mxu1 }
 0x242   :  { %5078 = vmatmul.mubr.msk.bf16.gmra.mrb[140].mxu1 %vm714_vm4, %v6258_v63 }
 0x243   :  { %5081 = vmatprep.mubr.msk.bf16.mxu1 %vm5866_vm0, %v5865_v0 }
 0x245   :  { %v878_v46 = vpop.f32.mrb[36].mxu1 }
 0x246   :  { %v879_v59 = vpop.f32.mrb[37].mxu1 }
 0x247   :  { %v6362_v8 = vadd.f32 %v879_v59, %v870_v28  ;;  %v881_v19 = vpop.f32.mrb[38].mxu1 }
 0x248   :  { %v882_v31 = vpop.f32.mrb[39].mxu1 }
 0x249   :  { %v6364_v49 = vadd.f32 %v882_v31, %v873_v35 }
 0x24a   :  { %5082 = vmatmul.mubr.msk.bf16.gmra.mrb[144].mxu1 %vm714_vm4, %v6265_v14 }
 0x24b   :  { %5085 = vmatprep.mubr.msk.bf16.mxu1 %vm5866_vm0, %v5865_v0 }
 0x24d   :  { %v886_v43 = vpop.f32.mrb[40].mxu1 }
 0x24e   :  { %v888_v33 = vpop.f32.mrb[41].mxu1 }
 0x24f   :  { %v889_v63 = vpop.f32.mrb[42].mxu1  ;;  %v6391_v33 = vld [vmem:[%s6609_s4] ss:$0 sm:$0xff] }
 0x250   :  { %v891_v36 = vpop.f32.mrb[43].mxu1 }
 0x252   :  { %5086 = vmatmul.mubr.msk.bf16.gmra.mrb[148].mxu1 %vm714_vm4, %v6272_v30 }
 0x255   :  { %v894_v55 = vpop.f32.mrb[44].mxu1 }
 0x256   :  { %v895_v37 = vpop.f32.mrb[45].mxu1 }
 0x257   :  { %v6372_v38 = vadd.f32 %v895_v37, %v886_v43  ;;  %v897_v39 = vpop.f32.mrb[46].mxu1 }
 0x258   :  { %v898_v41 = vpop.f32.mrb[47].mxu1 }
 0x259   :  { %v6374_v44 = vadd.f32 %v898_v41, %v889_v63 }
 0x25d   :  { %v902_v16 = vpop.f32.mrb[48].mxu1 }
 0x25e   :  { %v904_v14 = vpop.f32.mrb[49].mxu1 }
 0x25f   :  { %v905_v45 = vpop.f32.mrb[50].mxu1 }
 0x260   :  { %v907_v47 = vpop.f32.mrb[51].mxu1 }
 0x265   :  { %v910_v0 = vpop.f32.mrb[52].mxu1 }
 0x266   :  { %v911_v48 = vpop.f32.mrb[53].mxu1 }
 0x267   :  { %v6376_v50 = vadd.f32 %v911_v48, %v902_v16  ;;  %v913_v51 = vpop.f32.mrb[54].mxu1 }
 0x268   :  { %v914_v52 = vpop.f32.mrb[55].mxu1 }
 0x269   :  { %v6378_v53 = vadd.f32 %v914_v52, %v905_v45  ;;  %v5234_v52 = vld [vmem:[#allocation2 + $0x8] ss:$24 sps:$4 sm:$0xff]  }
 0x26d   :  { %v918_v30 = vpop.f32.mrb[56].mxu1 }
 0x26e   :  { %v920_v42 = vpop.f32.mrb[57].mxu1 }
 0x26f   :  { %v921_v57 = vpop.f32.mrb[58].mxu1  ;;  %v5239_v42 = vld [vmem:[#allocation2 + $0x3c] ss:$24 sps:$4 sm:$0xff]  }
 0x270   :  { %v923_v58 = vpop.f32.mrb[59].mxu1 }
 0x271   :  { %v5242_v58 = vld [vmem:[#allocation2 + $0x6c] ss:$24 sps:$4 sm:$0xff]  }
 0x275   :  { %v926_v61 = vpop.f32.mrb[60].mxu1 }
 0x276   :  { %v927_v62 = vpop.f32.mrb[61].mxu1 }
 0x277   :  { %v6380_v1 = vadd.f32 %v927_v62, %v918_v30  ;;  %v929_v2 = vpop.f32.mrb[62].mxu1 }
 0x278   :  { %v930_v56 = vpop.f32.mrb[63].mxu1  ;;  %v5240_v2 = vld [vmem:[#allocation2 + $0x68] ss:$24 sps:$4 sm:$0xff]  }
 0x279   :  { %v6382_v3 = vadd.f32 %v930_v56, %v921_v57 }
 0x27d   :  { %v934_v7 = vpop.f32.mrb[64].mxu1 }
 0x27e   :  { %v936_v9 = vpop.f32.mrb[65].mxu1 }
 0x27f   :  { %v937_v10 = vpop.f32.mrb[66].mxu1 }
 0x280   :  { %v939_v11 = vpop.f32.mrb[67].mxu1 }
 0x285   :  { %v942_v6 = vpop.f32.mrb[68].mxu1 }
 0x286   :  { %v943_v13 = vpop.f32.mrb[69].mxu1 }
 0x287   :  { %v6384_v15 = vadd.f32 %v943_v13, %v934_v7  ;;  %v945_v17 = vpop.f32.mrb[70].mxu1  ;;  %v5245_v7 = vld [vmem:[#allocation2 + $0x9c] ss:$24 sps:$4 sm:$0xff]  }
 0x288   :  { %v946_v18 = vpop.f32.mrb[71].mxu1  ;;  %v5243_v17 = vld [vmem:[#allocation2 + $0x98] ss:$24 sps:$4 sm:$0xff]  }
 0x289   :  { %v6386_v21 = vadd.f32 %v946_v18, %v937_v10  ;;  %v5248_v18 = vld [vmem:[#allocation2 + $0xcc] ss:$24 sps:$4 sm:$0xff]  }
 0x28d   :  { %v950_v22 = vpop.f32.mrb[72].mxu1 }
 0x28e   :  { %v951_v20 = vpop.f32.mrb[73].mxu1 }
 0x28f   :  { %v952_v24 = vpop.f32.mrb[74].mxu1 }
 0x290   :  { %v953_v25 = vpop.f32.mrb[75].mxu1 }
 0x295   :  { %v989_v28 = vpop.f32.mrb[76].mxu1 }
 0x296   :  { %v5015_v34 = vpop.f32.mrb[77].mxu1  ;;  %v5246_v28 = vld [vmem:[#allocation2 + $0xc8] ss:$24 sps:$4 sm:$0xff]  }
 0x297   :  { %v991_v35 = vpop.f32.mrb[78].mxu1 }
 0x298   :  { %v5016_v32 = vpop.f32.mrb[79].mxu1 }
 0x29d   :  { %v995_v46 = vpop.f32.mrb[80].mxu1 }
 0x29e   :  { %v5019_v59 = vpop.f32.mrb[81].mxu1  ;;  %v5249_v46 = vld [vmem:[#allocation2 + $0xf8] ss:$24 sps:$4 sm:$0xff]  }
 0x29f   :  { %v997_v19 = vpop.f32.mrb[82].mxu1  ;;  %v5254_v59 = vld [vmem:[#allocation2 + $0x12c] ss:$24 sps:$4 sm:$0xff]  }
 0x2a0   :  { %v5020_v31 = vpop.f32.mrb[83].mxu1 }
 0x2a5   :  { %v1001_v43 = vpop.f32.mrb[84].mxu1 }
 0x2a6   :  { %v1122_v63 = vadd.f32 %v6314_v4, %v1001_v43  ;;  %v5023_v36 = vpop.f32.mrb[85].mxu1 }
 0x2a7   :  { %v1004_v55 = vpop.f32.mrb[86].mxu1 }
 0x2a8   :  { %v1163_v37 = vadd.f32 %v6391_v33, %v1122_v63  ;;  %v1123_v39 = vadd.f32 %v6316_v40, %v1004_v55  ;;  %v5024_v41 = vpop.f32.mrb[87].mxu1  ;;  %v5237_v40 = vld [vmem:[#allocation2 + $0x38] ss:$24 sps:$4 sm:$0xff]   ;;  %v5252_v63 = vld [vmem:[#allocation2 + $0x128] ss:$24 sps:$4 sm:$0xff]  }
 0x2a9   :  { %v5257_v55 = vld [vmem:[#allocation2 + $0x15c] ss:$24 sps:$4 sm:$0xff]  }
 0x2aa   :  { %v1199_v16 = vmul.f32 0.1, %v1163_v37  ;;  %v1164_v14 = vadd.f32 %v6391_v33, %v1123_v39  ;;  %vm1181_vm0 = vcmp.ge.f32.partialorder %v1163_v37, 0.0 }
 0x2ac   :  { %vm1182_vm4 = vcmp.ge.f32.partialorder %v1164_v14, 0.0  ;;  %v1200_v45 = vmul.f32 0.1, %v1164_v14  ;;  %v1217_v0 = vsel %vm1181_vm0, %v1163_v37, %v1199_v16 }
 0x2ad   :  { %v1009_v47 = vpop.f32.mrb[88].mxu1 }
 0x2ae   :  { %v1218_v48 = vsel %vm1182_vm4, %v1164_v14, %v1200_v45  ;;  %v5027_v51 = vpop.f32.mrb[89].mxu1  ;;  %v5255_v45 = vld [vmem:[#allocation2 + $0x158] ss:$24 sps:$4 sm:$0xff]   ;;  %v5260_v47 = vld [vmem:[#allocation2 + $0x14] ss:$24 sps:$4 sm:$0xff]  }
 0x2af   :  { %v6397_v30 = vpack.c.bf16 %v1218_v48, %v1217_v0  ;;  %v1011_v4 = vpop.f32.mrb[90].mxu1 }
 0x2b0   :  { %v5028_v57 = vpop.f32.mrb[91].mxu1 }
 0x2b1   :  { %1565 = vmatmul.mubr.bf16.vlgmr.msra.gmra.mrb[76].mxu0 %v6397_v30 }
 0x2b2   :  { %1574 = vmatprep.mubr.bf16.mxu0 %v5867_v27  ;;  %1636 = vmatpush1.bf16.msra.mxu0 %v5234_v52 }
 0x2b3   :  { %1637 = vmatprep.subr.bf16.mxu0 %v5239_v42 }
 0x2b5   :  { %v1015_v60 = vpop.f32.mrb[92].mxu1 }
 0x2b6   :  { %v1126_v61 = vadd.f32 %v6326_v29, %v1015_v60  ;;  %v5031_v62 = vpop.f32.mrb[93].mxu1  ;;  %1638 = vmatpush1.bf16.msra.mxu0 %v5237_v40 }
 0x2b7   :  { %v1018_v56 = vpop.f32.mrb[94].mxu1  ;;  %1639 = vmatprep.subr.bf16.mxu0 %v5242_v58 }
 0x2b8   :  { %v1165_v9 = vadd.f32 %v6391_v33, %v1126_v61  ;;  %v1127_v10 = vadd.f32 %v6328_v54, %v1018_v56  ;;  %v5032_v11 = vpop.f32.mrb[95].mxu1  ;;  %v5251_v54 = vld [vmem:[#allocation2 + $0xfc] ss:$24 sps:$4 sm:$0xff]  }
 0x2ba   :  { %v1201_v6 = vmul.f32 0.1, %v1165_v9  ;;  %v1166_v13 = vadd.f32 %v6391_v33, %v1127_v10  ;;  %1640 = vmatpush1.bf16.msra.mxu0 %v5240_v2  ;;  %vm1183_vm13 = vcmp.ge.f32.partialorder %v1165_v9, 0.0 }
 0x2bb   :  { %1641 = vmatprep.subr.bf16.mxu0 %v5245_v7 }
 0x2bc   :  { %vm1184_vm14 = vcmp.ge.f32.partialorder %v1166_v13, 0.0  ;;  %v1202_v29 = vmul.f32 0.1, %v1166_v13  ;;  %v1219_v24 = vsel %vm1183_vm13, %v1165_v9, %v1201_v6 }
 0x2bd   :  { %v1023_v22 = vpop.f32.mrb[96].mxu1 }
 0x2be   :  { %v5035_v20 = vpop.f32.mrb[97].mxu1  ;;  %v1220_v25 = vsel %vm1184_vm14, %v1166_v13, %v1202_v29  ;;  %1642 = vmatpush1.bf16.msra.mxu0 %v5243_v17 }
 0x2bf   :  { %v1025_v34 = vpop.f32.mrb[98].mxu1  ;;  %v6405_v35 = vpack.c.bf16 %v1220_v25, %v1219_v24  ;;  %1643 = vmatprep.subr.bf16.mxu0 %v5248_v18 }
 0x2c0   :  { %v5036_v32 = vpop.f32.mrb[99].mxu1 }
 0x2c1   :  { %1575 = vmatmul.mubr.bf16.gmra.mrb[80].mxu0 %v6405_v35 }
 0x2c2   :  { %1580 = vmatprep.mubr.bf16.mxu0 %v5867_v27  ;;  %1644 = vmatpush1.bf16.msra.mxu0 %v5246_v28 }
 0x2c3   :  { %1645 = vmatprep.subr.bf16.mxu0 %v5251_v54 }
 0x2c5   :  { %v1029_v19 = vpop.f32.mrb[100].mxu1 }
 0x2c6   :  { %v1130_v31 = vadd.f32 %v6338_v5, %v1029_v19  ;;  %v5039_v43 = vpop.f32.mrb[101].mxu1  ;;  %1646 = vmatpush1.bf16.msra.mxu0 %v5249_v46 }
 0x2c7   :  { %v1032_v36 = vpop.f32.mrb[102].mxu1  ;;  %1647 = vmatprep.subr.bf16.mxu0 %v5254_v59 }
 0x2c8   :  { %v1167_v37 = vadd.f32 %v6391_v33, %v1130_v31  ;;  %v1131_v39 = vadd.f32 %v6340_v12, %v1032_v36  ;;  %v5040_v41 = vpop.f32.mrb[103].mxu1 }
 0x2ca   :  { %v1203_v16 = vmul.f32 0.1, %v1167_v37  ;;  %v1168_v14 = vadd.f32 %v6391_v33, %v1131_v39  ;;  %1648 = vmatpush1.bf16.msra.mxu0 %v5252_v63  ;;  %vm1185_vm15 = vcmp.ge.f32.partialorder %v1167_v37, 0.0 }
 0x2cb   :  { %1649 = vmatprep.subr.bf16.mxu0 %v5257_v55 }
 0x2cc   :  { %vm1186_vm1 = vcmp.ge.f32.partialorder %v1168_v14, 0.0  ;;  %v1204_v5 = vmul.f32 0.1, %v1168_v14  ;;  %v1221_v51 = vsel %vm1185_vm15, %v1167_v37, %v1203_v16 }
 0x2cd   :  { %v1037_v0 = vpop.f32.mrb[104].mxu1 }
 0x2ce   :  { %v5043_v48 = vpop.f32.mrb[105].mxu1  ;;  %v1222_v52 = vsel %vm1186_vm1, %v1168_v14, %v1204_v5  ;;  %1650 = vmatpush1.bf16.msra.mxu0 %v5255_v45 }
 0x2cf   :  { %v1039_v4 = vpop.f32.mrb[106].mxu1  ;;  %v6413_v42 = vpack.c.bf16 %v1222_v52, %v1221_v51  ;;  %1738 = vmatprep.subr.bf16.mxu0 %v5260_v47 }
 0x2d0   :  { %v5044_v12 = vpop.f32.mrb[107].mxu1 }
 0x2d1   :  { %1581 = vmatmul.mubr.bf16.gmra.mrb[84].mxu0 %v6413_v42 }
 0x2d2   :  { %1590 = vmatprep.mubr.bf16.mxu0 %v5867_v27 }
 0x2d5   :  { %v1043_v57 = vpop.f32.mrb[108].mxu1 }
 0x2d6   :  { %v1134_v40 = vadd.f32 %v6350_v23, %v1043_v57  ;;  %v5047_v58 = vpop.f32.mrb[109].mxu1 }
 0x2d7   :  { %v1046_v60 = vpop.f32.mrb[110].mxu1 }
 0x2d8   :  { %v1169_v61 = vadd.f32 %v6391_v33, %v1134_v40  ;;  %v1135_v62 = vadd.f32 %v6352_v26, %v1046_v60  ;;  %v5048_v2 = vpop.f32.mrb[111].mxu1 }
 0x2da   :  { %v1205_v56 = vmul.f32 0.1, %v1169_v61  ;;  %v1170_v7 = vadd.f32 %v6391_v33, %v1135_v62  ;;  %vm1187_vm2 = vcmp.ge.f32.partialorder %v1169_v61, 0.0 }
 0x2dc   :  { %vm1188_vm3 = vcmp.ge.f32.partialorder %v1170_v7, 0.0  ;;  %v1206_v9 = vmul.f32 0.1, %v1170_v7  ;;  %v1223_v6 = vsel %vm1187_vm2, %v1169_v61, %v1205_v56 }
 0x2dd   :  { %v1051_v10 = vpop.f32.mrb[112].mxu1 }
 0x2de   :  { %v5051_v11 = vpop.f32.mrb[113].mxu1  ;;  %v1224_v13 = vsel %vm1188_vm3, %v1170_v7, %v1206_v9 }
 0x2df   :  { %v1053_v17 = vpop.f32.mrb[114].mxu1  ;;  %v6421_v18 = vpack.c.bf16 %v1224_v13, %v1223_v6 }
 0x2e0   :  { %v5052_v23 = vpop.f32.mrb[115].mxu1 }
 0x2e1   :  { %1591 = vmatmul.mubr.bf16.gmra.mrb[88].mxu0 %v6421_v18 }
 0x2e2   :  { %1596 = vmatprep.mubr.bf16.mxu0 %v5867_v27 }
 0x2e5   :  { %v1057_v26 = vpop.f32.mrb[116].mxu1 }
 0x2e6   :  { %v1138_v29 = vadd.f32 %v6362_v8, %v1057_v26  ;;  %v5055_v22 = vpop.f32.mrb[117].mxu1 }
 0x2e7   :  { %v1060_v20 = vpop.f32.mrb[118].mxu1 }
 0x2e8   :  { %v1171_v24 = vadd.f32 %v6391_v33, %v1138_v29  ;;  %v1139_v25 = vadd.f32 %v6364_v49, %v1060_v20  ;;  %v5056_v28 = vpop.f32.mrb[119].mxu1 }
 0x2ea   :  { %v1207_v34 = vmul.f32 0.1, %v1171_v24  ;;  %v1172_v54 = vadd.f32 %v6391_v33, %v1139_v25  ;;  %vm1189_vm5 = vcmp.ge.f32.partialorder %v1171_v24, 0.0 }
 0x2ec   :  { %vm1190_vm6 = vcmp.ge.f32.partialorder %v1172_v54, 0.0  ;;  %v1208_v32 = vmul.f32 0.1, %v1172_v54  ;;  %v1225_v19 = vsel %vm1189_vm5, %v1171_v24, %v1207_v34 }
 0x2ed   :  { %v1065_v46 = vpop.f32.mrb[120].mxu1 }
 0x2ee   :  { %v5059_v59 = vpop.f32.mrb[121].mxu1  ;;  %v1226_v31 = vsel %vm1190_vm6, %v1172_v54, %v1208_v32 }
 0x2ef   :  { %v1067_v43 = vpop.f32.mrb[122].mxu1  ;;  %v6429_v63 = vpack.c.bf16 %v1226_v31, %v1225_v19 }
 0x2f0   :  { %v5060_v8 = vpop.f32.mrb[123].mxu1 }
 0x2f1   :  { %1597 = vmatmul.mubr.bf16.gmra.mrb[92].mxu0 %v6429_v63 }
 0x2f2   :  { %1606 = vmatprep.mubr.bf16.mxu0 %v5867_v27 }
 0x2f5   :  { %v1071_v49 = vpop.f32.mrb[124].mxu1 }
 0x2f6   :  { %v1142_v36 = vadd.f32 %v6372_v38, %v1071_v49  ;;  %v5063_v55 = vpop.f32.mrb[125].mxu1 }
 0x2f7   :  { %v1074_v37 = vpop.f32.mrb[126].mxu1 }
 0x2f8   :  { %v1173_v39 = vadd.f32 %v6391_v33, %v1142_v36  ;;  %v1143_v41 = vadd.f32 %v6374_v44, %v1074_v37  ;;  %v5064_v16 = vpop.f32.mrb[127].mxu1 }
 0x2fa   :  { %v1209_v14 = vmul.f32 0.1, %v1173_v39  ;;  %v1174_v45 = vadd.f32 %v6391_v33, %v1143_v41  ;;  %vm1191_vm7 = vcmp.ge.f32.partialorder %v1173_v39, 0.0 }
 0x2fc   :  { %vm1192_vm8 = vcmp.ge.f32.partialorder %v1174_v45, 0.0  ;;  %v1210_v47 = vmul.f32 0.1, %v1174_v45  ;;  %v1227_v48 = vsel %vm1191_vm7, %v1173_v39, %v1209_v14 }
 0x2fd   :  { %v1079_v5 = vpop.f32.mrb[128].mxu1 }
 0x2fe   :  { %v5067_v0 = vpop.f32.mrb[129].mxu1  ;;  %v1228_v51 = vsel %vm1192_vm8, %v1174_v45, %v1210_v47  ;;  %v5263_v47 = vld [vmem:[#allocation2 + $0x44] ss:$24 sps:$4 sm:$0xff]   ;;  %v5264_v5 = vld [vmem:[#allocation2 + $0x70] ss:$24 sps:$4 sm:$0xff]  }
 0x2ff   :  { %v1081_v52 = vpop.f32.mrb[130].mxu1  ;;  %v6437_v4 = vpack.c.bf16 %v1228_v51, %v1227_v48  ;;  %v5269_v0 = vld [vmem:[#allocation2 + $0xa4] ss:$24 sps:$4 sm:$0xff]   ;;  %v5267_v48 = vld [vmem:[#allocation2 + $0xa0] ss:$24 sps:$4 sm:$0xff]  }
 0x300   :  { %v5068_v38 = vpop.f32.mrb[131].mxu1  ;;  %v5272_v51 = vld [vmem:[#allocation2 + $0xd4] ss:$24 sps:$4 sm:$0xff]   ;;  %v5270_v52 = vld [vmem:[#allocation2 + $0xd0] ss:$24 sps:$4 sm:$0xff]  }
 0x301   :  { %1607 = vmatmul.mubr.bf16.gmra.mrb[96].mxu0 %v6437_v4  ;;  %v5275_v38 = vld [vmem:[#allocation2 + $0x104] ss:$24 sps:$4 sm:$0xff]  }
 0x302   :  { %1612 = vmatprep.mubr.bf16.mxu0 %v5867_v27 }
 0x305   :  { %v1085_v44 = vpop.f32.mrb[132].mxu1 }
 0x306   :  { %v1146_v12 = vadd.f32 %v6376_v50, %v1085_v44  ;;  %v5071_v57 = vpop.f32.mrb[133].mxu1  ;;  %v5273_v44 = vld [vmem:[#allocation2 + $0x100] ss:$24 sps:$4 sm:$0xff]  }
 0x307   :  { %v1088_v40 = vpop.f32.mrb[134].mxu1  ;;  %v5276_v57 = vld [vmem:[#allocation2 + $0x130] ss:$24 sps:$4 sm:$0xff]  }
 0x308   :  { %v1175_v58 = vadd.f32 %v6391_v33, %v1146_v12  ;;  %v1147_v60 = vadd.f32 %v6378_v53, %v1088_v40  ;;  %v5072_v61 = vpop.f32.mrb[135].mxu1  ;;  %v5278_v12 = vld [vmem:[#allocation2 + $0x134] ss:$24 sps:$4 sm:$0xff]   ;;  %v5281_v40 = vld [vmem:[#allocation2 + $0x164] ss:$24 sps:$4 sm:$0xff]  }
 0x309   :  { %v5284_v61 = vld [vmem:[#allocation5 + $0x4] ss:$16 sps:$4 sm:$0xff]  }
 0x30a   :  { %v1211_v62 = vmul.f32 0.1, %v1175_v58  ;;  %v1176_v2 = vadd.f32 %v6391_v33, %v1147_v60  ;;  %vm1193_vm9 = vcmp.ge.f32.partialorder %v1175_v58, 0.0  ;;  %v5282_v60 = vld [vmem:[#allocation5] ss:$16 sps:$4 sm:$0xff]   ;;  %3545 = vmatprep.subr.bf16.mxu1 %v5284_v61 }
 0x30b   :  { %3546 = vmatpush1.bf16.msra.mxu1 %v5282_v60  ;;  %v5360_v60 = vld [vmem:[#allocation5 + $0x1c0] ss:$16 sps:$4 sm:$0xff]   ;;  %v5362_v61 = vld [vmem:[#allocation5 + $0x1c4] ss:$16 sps:$4 sm:$0xff]  }
 0x30c   :  { %vm1194_vm10 = vcmp.ge.f32.partialorder %v1176_v2, 0.0  ;;  %v1212_v56 = vmul.f32 0.1, %v1176_v2  ;;  %v1229_v10 = vsel %vm1193_vm9, %v1175_v58, %v1211_v62  ;;  %v5279_v58 = vld [vmem:[#allocation2 + $0x160] ss:$24 sps:$4 sm:$0xff]  }
 0x30d   :  { %v1093_v7 = vpop.f32.mrb[136].mxu1  ;;  %v5287_v62 = vld [vmem:[#allocation5 + $0x24] ss:$16 sps:$4 sm:$0xff]  }
 0x30e   :  { %v5075_v9 = vpop.f32.mrb[137].mxu1  ;;  %v1230_v11 = vsel %vm1194_vm10, %v1176_v2, %v1212_v56  ;;  %v5285_v2 = vld [vmem:[#allocation5 + $0x20] ss:$16 sps:$4 sm:$0xff]   ;;  %3547 = vmatprep.subr.bf16.mxu1 %v5287_v62  ;;  %v5290_v56 = vld [vmem:[#allocation5 + $0x44] ss:$16 sps:$4 sm:$0xff]  }
 0x30f   :  { %v1095_v6 = vpop.f32.mrb[138].mxu1  ;;  %v6445_v13 = vpack.c.bf16 %v1230_v11, %v1229_v10  ;;  %3548 = vmatpush1.bf16.msra.mxu1 %v5285_v2  ;;  %v5288_v7 = vld [vmem:[#allocation5 + $0x40] ss:$16 sps:$4 sm:$0xff]   ;;  %v5293_v10 = vld [vmem:[#allocation5 + $0x64] ss:$16 sps:$4 sm:$0xff]  }
 0x310   :  { %v5076_v50 = vpop.f32.mrb[139].mxu1  ;;  %3549 = vmatprep.subr.bf16.mxu1 %v5290_v56  ;;  %v5291_v9 = vld [vmem:[#allocation5 + $0x60] ss:$16 sps:$4 sm:$0xff]   ;;  %v5296_v6 = vld [vmem:[#allocation5 + $0x84] ss:$16 sps:$4 sm:$0xff]  }
 0x311   :  { %1613 = vmatmul.mubr.bf16.gmra.mrb[100].mxu0 %v6445_v13  ;;  %v5294_v11 = vld [vmem:[#allocation5 + $0x80] ss:$16 sps:$4 sm:$0xff]   ;;  %v5365_v62 = vld [vmem:[#allocation5 + $0x18c] ss:$16 sps:$4 sm:$0xff]   ;;  %v5363_v2 = vld [vmem:[#allocation5 + $0x188] ss:$16 sps:$4 sm:$0xff]  }
 0x312   :  { %1622 = vmatprep.mubr.bf16.mxu0 %v5867_v27  ;;  %v5297_v50 = vld [vmem:[#allocation5 + $0xa0] ss:$16 sps:$4 sm:$0xff]   ;;  %v5368_v56 = vld [vmem:[#allocation5 + $0x1ac] ss:$16 sps:$4 sm:$0xff]  }
 0x313   :  { %3550 = vmatpush1.bf16.msra.mxu1 %v5288_v7  ;;  %v5366_v7 = vld [vmem:[#allocation5 + $0x1a8] ss:$16 sps:$4 sm:$0xff]  }
 0x314   :  { %3551 = vmatprep.subr.bf16.mxu1 %v5293_v10  ;;  %v5372_v10 = vld [vmem:[#allocation5 + $0x1c8] ss:$16 sps:$4 sm:$0xff]  }
 0x315   :  { %v1099_v53 = vpop.f32.mrb[140].mxu1 }
 0x316   :  { %v1150_v17 = vadd.f32 %v6380_v1, %v1099_v53  ;;  %v5079_v23 = vpop.f32.mrb[141].mxu1  ;;  %v5299_v53 = vld [vmem:[#allocation5 + $0xa4] ss:$16 sps:$4 sm:$0xff]  }
 0x317   :  { %v1102_v26 = vpop.f32.mrb[142].mxu1  ;;  %3552 = vmatpush1.bf16.msra.mxu1 %v5291_v9  ;;  %v5302_v23 = vld [vmem:[#allocation5 + $0xc4] ss:$16 sps:$4 sm:$0xff]   ;;  %v5374_v9 = vld [vmem:[#allocation5 + $0x1cc] ss:$16 sps:$4 sm:$0xff]  }
 0x318   :  { %v1177_v29 = vadd.f32 %v6391_v33, %v1150_v17  ;;  %v1151_v22 = vadd.f32 %v6382_v3, %v1102_v26  ;;  %v5080_v20 = vpop.f32.mrb[143].mxu1  ;;  %3553 = vmatprep.subr.bf16.mxu1 %v5296_v6  ;;  %v5300_v17 = vld [vmem:[#allocation5 + $0xc0] ss:$16 sps:$4 sm:$0xff]   ;;  %v5305_v26 = vld [vmem:[#allocation5 + $0xe4] ss:$16 sps:$4 sm:$0xff]  }
 0x319   :  { %v5377_v6 = vld [vmem:[#allocation5 + $0x1ec] ss:$16 sps:$4 sm:$0xff]  }
 0x31a   :  { %v1213_v24 = vmul.f32 0.1, %v1177_v29  ;;  %v1178_v25 = vadd.f32 %v6391_v33, %v1151_v22  ;;  %vm1195_vm11 = vcmp.ge.f32.partialorder %v1177_v29, 0.0 }
 0x31b   :  { %3554 = vmatpush1.bf16.msra.mxu1 %v5294_v11  ;;  %v5371_v11 = vld [vmem:[#allocation5 + $0x1e4] ss:$16 sps:$4 sm:$0xff]  }
 0x31c   :  { %vm1196_vm12 = vcmp.ge.f32.partialorder %v1178_v25, 0.0  ;;  %v1214_v28 = vmul.f32 0.1, %v1178_v25  ;;  %v1231_v32 = vsel %vm1195_vm11, %v1177_v29, %v1213_v24  ;;  %3555 = vmatprep.subr.bf16.mxu1 %v5299_v53  ;;  %v5306_v24 = vld [vmem:[#allocation5 + $0x100] ss:$16 sps:$4 sm:$0xff]  }
 0x31d   :  { %v1107_v34 = vpop.f32.mrb[144].mxu1  ;;  %v5375_v53 = vld [vmem:[#allocation5 + $0x1e8] ss:$16 sps:$4 sm:$0xff]  }
 0x31e   :  { %v5083_v54 = vpop.f32.mrb[145].mxu1  ;;  %v1232_v46 = vsel %vm1196_vm12, %v1178_v25, %v1214_v28  ;;  %v5308_v25 = vld [vmem:[#allocation5 + $0x104] ss:$16 sps:$4 sm:$0xff]   ;;  %v5314_v34 = vld [vmem:[#allocation5 + $0xc] ss:$16 sps:$4 sm:$0xff]  }
 0x31f   :  { %v1109_v59 = vpop.f32.mrb[146].mxu1  ;;  %v6453_v19 = vpack.c.bf16 %v1232_v46, %v1231_v32  ;;  %3556 = vmatpush1.bf16.msra.mxu1 %v5297_v50  ;;  %v5311_v28 = vld [vmem:[#allocation5 + $0x124] ss:$16 sps:$4 sm:$0xff]   ;;  %v5312_v54 = vld [vmem:[#allocation5 + $0x8] ss:$16 sps:$4 sm:$0xff]  }
 0x320   :  { %v5084_v1 = vpop.f32.mrb[147].mxu1  ;;  %3557 = vmatprep.subr.bf16.mxu1 %v5302_v23  ;;  %v5315_v32 = vld [vmem:[#allocation5 + $0x28] ss:$16 sps:$4 sm:$0xff]   ;;  %v5318_v46 = vld [vmem:[#allocation5 + $0x140] ss:$16 sps:$4 sm:$0xff]  }
 0x321   :  { %1623 = vmatmul.mubr.bf16.gmra.mrb[104].mxu0 %v6453_v19  ;;  %v5323_v59 = vld [vmem:[#allocation5 + $0x4c] ss:$16 sps:$4 sm:$0xff]   ;;  %v5321_v1 = vld [vmem:[#allocation5 + $0x48] ss:$16 sps:$4 sm:$0xff]   ;;  %v5369_v50 = vld [vmem:[#allocation5 + $0x1e0] ss:$16 sps:$4 sm:$0xff]  }
 0x322   :  { %1628 = vmatprep.mubr.bf16.mxu0 %v5867_v27  ;;  %v5383_v23 = vld [vmem:[#allocation5 + $0x20c] ss:$16 sps:$4 sm:$0xff]  }
 0x323   :  { %3558 = vmatpush1.bf16.msra.mxu1 %v5300_v17  ;;  %v5380_v17 = vld [vmem:[#allocation5 + $0x204] ss:$16 sps:$4 sm:$0xff]  }
 0x324   :  { %3559 = vmatprep.subr.bf16.mxu1 %v5305_v26 }
 0x325   :  { %v1113_v3 = vpop.f32.mrb[148].mxu1 }
 0x326   :  { %v1154_v31 = vadd.f32 %v6384_v15, %v1113_v3  ;;  %v5087_v43 = vpop.f32.mrb[149].mxu1  ;;  %v5258_v15 = vld [vmem:[#allocation2 + $0x10] ss:$24 sps:$4 sm:$0xff]  }
 0x327   :  { %v1116_v8 = vpop.f32.mrb[150].mxu1 }
 0x328   :  { %v1179_v49 = vadd.f32 %v6391_v33, %v1154_v31  ;;  %v1155_v36 = vadd.f32 %v6386_v21, %v1116_v8  ;;  %v5088_v55 = vpop.f32.mrb[151].mxu1  ;;  %v5261_v21 = vld [vmem:[#allocation2 + $0x40] ss:$24 sps:$4 sm:$0xff]   ;;  %v5326_v31 = vld [vmem:[#allocation5 + $0x6c] ss:$16 sps:$4 sm:$0xff]  }
 0x329   :  { %v5330_v55 = vld [vmem:[#allocation5 + $0x160] ss:$16 sps:$4 sm:$0xff]  }
 0x32a   :  { %v1215_v37 = vmul.f32 0.1, %v1179_v49  ;;  %v1180_v39 = vadd.f32 %v6391_v33, %v1155_v36  ;;  %vm1197_vm0 = vcmp.ge.f32.partialorder %v1179_v49, 0.0  ;;  %v5266_v33 = vld [vmem:[#allocation2 + $0x74] ss:$24 sps:$4 sm:$0xff]  }
 0x32b   :  { %v5327_v36 = vld [vmem:[#allocation5 + $0x88] ss:$16 sps:$4 sm:$0xff]  }
 0x32c   :  { %vm1198_vm4 = vcmp.ge.f32.partialorder %v1180_v39, 0.0  ;;  %v1216_v41 = vmul.f32 0.1, %v1180_v39  ;;  %v1233_v16 = vsel %vm1197_vm0, %v1179_v49, %v1215_v37  ;;  %v5324_v49 = vld [vmem:[#allocation5 + $0x68] ss:$16 sps:$4 sm:$0xff]  }
 0x32d   :  { %v5332_v37 = vld [vmem:[#allocation5 + $0x164] ss:$16 sps:$4 sm:$0xff]  }
 0x32e   :  { %v1234_v14 = vsel %vm1198_vm4, %v1180_v39, %v1216_v41  ;;  %v5333_v39 = vld [vmem:[#allocation5 + $0xa8] ss:$16 sps:$4 sm:$0xff]   ;;  %v5335_v41 = vld [vmem:[#allocation5 + $0xac] ss:$16 sps:$4 sm:$0xff]  }
 0x32f   :  { %v6461_v45 = vpack.c.bf16 %v1234_v14, %v1233_v16  ;;  %v5338_v16 = vld [vmem:[#allocation5 + $0xcc] ss:$16 sps:$4 sm:$0xff]   ;;  %v5341_v14 = vld [vmem:[#allocation5 + $0x184] ss:$16 sps:$4 sm:$0xff]  }
 0x331   :  { %1629 = vmatmul.mubr.bf16.gmra.mrb[108].mxu0 %v6461_v45 }
 0x332   :  { %1667 = vmatprep.mubr.bf16.mxu0 %v5867_v27 }
 0x339   :  { %1668 = vmatmul.mubr.bf16.vlgmr.msra.gmra.mrb[112].mxu0 %v6397_v30 }
 0x33a   :  { %1739 = vmatpush1.bf16.msra.mxu0 %v5258_v15  ;;  %1673 = vmatprep.mubr.bf16.mxu0 %v5867_v27  ;;  %v5344_v15 = vld [vmem:[#allocation5 + $0xec] ss:$16 sps:$4 sm:$0xff]  }
 0x33b   :  { %1740 = vmatprep.subr.bf16.mxu0 %v5263_v47  ;;  %v5342_v47 = vld [vmem:[#allocation5 + $0xe8] ss:$16 sps:$4 sm:$0xff]  }
 0x33e   :  { %1741 = vmatpush1.bf16.msra.mxu0 %v5261_v21  ;;  %v5347_v21 = vld [vmem:[#allocation5 + $0x10c] ss:$16 sps:$4 sm:$0xff]  }
 0x33f   :  { %1742 = vmatprep.subr.bf16.mxu0 %v5266_v33  ;;  %v5345_v33 = vld [vmem:[#allocation5 + $0x108] ss:$16 sps:$4 sm:$0xff]  }
 0x341   :  { %1674 = vmatmul.mubr.bf16.gmra.mrb[76].mxu0 %v6405_v35 }
 0x342   :  { %1683 = vmatprep.mubr.bf16.mxu0 %v5867_v27  ;;  %1743 = vmatpush1.bf16.msra.mxu0 %v5264_v5  ;;  %v5350_v5 = vld [vmem:[#allocation5 + $0x1a4] ss:$16 sps:$4 sm:$0xff]  }
 0x343   :  { %1744 = vmatprep.subr.bf16.mxu0 %v5269_v0  ;;  %v5351_v0 = vld [vmem:[#allocation5 + $0x128] ss:$16 sps:$4 sm:$0xff]  }
 0x346   :  { %1745 = vmatpush1.bf16.msra.mxu0 %v5267_v48  ;;  %v5353_v48 = vld [vmem:[#allocation5 + $0x12c] ss:$16 sps:$4 sm:$0xff]  }
 0x347   :  { %1746 = vmatprep.subr.bf16.mxu0 %v5272_v51 }
 0x349   :  { %1684 = vmatmul.mubr.bf16.gmra.mrb[116].mxu0 %v6413_v42 }
 0x34a   :  { %1689 = vmatprep.mubr.bf16.mxu0 %v5867_v27  ;;  %1747 = vmatpush1.bf16.msra.mxu0 %v5270_v52 }
 0x34b   :  { %1748 = vmatprep.subr.bf16.mxu0 %v5275_v38  ;;  %v5356_v38 = vld [vmem:[#allocation5 + $0x14c] ss:$16 sps:$4 sm:$0xff]  }
 0x34e   :  { %1749 = vmatpush1.bf16.msra.mxu0 %v5273_v44 }
 0x34f   :  { %1750 = vmatprep.subr.bf16.mxu0 %v5278_v12  ;;  %v5354_v12 = vld [vmem:[#allocation5 + $0x148] ss:$16 sps:$4 sm:$0xff]  }
 0x351   :  { %1690 = vmatmul.mubr.bf16.gmra.mrb[84].mxu0 %v6421_v18 }
 0x352   :  { %1699 = vmatprep.mubr.bf16.mxu0 %v5867_v27  ;;  %1751 = vmatpush1.bf16.msra.mxu0 %v5276_v57 }
 0x353   :  { %1752 = vmatprep.subr.bf16.mxu0 %v5281_v40  ;;  %v5359_v40 = vld [vmem:[#allocation5 + $0x16c] ss:$16 sps:$4 sm:$0xff]  }
 0x356   :  { %1753 = vmatpush1.bf16.msra.mxu0 %v5279_v58  ;;  %v5357_v58 = vld [vmem:[#allocation5 + $0x168] ss:$16 sps:$4 sm:$0xff]  }
 0x357   :  { %3717 = vmatprep.subr.bf16.mxu0 %v5314_v34 }
 0x359   :  { %1700 = vmatmul.mubr.bf16.gmra.mrb[120].mxu0 %v6429_v63 }
 0x35a   :  { %1705 = vmatprep.mubr.bf16.mxu0 %v5867_v27 }
 0x361   :  { %1706 = vmatmul.mubr.bf16.gmra.mrb[92].mxu0 %v6437_v4 }
 0x362   :  { %1715 = vmatprep.mubr.bf16.mxu0 %v5867_v27 }
 0x369   :  { %1716 = vmatmul.mubr.bf16.gmra.mrb[124].mxu0 %v6445_v13 }
 0x36a   :  { %1721 = vmatprep.mubr.bf16.mxu0 %v5867_v27 }
 0x371   :  { %1722 = vmatmul.mubr.bf16.gmra.mrb[100].mxu0 %v6453_v19 }
 0x372   :  { %1731 = vmatprep.mubr.bf16.mxu0 %v5867_v27 }
 0x379   :  { %1732 = vmatmul.mubr.bf16.gmra.mrb[128].mxu0 %v6461_v45 }
 0x37a   :  { %1770 = vmatprep.mubr.bf16.mxu0 %v5867_v27 }
 0x381   :  { %1771 = vmatmul.mubr.bf16.vlgmr.msra.gmra.mrb[132].mxu0 %v6397_v30  ;;  %v5303_v30 = vld [vmem:[#allocation5 + $0xe0] ss:$16 sps:$4 sm:$0xff]  }
 0x382   :  { %1776 = vmatprep.mubr.bf16.mxu0 %v5867_v27  ;;  %3560 = vmatpush1.bf16.msra.mxu1 %v5303_v30 }
 0x383   :  { %3561 = vmatprep.subr.bf16.mxu1 %v5308_v25  ;;  %3718 = vmatpush1.bf16.msra.mxu0 %v5312_v54  ;;  %v6506_v25 = vld [vmem:[%s6611_s6] sm:$0xff] }
 0x386   :  { %3562 = vmatpush1.bf16.msra.mxu1 %v5306_v24 }
 0x387   :  { %3563 = vmatprep.subr.bf16.mxu1 %v5311_v28 }
 0x389   :  { %1777 = vmatmul.mubr.bf16.gmra.mrb[136].mxu0 %v6405_v35 }
 0x38a   :  { %1782 = vmatprep.mubr.bf16.mxu0 %v5867_v27 }
 0x391   :  { %1783 = vmatmul.mubr.bf16.gmra.mrb[76].mxu0 %v6413_v42  ;;  %v5309_v42 = vld [vmem:[#allocation5 + $0x120] ss:$16 sps:$4 sm:$0xff]  }
 0x392   :  { %1792 = vmatprep.mubr.bf16.mxu0 %v5867_v27  ;;  %3564 = vmatpush1.bf16.msra.mxu1 %v5309_v42 }
 0x394   :  { %v1576_v29 = vpop.f32.mrb[80].mxu0 }
 0x395   :  { %v1577_v22 = vpop.f32.mrb[81].mxu0 }
 0x396   :  { %v1578_v20 = vpop.f32.mrb[82].mxu0 }
 0x397   :  { %v1579_v35 = vpop.f32.mrb[83].mxu0  ;;  %v1875_v20 = vlaneseq }
 0x399   :  { %1793 = vmatmul.mubr.bf16.gmra.mrb[140].mxu0 %v6421_v18  ;;  %v5317_v18 = vld [vmem:[#allocation5 + $0x2c] ss:$16 sps:$4 sm:$0xff]   ;;  %v6500_v35 = vshrl.u32 %v1875_v20, 7 }
 0x39a   :  { %1798 = vmatprep.mubr.bf16.mxu0 %v5867_v27  ;;  %3719 = vmatprep.subr.bf16.mxu0 %v5317_v18 }
 0x39b   :  { %3720 = vmatpush1.bf16.msra.mxu0 %v5315_v32  ;;  %v1893_v24 = vsub.s32 4, %v6500_v35  ;;  %v1897_v42 = vsub.s32 5, %v6500_v35 }
 0x39c   :  { %3721 = vmatprep.subr.bf16.mxu0 %v5323_v59 }
 0x39d   :  { %v6510_v34 = vrot.slane %v6506_v25, %v1893_v24  ;;  %v6513_v18 = vrot.slane %v6506_v25, %v1897_v42 }
 0x39f   :  { %3722 = vmatpush1.bf16.msra.mxu0 %v5321_v1 }
 0x3a0   :  { %3723 = vmatprep.subr.bf16.mxu0 %v5326_v31  ;;  %v1905_v31 = vsub.s32 7, %v6500_v35 }
 0x3a1   :  { %1799 = vmatmul.mubr.bf16.gmra.mrb[84].mxu0 %v6429_v63  ;;  %v5320_v63 = vld [vmem:[#allocation5 + $0x144] ss:$16 sps:$4 sm:$0xff]  }
 0x3a2   :  { %1808 = vmatprep.mubr.bf16.mxu0 %v5867_v27  ;;  %3565 = vmatprep.subr.bf16.mxu1 %v5320_v63 }
 0x3a3   :  { %3566 = vmatpush1.bf16.msra.mxu1 %v5318_v46  ;;  %3724 = vmatpush1.bf16.msra.mxu0 %v5324_v49 }
 0x3a4   :  { %3567 = vmatprep.subr.bf16.mxu1 %v5332_v37 }
 0x3a7   :  { %3568 = vmatpush1.bf16.msra.mxu1 %v5330_v55 }
 0x3a8   :  { %3569 = vmatprep.subr.bf16.mxu1 %v5341_v14 }
 0x3a9   :  { %1809 = vmatmul.mubr.bf16.gmra.mrb[144].mxu0 %v6437_v4 }
 0x3aa   :  { %1814 = vmatprep.mubr.bf16.mxu0 %v5867_v27 }
 0x3b1   :  { %1815 = vmatmul.mubr.bf16.gmra.mrb[92].mxu0 %v6445_v13  ;;  %v5329_v13 = vld [vmem:[#allocation5 + $0x8c] ss:$16 sps:$4 sm:$0xff]  }
 0x3b2   :  { %1824 = vmatprep.mubr.bf16.mxu0 %v5867_v27  ;;  %3725 = vmatprep.subr.bf16.mxu0 %v5329_v13 }
 0x3b3   :  { %3726 = vmatpush1.bf16.msra.mxu0 %v5327_v36 }
 0x3b4   :  { %v1592_v4 = vpop.f32.mrb[88].mxu0  ;;  %3727 = vmatprep.subr.bf16.mxu0 %v5335_v41 }
 0x3b5   :  { %v1593_v3 = vpop.f32.mrb[89].mxu0 }
 0x3b6   :  { %v1594_v43 = vpop.f32.mrb[90].mxu0  ;;  %v1901_v3 = vsub.s32 6, %v6500_v35 }
 0x3b7   :  { %v1595_v8 = vpop.f32.mrb[91].mxu0  ;;  %3728 = vmatpush1.bf16.msra.mxu0 %v5333_v39 }
 0x3b8   :  { %3729 = vmatprep.subr.bf16.mxu0 %v5338_v16  ;;  %v6518_v43 = vrot.slane %v6506_v25, %v1901_v3  ;;  %v6521_v8 = vrot.slane %v6506_v25, %v1905_v31  ;;  %v5384_v3 = vld [vmem:[#allocation5 + $0x220] ss:$16 sps:$4 sm:$0xff]   ;;  %v5387_v31 = vld [vmem:[#allocation5 + $0x228] ss:$16 sps:$4 sm:$0xff]  }
 0x3b9   :  { %1825 = vmatmul.mubr.bf16.gmra.mrb[148].mxu0 %v6453_v19  ;;  %v5339_v19 = vld [vmem:[#allocation5 + $0x180] ss:$16 sps:$4 sm:$0xff]  }
 0x3ba   :  { %1830 = vmatprep.mubr.bf16.mxu0 %v5867_v27  ;;  %v5336_v27 = vld [vmem:[#allocation5 + $0xc8] ss:$16 sps:$4 sm:$0xff]   ;;  %3570 = vmatpush1.bf16.msra.mxu1 %v5339_v19 }
 0x3bb   :  { %3730 = vmatpush1.bf16.msra.mxu0 %v5336_v27  ;;  %3571 = vmatprep.subr.bf16.mxu1 %v5350_v5 }
 0x3bc   :  { %3731 = vmatprep.subr.bf16.mxu0 %v5344_v15 }
 0x3bf   :  { %3732 = vmatpush1.bf16.msra.mxu0 %v5342_v47 }
 0x3c0   :  { %3733 = vmatprep.subr.bf16.mxu0 %v5347_v21 }
 0x3c1   :  { %1831 = vmatmul.mubr.bf16.gmra.mrb[100].mxu0 %v6461_v45  ;;  %v5348_v45 = vld [vmem:[#allocation5 + $0x1a0] ss:$16 sps:$4 sm:$0xff]  }
 0x3c2   :  { %3572 = vmatpush1.bf16.msra.mxu1 %v5348_v45 }
 0x3c3   :  { %3734 = vmatpush1.bf16.msra.mxu0 %v5345_v33  ;;  %3573 = vmatprep.subr.bf16.mxu1 %v5362_v61 }
 0x3c4   :  { %3735 = vmatprep.subr.bf16.mxu0 %v5353_v48 }
 0x3c6   :  { %3574 = vmatpush1.bf16.msra.mxu1 %v5360_v60 }
 0x3c7   :  { %3736 = vmatpush1.bf16.msra.mxu0 %v5351_v0  ;;  %3575 = vmatprep.subr.bf16.mxu1 %v5371_v11 }
 0x3c8   :  { %3737 = vmatprep.subr.bf16.mxu0 %v5356_v38 }
 0x3ca   :  { %3576 = vmatpush1.bf16.msra.mxu1 %v5369_v50 }
 0x3cb   :  { %3738 = vmatpush1.bf16.msra.mxu0 %v5354_v12  ;;  %3588 = vmatprep.subr.bf16.mxu1 %v5380_v17 }
 0x3cc   :  { %3739 = vmatprep.subr.bf16.mxu0 %v5359_v40 }
 0x3cf   :  { %3740 = vmatpush1.bf16.msra.mxu0 %v5357_v58 }
 0x3d0   :  { %3741 = vmatprep.subr.bf16.mxu0 %v5365_v62 }
 0x3d3   :  { %3742 = vmatpush1.bf16.msra.mxu0 %v5363_v2 }
 0x3d4   :  { %v1608_v51 = vpop.f32.mrb[96].mxu0  ;;  %3743 = vmatprep.subr.bf16.mxu0 %v5368_v56 }
 0x3d5   :  { %v1609_v52 = vpop.f32.mrb[97].mxu0 }
 0x3d6   :  { %v1610_v44 = vpop.f32.mrb[98].mxu0 }
 0x3d7   :  { %v1611_v57 = vpop.f32.mrb[99].mxu0  ;;  %3744 = vmatpush1.bf16.msra.mxu0 %v5366_v7  ;;  %v1877_v44 = vsub.s32 0, %v6500_v35 }
 0x3d8   :  { %3745 = vmatprep.subr.bf16.mxu0 %v5374_v9  ;;  %v1881_v57 = vsub.s32 1, %v6500_v35 }
 0x3d9   :  { %v1878_v58 = vrot.slane %v6506_v25, %v1877_v44 }
 0x3da   :  { %v1882_v60 = vrot.slane %v6506_v25, %v1881_v57 }
 0x3db   :  { %3746 = vmatpush1.bf16.msra.mxu0 %v5372_v10 }
 0x3dc   :  { %3747 = vmatprep.subr.bf16.mxu0 %v5377_v6 }
 0x3df   :  { %3748 = vmatpush1.bf16.msra.mxu0 %v5375_v53 }
 0x3e0   :  { %3760 = vmatprep.subr.bf16.mxu0 %v5383_v23 }
 0x3f4   :  { %v1624_v26 = vpop.f32.mrb[104].mxu0 }
 0x3f5   :  { %v1625_v30 = vpop.f32.mrb[105].mxu0 }
 0x3f6   :  { %v1626_v29 = vpop.f32.mrb[106].mxu0 }
 0x3f7   :  { %v1627_v22 = vpop.f32.mrb[107].mxu0 }
 0x404   :  { %v1630_v28 = vpop.f32.mrb[108].mxu0 }
 0x405   :  { %v1631_v54 = vpop.f32.mrb[109].mxu0  ;;  %v5378_v28 = vld [vmem:[#allocation5 + $0x200] ss:$16 sps:$4 sm:$0xff]  }
 0x406   :  { %v1632_v32 = vpop.f32.mrb[110].mxu0  ;;  %v5381_v54 = vld [vmem:[#allocation5 + $0x208] ss:$16 sps:$4 sm:$0xff]  }
 0x407   :  { %v1633_v46 = vpop.f32.mrb[111].mxu0  ;;  %v1885_v32 = vsub.s32 2, %v6500_v35 }
 0x40c   :  { %v1669_v63 = vpop.f32.mrb[112].mxu0 }
 0x40d   :  { %v1670_v59 = vpop.f32.mrb[113].mxu0  ;;  %v5386_v63 = vld [vmem:[#allocation5 + $0x224] ss:$16 sps:$4 sm:$0xff]  }
 0x40e   :  { %v1671_v4 = vpop.f32.mrb[114].mxu0  ;;  %v5389_v59 = vld [vmem:[#allocation5 + $0x22c] ss:$16 sps:$4 sm:$0xff]  }
 0x40f   :  { %v1672_v1 = vpop.f32.mrb[115].mxu0  ;;  %v1889_v4 = vsub.s32 3, %v6500_v35 }
 0x41c   :  { %v1685_v49 = vpop.f32.mrb[116].mxu0 }
 0x41d   :  { %v1686_v13 = vpop.f32.mrb[117].mxu0  ;;  %v1886_v49 = vrot.slane %v6506_v25, %v1885_v32 }
 0x41e   :  { %v1687_v36 = vpop.f32.mrb[118].mxu0  ;;  %v1890_v13 = vrot.slane %v6506_v25, %v1889_v4 }
 0x41f   :  { %v1688_v55 = vpop.f32.mrb[119].mxu0  ;;  %v5392_v36 = vld [vmem:[#allocation5 + $0x244] ss:$16 sps:$4 sm:$0xff]  }
 0x420   :  { %v5395_v55 = vld [vmem:[#allocation5 + $0x24c] ss:$16 sps:$4 sm:$0xff]  }
 0x42c   :  { %v1701_v37 = vpop.f32.mrb[120].mxu0 }
 0x42d   :  { %v1702_v39 = vpop.f32.mrb[121].mxu0 }
 0x42e   :  { %v1703_v41 = vpop.f32.mrb[122].mxu0 }
 0x42f   :  { %v1704_v16 = vpop.f32.mrb[123].mxu0 }
 0x430   :  { %v5390_v16 = vld [vmem:[#allocation5 + $0x240] ss:$16 sps:$4 sm:$0xff]  }
 0x43c   :  { %v1717_v14 = vpop.f32.mrb[124].mxu0 }
 0x43d   :  { %v1718_v19 = vpop.f32.mrb[125].mxu0  ;;  %v5393_v14 = vld [vmem:[#allocation5 + $0x248] ss:$16 sps:$4 sm:$0xff]  }
 0x43e   :  { %v1719_v27 = vpop.f32.mrb[126].mxu0 }
 0x43f   :  { %v1720_v15 = vpop.f32.mrb[127].mxu0 }
 0x440   :  { %v5398_v15 = vld [vmem:[#allocation5 + $0x264] ss:$16 sps:$4 sm:$0xff]  }
 0x44c   :  { %v1733_v47 = vpop.f32.mrb[128].mxu0 }
 0x44d   :  { %v1734_v21 = vpop.f32.mrb[129].mxu0  ;;  %v5401_v47 = vld [vmem:[#allocation5 + $0x26c] ss:$16 sps:$4 sm:$0xff]  }
 0x44e   :  { %v1735_v33 = vpop.f32.mrb[130].mxu0 }
 0x44f   :  { %v1736_v45 = vpop.f32.mrb[131].mxu0 }
 0x454   :  { %v1772_v5 = vpop.f32.mrb[132].mxu0 }
 0x455   :  { %v1773_v0 = vpop.f32.mrb[133].mxu0  ;;  %v5396_v5 = vld [vmem:[#allocation5 + $0x260] ss:$16 sps:$4 sm:$0xff]  }
 0x456   :  { %v1774_v48 = vpop.f32.mrb[134].mxu0 }
 0x457   :  { %v1775_v51 = vpop.f32.mrb[135].mxu0  ;;  %v5399_v48 = vld [vmem:[#allocation5 + $0x268] ss:$16 sps:$4 sm:$0xff]  }
 0x45c   :  { %v1778_v52 = vpop.f32.mrb[136].mxu0 }
 0x45d   :  { %v1779_v38 = vpop.f32.mrb[137].mxu0  ;;  %v5404_v52 = vld [vmem:[#allocation5 + $0x284] ss:$16 sps:$4 sm:$0xff]  }
 0x45e   :  { %v1780_v12 = vpop.f32.mrb[138].mxu0 }
 0x45f   :  { %v1781_v40 = vpop.f32.mrb[139].mxu0  ;;  %v5407_v12 = vld [vmem:[#allocation5 + $0x28c] ss:$16 sps:$4 sm:$0xff]  }
 0x464   :  { %v1784_v61 = vpop.f32.mrb[76].mxu0 }
 0x465   :  { %v1915_v62 = vadd.f32 %v1878_v58, %v1784_v61  ;;  %v1786_v2 = vpop.f32.mrb[77].mxu0 }
 0x466   :  { %v1916_v56 = vadd.f32 %v1882_v60, %v1786_v2  ;;  %v1788_v7 = vpop.f32.mrb[78].mxu0 }
 0x467   :  { %v1947_v9 = vmul.f32 0.1, %v1915_v62  ;;  %v1923_v10 = vadd.f32 %v1878_v58, %v1788_v7  ;;  %v1790_v11 = vpop.f32.mrb[79].mxu0  ;;  %vm1931_vm13 = vcmp.ge.f32.partialorder %v1915_v62, 0.0  ;;  %v5402_v7 = vld [vmem:[#allocation5 + $0x280] ss:$16 sps:$4 sm:$0xff]  }
 0x468   :  { %v1948_v6 = vmul.f32 0.1, %v1916_v56  ;;  %v1924_v50 = vadd.f32 %v1882_v60, %v1790_v11  ;;  %vm1932_vm14 = vcmp.ge.f32.partialorder %v1916_v56, 0.0 }
 0x469   :  { %vm1939_vm15 = vcmp.ge.f32.partialorder %v1923_v10, 0.0  ;;  %v1955_v53 = vmul.f32 0.1, %v1923_v10  ;;  %v1963_v23 = vsel %vm1931_vm13, %v1915_v62, %v1947_v9 }
 0x46a   :  { %vm1940_vm1 = vcmp.ge.f32.partialorder %v1924_v50, 0.0  ;;  %v1956_v17 = vmul.f32 0.1, %v1924_v50  ;;  %v1964_v22 = vsel %vm1932_vm14, %v1916_v56, %v1948_v6  ;;  %v5410_v6 = vld [vmem:[#allocation5 + $0x2a4] ss:$16 sps:$4 sm:$0xff]  }
 0x46b   :  { %v1971_v26 = vsel %vm1939_vm15, %v1923_v10, %v1955_v53  ;;  %v5405_v10 = vld [vmem:[#allocation5 + $0x288] ss:$16 sps:$4 sm:$0xff]  }
 0x46c   :  { %v1979_v30 = vpack.c.bf16 %v1971_v26, %v1963_v23  ;;  %v1794_v29 = vpop.f32.mrb[140].mxu0  ;;  %v1972_v20 = vsel %vm1940_vm1, %v1924_v50, %v1956_v17  ;;  %v5413_v50 = vld [vmem:[#allocation5 + $0x2ac] ss:$16 sps:$4 sm:$0xff]   ;;  %v5408_v17 = vld [vmem:[#allocation5 + $0x2a0] ss:$16 sps:$4 sm:$0xff]  }
 0x46d   :  { %v1795_v24 = vpop.f32.mrb[141].mxu0  ;;  %v1980_v42 = vpack.c.bf16 %v1972_v20, %v1964_v22  ;;  %v5411_v23 = vld [vmem:[#allocation5 + $0x2a8] ss:$16 sps:$4 sm:$0xff]   ;;  %v5416_v26 = vld [vmem:[#allocation5 + $0x2c4] ss:$16 sps:$4 sm:$0xff]  }
 0x46e   :  { %v1796_v46 = vpop.f32.mrb[142].mxu0  ;;  %v5414_v24 = vld [vmem:[#allocation5 + $0x2c0] ss:$16 sps:$4 sm:$0xff]  }
 0x46f   :  { %v1797_v1 = vpop.f32.mrb[143].mxu0  ;;  %3577 = vmatprep.mubr.bf16.mxu1 %v1980_v42  ;;  %3749 = vmatprep.mubr.bf16.mxu0 %v1980_v42  ;;  %v5417_v42 = vld [vmem:[#allocation5 + $0x2c8] ss:$16 sps:$4 sm:$0xff]   ;;  %v5422_v46 = vld [vmem:[#allocation5 + $0x2e4] ss:$16 sps:$4 sm:$0xff]  }
 0x470   :  { %3578 = vmatmul.mubr.bf16.vlgmr.msra.gmra.mrb[152].mxu1 %v1979_v30  ;;  %3750 = vmatmul.mubr.bf16.vlgmr.msra.gmra.mrb[152].mxu0 %v1979_v30  ;;  %v5419_v30 = vld [vmem:[#allocation5 + $0x2cc] ss:$16 sps:$4 sm:$0xff]  }
 0x471   :  { %3589 = vmatpush1.bf16.msra.mxu1 %v5378_v28  ;;  %3761 = vmatpush1.bf16.msra.mxu0 %v5381_v54 }
 0x472   :  { %3590 = vmatprep.subr.bf16.mxu1 %v5386_v63  ;;  %3762 = vmatprep.subr.bf16.mxu0 %v5389_v59  ;;  %v5425_v63 = vld [vmem:[#allocation5 + $0x2ec] ss:$16 sps:$4 sm:$0xff]  }
 0x474   :  { %v1800_v37 = vpop.f32.mrb[84].mxu0 }
 0x475   :  { %v1917_v39 = vadd.f32 %v1886_v49, %v1800_v37  ;;  %3591 = vmatpush1.bf16.msra.mxu1 %v5384_v3  ;;  %3763 = vmatpush1.bf16.msra.mxu0 %v5387_v31  ;;  %v1802_v41 = vpop.f32.mrb[85].mxu0  ;;  %v5420_v31 = vld [vmem:[#allocation5 + $0x2e0] ss:$16 sps:$4 sm:$0xff]   ;;  %v5428_v37 = vld [vmem:[#allocation5 + $0x304] ss:$16 sps:$4 sm:$0xff]  }
 0x476   :  { %v1918_v19 = vadd.f32 %v1890_v13, %v1802_v41  ;;  %v1804_v27 = vpop.f32.mrb[86].mxu0  ;;  %3592 = vmatprep.subr.bf16.mxu1 %v5392_v36  ;;  %3764 = vmatprep.subr.bf16.mxu0 %v5395_v55  ;;  %v5423_v36 = vld [vmem:[#allocation5 + $0x2e8] ss:$16 sps:$4 sm:$0xff]   ;;  %v5431_v41 = vld [vmem:[#allocation5 + $0x30c] ss:$16 sps:$4 sm:$0xff]  }
 0x477   :  { %v1949_v21 = vmul.f32 0.1, %v1917_v39  ;;  %v1925_v33 = vadd.f32 %v1886_v49, %v1804_v27  ;;  %v1806_v45 = vpop.f32.mrb[87].mxu0  ;;  %vm1933_vm2 = vcmp.ge.f32.partialorder %v1917_v39, 0.0 }
 0x478   :  { %v1950_v25 = vmul.f32 0.1, %v1918_v19  ;;  %v1926_v0 = vadd.f32 %v1890_v13, %v1806_v45  ;;  %vm1934_vm3 = vcmp.ge.f32.partialorder %v1918_v19, 0.0 }
 0x479   :  { %vm1941_vm5 = vcmp.ge.f32.partialorder %v1925_v33, 0.0  ;;  %v1957_v51 = vmul.f32 0.1, %v1925_v33  ;;  %3593 = vmatpush1.bf16.msra.mxu1 %v5390_v16  ;;  %3765 = vmatpush1.bf16.msra.mxu0 %v5393_v14  ;;  %v1965_v40 = vsel %vm1933_vm2, %v1917_v39, %v1949_v21  ;;  %v5429_v21 = vld [vmem:[#allocation5 + $0x308] ss:$16 sps:$4 sm:$0xff]  }
 0x47a   :  { %vm1942_vm6 = vcmp.ge.f32.partialorder %v1926_v0, 0.0  ;;  %v1958_v38 = vmul.f32 0.1, %v1926_v0  ;;  %3594 = vmatprep.subr.bf16.mxu1 %v5398_v15  ;;  %3766 = vmatprep.subr.bf16.mxu0 %v5401_v47  ;;  %v1966_v62 = vsel %vm1934_vm3, %v1918_v19, %v1950_v25  ;;  %v5426_v47 = vld [vmem:[#allocation5 + $0x300] ss:$16 sps:$4 sm:$0xff]  }
 0x47b   :  { %v1973_v58 = vsel %vm1941_vm5, %v1925_v33, %v1957_v51  ;;  %v5437_v25 = vld [vmem:[#allocation5 + $0x32c] ss:$16 sps:$4 sm:$0xff]   ;;  %v5435_v51 = vld [vmem:[#allocation5 + $0x328] ss:$16 sps:$4 sm:$0xff]  }
 0x47c   :  { %v6539_v60 = vpack.c.bf16 %v1973_v58, %v1965_v40  ;;  %v1810_v61 = vpop.f32.mrb[144].mxu0  ;;  %v1974_v2 = vsel %vm1942_vm6, %v1926_v0, %v1958_v38  ;;  %v5443_v38 = vld [vmem:[#allocation5 + $0x34c] ss:$16 sps:$4 sm:$0xff]  }
 0x47d   :  { %3595 = vmatpush1.bf16.msra.mxu1 %v5396_v5  ;;  %3767 = vmatpush1.bf16.msra.mxu0 %v5399_v48  ;;  %v1811_v56 = vpop.f32.mrb[145].mxu0  ;;  %v1982_v9 = vpack.c.bf16 %v1974_v2, %v1966_v62  ;;  %v5434_v5 = vld [vmem:[#allocation5 + $0x324] ss:$16 sps:$4 sm:$0xff]   ;;  %v5432_v48 = vld [vmem:[#allocation5 + $0x320] ss:$16 sps:$4 sm:$0xff]  }
 0x47e   :  { %v1812_v11 = vpop.f32.mrb[146].mxu0  ;;  %3596 = vmatprep.subr.bf16.mxu1 %v5404_v52  ;;  %3768 = vmatprep.subr.bf16.mxu0 %v5407_v12  ;;  %v5440_v52 = vld [vmem:[#allocation5 + $0x344] ss:$16 sps:$4 sm:$0xff]   ;;  %v5438_v61 = vld [vmem:[#allocation5 + $0x340] ss:$16 sps:$4 sm:$0xff]  }
 0x47f   :  { %v1813_v53 = vpop.f32.mrb[147].mxu0  ;;  %3620 = vmatprep.mubr.bf16.mxu1 %v1982_v9  ;;  %3792 = vmatprep.mubr.bf16.mxu0 %v1982_v9  ;;  %v5441_v62 = vld [vmem:[#allocation5 + $0x348] ss:$16 sps:$4 sm:$0xff]   ;;  %v5449_v9 = vld [vmem:[#allocation5 + $0x36c] ss:$16 sps:$4 sm:$0xff]  }
 0x481   :  { %3597 = vmatpush1.bf16.msra.mxu1 %v5402_v7  ;;  %3769 = vmatpush1.bf16.msra.mxu0 %v5405_v10  ;;  %v5446_v7 = vld [vmem:[#allocation5 + $0x364] ss:$16 sps:$4 sm:$0xff]  }
 0x482   :  { %3598 = vmatprep.subr.bf16.mxu1 %v5410_v6  ;;  %3770 = vmatprep.subr.bf16.mxu0 %v5413_v50  ;;  %v5444_v50 = vld [vmem:[#allocation5 + $0x360] ss:$16 sps:$4 sm:$0xff]  }
 0x484   :  { %v1816_v29 = vpop.f32.mrb[92].mxu0 }
 0x485   :  { %v1919_v22 = vadd.f32 %v6510_v34, %v1816_v29  ;;  %3599 = vmatpush1.bf16.msra.mxu1 %v5408_v17  ;;  %3771 = vmatpush1.bf16.msra.mxu0 %v5411_v23  ;;  %v1818_v20 = vpop.f32.mrb[93].mxu0  ;;  %v5447_v23 = vld [vmem:[#allocation5 + $0x368] ss:$16 sps:$4 sm:$0xff]  }
 0x486   :  { %v1920_v28 = vadd.f32 %v6513_v18, %v1818_v20  ;;  %v1820_v54 = vpop.f32.mrb[94].mxu0  ;;  %3600 = vmatprep.subr.bf16.mxu1 %v5416_v26  ;;  %3772 = vmatprep.subr.bf16.mxu0 %v5419_v30  ;;  %v5452_v30 = vld [vmem:[#allocation5 + $0x384] ss:$16 sps:$4 sm:$0xff]  }
 0x487   :  { %v1951_v59 = vmul.f32 0.1, %v1919_v22  ;;  %v1927_v1 = vadd.f32 %v6510_v34, %v1820_v54  ;;  %v1822_v3 = vpop.f32.mrb[95].mxu0  ;;  %vm1935_vm7 = vcmp.ge.f32.partialorder %v1919_v22, 0.0  ;;  %v5453_v54 = vld [vmem:[#allocation5 + $0x388] ss:$16 sps:$4 sm:$0xff]  }
 0x488   :  { %v1952_v49 = vmul.f32 0.1, %v1920_v28  ;;  %v1928_v13 = vadd.f32 %v6513_v18, %v1822_v3  ;;  %vm1936_vm8 = vcmp.ge.f32.partialorder %v1920_v28, 0.0  ;;  %v5459_v3 = vld [vmem:[#allocation5 + $0x3a8] ss:$16 sps:$4 sm:$0xff]  }
 0x489   :  { %vm1943_vm9 = vcmp.ge.f32.partialorder %v1927_v1, 0.0  ;;  %v1959_v55 = vmul.f32 0.1, %v1927_v1  ;;  %3601 = vmatpush1.bf16.msra.mxu1 %v5414_v24  ;;  %3773 = vmatpush1.bf16.msra.mxu0 %v5417_v42  ;;  %v1967_v16 = vsel %vm1935_vm7, %v1919_v22, %v1951_v59  ;;  %v5455_v22 = vld [vmem:[#allocation5 + $0x38c] ss:$16 sps:$4 sm:$0xff]  }
 0x48a   :  { %vm1944_vm10 = vcmp.ge.f32.partialorder %v1928_v13, 0.0  ;;  %v1960_v39 = vmul.f32 0.1, %v1928_v13  ;;  %3602 = vmatprep.subr.bf16.mxu1 %v5422_v46  ;;  %3774 = vmatprep.subr.bf16.mxu0 %v5425_v63  ;;  %v1968_v27 = vsel %vm1936_vm8, %v1920_v28, %v1952_v49  ;;  %v5458_v63 = vld [vmem:[#allocation5 + $0x3a4] ss:$16 sps:$4 sm:$0xff]  }
 0x48b   :  { %v1975_v34 = vsel %vm1943_vm9, %v1927_v1, %v1959_v55  ;;  %v5461_v59 = vld [vmem:[#allocation5 + $0x3ac] ss:$16 sps:$4 sm:$0xff]   ;;  %v5456_v1 = vld [vmem:[#allocation5 + $0x3a0] ss:$16 sps:$4 sm:$0xff]   ;;  %v5470_v55 = vld [vmem:[#allocation5 + $0x3e4] ss:$16 sps:$4 sm:$0xff]  }
 0x48c   :  { %v6545_v14 = vpack.c.bf16 %v1975_v34, %v1967_v16  ;;  %v1826_v19 = vpop.f32.mrb[148].mxu0  ;;  %v1976_v15 = vsel %vm1944_vm10, %v1928_v13, %v1960_v39  ;;  %v5467_v49 = vld [vmem:[#allocation5 + $0x3cc] ss:$16 sps:$4 sm:$0xff]   ;;  %v5462_v13 = vld [vmem:[#allocation5 + $0x3c0] ss:$16 sps:$4 sm:$0xff]  }
 0x48d   :  { %3603 = vmatpush1.bf16.msra.mxu1 %v5420_v31  ;;  %3775 = vmatpush1.bf16.msra.mxu0 %v5423_v36  ;;  %v1827_v18 = vpop.f32.mrb[149].mxu0  ;;  %v6547_v33 = vpack.c.bf16 %v1976_v15, %v1968_v27  ;;  %v5464_v31 = vld [vmem:[#allocation5 + $0x3c4] ss:$16 sps:$4 sm:$0xff]   ;;  %v5465_v36 = vld [vmem:[#allocation5 + $0x3c8] ss:$16 sps:$4 sm:$0xff]  }
 0x48e   :  { %v1828_v45 = vpop.f32.mrb[150].mxu0  ;;  %3604 = vmatprep.subr.bf16.mxu1 %v5428_v37  ;;  %3776 = vmatprep.subr.bf16.mxu0 %v5431_v41  ;;  %v5473_v37 = vld [vmem:[#allocation5 + $0x3ec] ss:$16 sps:$4 sm:$0xff]   ;;  %v5468_v39 = vld [vmem:[#allocation5 + $0x3e0] ss:$16 sps:$4 sm:$0xff]  }
 0x48f   :  { %v1829_v0 = vpop.f32.mrb[151].mxu0  ;;  %v5471_v41 = vld [vmem:[#allocation5 + $0x3e8] ss:$16 sps:$4 sm:$0xff]   ;;  %v5476_v16 = vld [vmem:[#allocation5 + $0x404] ss:$16 sps:$4 sm:$0xff]  }
 0x490   :  { %v5479_v34 = vld [vmem:[#allocation5 + $0x40c] ss:$16 sps:$4 sm:$0xff]   ;;  %v5474_v19 = vld [vmem:[#allocation5 + $0x400] ss:$16 sps:$4 sm:$0xff]   ;;  %v5477_v27 = vld [vmem:[#allocation5 + $0x408] ss:$16 sps:$4 sm:$0xff]  }
 0x491   :  { %3605 = vmatpush1.bf16.msra.mxu1 %v5426_v47  ;;  %3777 = vmatpush1.bf16.msra.mxu0 %v5429_v21  ;;  %v5482_v15 = vld [vmem:[#allocation5 + $0x424] ss:$16 sps:$4 sm:$0xff]   ;;  %v5485_v18 = vld [vmem:[#allocation5 + $0x42c] ss:$16 sps:$4 sm:$0xff]   ;;  %v5480_v47 = vld [vmem:[#allocation5 + $0x420] ss:$16 sps:$4 sm:$0xff]  }
 0x492   :  { %3606 = vmatprep.subr.bf16.mxu1 %v5434_v5  ;;  %3778 = vmatprep.subr.bf16.mxu0 %v5437_v25  ;;  %v5483_v21 = vld [vmem:[#allocation5 + $0x428] ss:$16 sps:$4 sm:$0xff]   ;;  %v5488_v45 = vld [vmem:[#allocation5 + $0x444] ss:$16 sps:$4 sm:$0xff]   ;;  %v5491_v5 = vld [vmem:[#allocation5 + $0x44c] ss:$16 sps:$4 sm:$0xff]  }
 0x493   :  { %v5486_v25 = vld [vmem:[#allocation5 + $0x440] ss:$16 sps:$4 sm:$0xff]   ;;  %v5489_v0 = vld [vmem:[#allocation5 + $0x448] ss:$16 sps:$4 sm:$0xff]  }
 0x494   :  { %v1832_v12 = vpop.f32.mrb[100].mxu0 }
 0x495   :  { %v1921_v40 = vadd.f32 %v6518_v43, %v1832_v12  ;;  %3607 = vmatpush1.bf16.msra.mxu1 %v5432_v48  ;;  %3779 = vmatpush1.bf16.msra.mxu0 %v5435_v51  ;;  %v1834_v58 = vpop.f32.mrb[101].mxu0  ;;  %v5494_v48 = vld [vmem:[#allocation5 + $0x464] ss:$16 sps:$4 sm:$0xff]   ;;  %v5492_v51 = vld [vmem:[#allocation5 + $0x460] ss:$16 sps:$4 sm:$0xff]  }
 0x496   :  { %v1922_v2 = vadd.f32 %v6521_v8, %v1834_v58  ;;  %v1836_v56 = vpop.f32.mrb[102].mxu0  ;;  %3608 = vmatprep.subr.bf16.mxu1 %v5440_v52  ;;  %3780 = vmatprep.subr.bf16.mxu0 %v5443_v38  ;;  %v5495_v52 = vld [vmem:[#allocation5 + $0x468] ss:$16 sps:$4 sm:$0xff]   ;;  %v5500_v38 = vld [vmem:[#allocation5 + $0x484] ss:$16 sps:$4 sm:$0xff]  }
 0x497   :  { %v1953_v10 = vmul.f32 0.1, %v1921_v40  ;;  %v1929_v11 = vadd.f32 %v6518_v43, %v1836_v56  ;;  %v1838_v6 = vpop.f32.mrb[103].mxu0  ;;  %vm1937_vm11 = vcmp.ge.f32.partialorder %v1921_v40, 0.0  ;;  %v5498_v12 = vld [vmem:[#allocation5 + $0x480] ss:$16 sps:$4 sm:$0xff]  }
 0x498   :  { %v1954_v53 = vmul.f32 0.1, %v1922_v2  ;;  %v1930_v17 = vadd.f32 %v6521_v8, %v1838_v6  ;;  %vm1938_vm12 = vcmp.ge.f32.partialorder %v1922_v2, 0.0  ;;  %v5450_v8 = vld [vmem:[#allocation5 + $0x380] ss:$16 sps:$4 sm:$0xff]  }
 0x499   :  { %vm1945_vm0 = vcmp.ge.f32.partialorder %v1929_v11, 0.0  ;;  %v1961_v26 = vmul.f32 0.1, %v1929_v11  ;;  %3609 = vmatpush1.bf16.msra.mxu1 %v5438_v61  ;;  %3781 = vmatpush1.bf16.msra.mxu0 %v5441_v62  ;;  %v1969_v20 = vsel %vm1937_vm11, %v1921_v40, %v1953_v10  ;;  %v5501_v40 = vld [vmem:[#allocation5 + $0x488] ss:$16 sps:$4 sm:$0xff]  }
 0x49a   :  { %vm1946_vm4 = vcmp.ge.f32.partialorder %v1930_v17, 0.0  ;;  %v1962_v29 = vmul.f32 0.1, %v1930_v17  ;;  %3610 = vmatprep.subr.bf16.mxu1 %v5446_v7  ;;  %3782 = vmatprep.subr.bf16.mxu0 %v5449_v9  ;;  %v1970_v42 = vsel %vm1938_vm12, %v1922_v2, %v1954_v53  ;;  %v5506_v58 = vld [vmem:[#allocation5 + $0x4a4] ss:$16 sps:$4 sm:$0xff]  }
 0x49b   :  { %v1977_v43 = vsel %vm1945_vm0, %v1929_v11, %v1961_v26  ;;  %v5509_v61 = vld [vmem:[#allocation5 + $0x4ac] ss:$16 sps:$4 sm:$0xff]   ;;  %v5504_v62 = vld [vmem:[#allocation5 + $0x4a0] ss:$16 sps:$4 sm:$0xff]   ;;  %v5507_v2 = vld [vmem:[#allocation5 + $0x4a8] ss:$16 sps:$4 sm:$0xff]  }
 0x49c   :  { %v6553_v24 = vpack.c.bf16 %v1977_v43, %v1969_v20  ;;  %v1978_v28 = vsel %vm1946_vm4, %v1930_v17, %v1962_v29  ;;  %v5512_v56 = vld [vmem:[#allocation5 + $0x4c4] ss:$16 sps:$4 sm:$0xff]   ;;  %v5515_v7 = vld [vmem:[#allocation5 + $0x4cc] ss:$16 sps:$4 sm:$0xff]   ;;  %v5510_v9 = vld [vmem:[#allocation5 + $0x4c0] ss:$16 sps:$4 sm:$0xff]  }
 0x49d   :  { %3611 = vmatpush1.bf16.msra.mxu1 %v5444_v50  ;;  %3783 = vmatpush1.bf16.msra.mxu0 %v5447_v23  ;;  %v6555_v46 = vpack.c.bf16 %v1978_v28, %v1970_v42  ;;  %v5513_v10 = vld [vmem:[#allocation5 + $0x4c8] ss:$16 sps:$4 sm:$0xff]   ;;  %v5518_v11 = vld [vmem:[#allocation5 + $0x4e4] ss:$16 sps:$4 sm:$0xff]   ;;  %v5521_v6 = vld [vmem:[#allocation5 + $0x4ec] ss:$16 sps:$4 sm:$0xff]  }
 0x49e   :  { %3612 = vmatprep.subr.bf16.mxu1 %v5452_v30  ;;  %3784 = vmatprep.subr.bf16.mxu0 %v5455_v22  ;;  %v5516_v50 = vld [vmem:[#allocation5 + $0x4e0] ss:$16 sps:$4 sm:$0xff]   ;;  %v5519_v53 = vld [vmem:[#allocation5 + $0x4e8] ss:$16 sps:$4 sm:$0xff]   ;;  %v5524_v17 = vld [vmem:[#allocation5 + $0x504] ss:$16 sps:$4 sm:$0xff]  }
 0x49f   :  { %v5527_v23 = vld [vmem:[#allocation5 + $0x50c] ss:$16 sps:$4 sm:$0xff]   ;;  %v5522_v26 = vld [vmem:[#allocation5 + $0x500] ss:$16 sps:$4 sm:$0xff]   ;;  %v5525_v30 = vld [vmem:[#allocation5 + $0x508] ss:$16 sps:$4 sm:$0xff]  }
 0x4a0   :  { %v5530_v29 = vld [vmem:[#allocation5 + $0x524] ss:$16 sps:$4 sm:$0xff]   ;;  %v5533_v22 = vld [vmem:[#allocation5 + $0x52c] ss:$16 sps:$4 sm:$0xff]   ;;  %v5528_v20 = vld [vmem:[#allocation5 + $0x520] ss:$16 sps:$4 sm:$0xff]  }
 0x4a1   :  { %3613 = vmatpush1.bf16.msra.mxu1 %v5450_v8  ;;  %3785 = vmatpush1.bf16.msra.mxu0 %v5453_v54  ;;  %v5531_v43 = vld [vmem:[#allocation5 + $0x528] ss:$16 sps:$4 sm:$0xff]   ;;  %v5536_v42 = vld [vmem:[#allocation5 + $0x544] ss:$16 sps:$4 sm:$0xff]   ;;  %v5539_v28 = vld [vmem:[#allocation5 + $0x54c] ss:$16 sps:$4 sm:$0xff]  }
 0x4a2   :  { %3614 = vmatprep.subr.bf16.mxu1 %v5458_v63  ;;  %3786 = vmatprep.subr.bf16.mxu0 %v5461_v59  ;;  %v5534_v8 = vld [vmem:[#allocation5 + $0x540] ss:$16 sps:$4 sm:$0xff]   ;;  %v5537_v54 = vld [vmem:[#allocation5 + $0x548] ss:$16 sps:$4 sm:$0xff]   ;;  %v5542_v63 = vld [vmem:[#allocation5 + $0x564] ss:$16 sps:$4 sm:$0xff]  }
 0x4a3   :  { %v5545_v59 = vld [vmem:[#allocation5 + $0x56c] ss:$16 sps:$4 sm:$0xff]  }
 0x4a5   :  { %3615 = vmatpush1.bf16.msra.mxu1 %v5456_v1  ;;  %3787 = vmatpush1.bf16.msra.mxu0 %v5459_v3  ;;  %v5540_v1 = vld [vmem:[#allocation5 + $0x560] ss:$16 sps:$4 sm:$0xff]   ;;  %v5543_v3 = vld [vmem:[#allocation5 + $0x568] ss:$16 sps:$4 sm:$0xff]  }
 0x4a6   :  { %3616 = vmatprep.subr.bf16.mxu1 %v5464_v31  ;;  %3788 = vmatprep.subr.bf16.mxu0 %v5467_v49  ;;  %v5548_v31 = vld [vmem:[#allocation5 + $0x584] ss:$16 sps:$4 sm:$0xff]   ;;  %v5551_v49 = vld [vmem:[#allocation5 + $0x58c] ss:$16 sps:$4 sm:$0xff]  }
 0x4a9   :  { %3617 = vmatpush1.bf16.msra.mxu1 %v5462_v13  ;;  %3789 = vmatpush1.bf16.msra.mxu0 %v5465_v36  ;;  %v5546_v13 = vld [vmem:[#allocation5 + $0x580] ss:$16 sps:$4 sm:$0xff]   ;;  %v5549_v36 = vld [vmem:[#allocation5 + $0x588] ss:$16 sps:$4 sm:$0xff]  }
 0x4aa   :  { %3618 = vmatprep.subr.bf16.mxu1 %v5470_v55  ;;  %3790 = vmatprep.subr.bf16.mxu0 %v5473_v37  ;;  %v5554_v55 = vld [vmem:[#allocation5 + $0x5a4] ss:$16 sps:$4 sm:$0xff]   ;;  %v5557_v37 = vld [vmem:[#allocation5 + $0x5ac] ss:$16 sps:$4 sm:$0xff]  }
 0x4ad   :  { %3619 = vmatpush1.bf16.msra.mxu1 %v5468_v39  ;;  %3791 = vmatpush1.bf16.msra.mxu0 %v5471_v41  ;;  %v5552_v39 = vld [vmem:[#allocation5 + $0x5a0] ss:$16 sps:$4 sm:$0xff]   ;;  %v5555_v41 = vld [vmem:[#allocation5 + $0x5a8] ss:$16 sps:$4 sm:$0xff]  }
 0x4ae   :  { %3631 = vmatprep.subr.bf16.mxu1 %v5476_v16  ;;  %3803 = vmatprep.subr.bf16.mxu0 %v5479_v34  ;;  %v5560_v16 = vld [vmem:[#allocation5 + $0x5c4] ss:$16 sps:$4 sm:$0xff]   ;;  %v5563_v34 = vld [vmem:[#allocation5 + $0x5cc] ss:$16 sps:$4 sm:$0xff]  }
 0x4b0   :  { %3621 = vmatmul.mubr.bf16.vlgmr.msra.gmra.mrb[152].mxu1 %v6539_v60  ;;  %3793 = vmatmul.mubr.bf16.vlgmr.msra.gmra.mrb[152].mxu0 %v6539_v60  ;;  %v5497_v60 = vld [vmem:[#allocation5 + $0x46c] ss:$16 sps:$4 sm:$0xff]  }
 0x4b1   :  { %3632 = vmatpush1.bf16.msra.mxu1 %v5474_v19  ;;  %3663 = vmatprep.mubr.bf16.mxu1 %v6547_v33  ;;  %v5558_v19 = vld [vmem:[#allocation5 + $0x5c0] ss:$16 sps:$4 sm:$0xff]  }
 0x4b2   :  { %3804 = vmatpush1.bf16.msra.mxu0 %v5477_v27  ;;  %3835 = vmatprep.mubr.bf16.mxu0 %v6547_v33  ;;  %v5503_v33 = vld [vmem:[#allocation5 + $0x48c] ss:$16 sps:$4 sm:$0xff]   ;;  %v5561_v27 = vld [vmem:[#allocation5 + $0x5c8] ss:$16 sps:$4 sm:$0xff]  }
 0x4b3   :  { %3633 = vmatprep.subr.bf16.mxu1 %v5482_v15  ;;  %3805 = vmatprep.subr.bf16.mxu0 %v5485_v18  ;;  %v5566_v15 = vld [vmem:[#allocation5 + $0x5e4] ss:$16 sps:$4 sm:$0xff]   ;;  %v5569_v18 = vld [vmem:[#allocation5 + $0x5ec] ss:$16 sps:$4 sm:$0xff]  }
 0x4b5   :  { %3634 = vmatpush1.bf16.msra.mxu1 %v5480_v47  ;;  %v5564_v47 = vld [vmem:[#allocation5 + $0x5e0] ss:$16 sps:$4 sm:$0xff]  }
 0x4b6   :  { %3806 = vmatpush1.bf16.msra.mxu0 %v5483_v21  ;;  %3635 = vmatprep.subr.bf16.mxu1 %v5488_v45  ;;  %v5567_v21 = vld [vmem:[#allocation5 + $0x5e8] ss:$16 sps:$4 sm:$0xff]   ;;  %v5572_v45 = vld [vmem:[#allocation5 + $0x604] ss:$16 sps:$4 sm:$0xff]  }
 0x4b7   :  { %3807 = vmatprep.subr.bf16.mxu0 %v5491_v5  ;;  %v5575_v5 = vld [vmem:[#allocation5 + $0x60c] ss:$16 sps:$4 sm:$0xff]  }
 0x4b9   :  { %3636 = vmatpush1.bf16.msra.mxu1 %v5486_v25  ;;  %v5570_v25 = vld [vmem:[#allocation5 + $0x600] ss:$16 sps:$4 sm:$0xff]  }
 0x4ba   :  { %3808 = vmatpush1.bf16.msra.mxu0 %v5489_v0  ;;  %3637 = vmatprep.subr.bf16.mxu1 %v5494_v48  ;;  %v5573_v0 = vld [vmem:[#allocation5 + $0x608] ss:$16 sps:$4 sm:$0xff]   ;;  %v5578_v48 = vld [vmem:[#allocation5 + $0x624] ss:$16 sps:$4 sm:$0xff]  }
 0x4bb   :  { %3809 = vmatprep.subr.bf16.mxu0 %v5497_v60  ;;  %v5581_v60 = vld [vmem:[#allocation5 + $0x62c] ss:$16 sps:$4 sm:$0xff]  }
 0x4bd   :  { %3638 = vmatpush1.bf16.msra.mxu1 %v5492_v51  ;;  %v5576_v51 = vld [vmem:[#allocation5 + $0x620] ss:$16 sps:$4 sm:$0xff]  }
 0x4be   :  { %3810 = vmatpush1.bf16.msra.mxu0 %v5495_v52  ;;  %3639 = vmatprep.subr.bf16.mxu1 %v5500_v38  ;;  %v5579_v52 = vld [vmem:[#allocation5 + $0x628] ss:$16 sps:$4 sm:$0xff]   ;;  %v5584_v38 = vld [vmem:[#allocation5 + $0x644] ss:$16 sps:$4 sm:$0xff]  }
 0x4bf   :  { %3811 = vmatprep.subr.bf16.mxu0 %v5503_v33  ;;  %v5587_v33 = vld [vmem:[#allocation5 + $0x64c] ss:$16 sps:$4 sm:$0xff]  }
 0x4c1   :  { %3640 = vmatpush1.bf16.msra.mxu1 %v5498_v12  ;;  %v5582_v12 = vld [vmem:[#allocation5 + $0x640] ss:$16 sps:$4 sm:$0xff]  }
 0x4c2   :  { %3812 = vmatpush1.bf16.msra.mxu0 %v5501_v40  ;;  %3641 = vmatprep.subr.bf16.mxu1 %v5506_v58  ;;  %v5585_v40 = vld [vmem:[#allocation5 + $0x648] ss:$16 sps:$4 sm:$0xff]   ;;  %v5590_v58 = vld [vmem:[#allocation5 + $0x664] ss:$16 sps:$4 sm:$0xff]  }
 0x4c3   :  { %3813 = vmatprep.subr.bf16.mxu0 %v5509_v61  ;;  %v5588_v61 = vld [vmem:[#allocation5 + $0x660] ss:$16 sps:$4 sm:$0xff]  }
 0x4c5   :  { %3642 = vmatpush1.bf16.msra.mxu1 %v5504_v62  ;;  %v5591_v62 = vld [vmem:[#allocation5 + $0x668] ss:$16 sps:$4 sm:$0xff]  }
 0x4c6   :  { %3814 = vmatpush1.bf16.msra.mxu0 %v5507_v2  ;;  %3643 = vmatprep.subr.bf16.mxu1 %v5512_v56  ;;  %v5596_v2 = vld [vmem:[#allocation5 + $0x684] ss:$16 sps:$4 sm:$0xff]   ;;  %v5599_v56 = vld [vmem:[#allocation5 + $0x68c] ss:$16 sps:$4 sm:$0xff]  }
 0x4c7   :  { %3815 = vmatprep.subr.bf16.mxu0 %v5515_v7  ;;  %v5597_v7 = vld [vmem:[#allocation5 + $0x688] ss:$16 sps:$4 sm:$0xff]  }
 0x4c9   :  { %3644 = vmatpush1.bf16.msra.mxu1 %v5510_v9  ;;  %v5602_v9 = vld [vmem:[#allocation5 + $0x6a4] ss:$16 sps:$4 sm:$0xff]  }
 0x4ca   :  { %3816 = vmatpush1.bf16.msra.mxu0 %v5513_v10  ;;  %3645 = vmatprep.subr.bf16.mxu1 %v5518_v11  ;;  %v5605_v10 = vld [vmem:[#allocation5 + $0x6ac] ss:$16 sps:$4 sm:$0xff]   ;;  %v5600_v11 = vld [vmem:[#allocation5 + $0x6a0] ss:$16 sps:$4 sm:$0xff]  }
 0x4cb   :  { %3817 = vmatprep.subr.bf16.mxu0 %v5521_v6  ;;  %v5603_v6 = vld [vmem:[#allocation5 + $0x6a8] ss:$16 sps:$4 sm:$0xff]  }
 0x4cd   :  { %3646 = vmatpush1.bf16.msra.mxu1 %v5516_v50  ;;  %v5608_v50 = vld [vmem:[#allocation5 + $0x6c4] ss:$16 sps:$4 sm:$0xff]  }
 0x4ce   :  { %3818 = vmatpush1.bf16.msra.mxu0 %v5519_v53  ;;  %3647 = vmatprep.subr.bf16.mxu1 %v5524_v17  ;;  %v5611_v53 = vld [vmem:[#allocation5 + $0x6cc] ss:$16 sps:$4 sm:$0xff]   ;;  %v5606_v17 = vld [vmem:[#allocation5 + $0x6c0] ss:$16 sps:$4 sm:$0xff]  }
 0x4cf   :  { %3819 = vmatprep.subr.bf16.mxu0 %v5527_v23  ;;  %v5609_v23 = vld [vmem:[#allocation5 + $0x6c8] ss:$16 sps:$4 sm:$0xff]  }
 0x4d1   :  { %3648 = vmatpush1.bf16.msra.mxu1 %v5522_v26  ;;  %v5614_v26 = vld [vmem:[#allocation5 + $0x6e4] ss:$16 sps:$4 sm:$0xff]  }
 0x4d2   :  { %3820 = vmatpush1.bf16.msra.mxu0 %v5525_v30  ;;  %3649 = vmatprep.subr.bf16.mxu1 %v5530_v29  ;;  %v5617_v30 = vld [vmem:[#allocation5 + $0x6ec] ss:$16 sps:$4 sm:$0xff]   ;;  %v5612_v29 = vld [vmem:[#allocation5 + $0x6e0] ss:$16 sps:$4 sm:$0xff]  }
 0x4d3   :  { %3821 = vmatprep.subr.bf16.mxu0 %v5533_v22  ;;  %v5615_v22 = vld [vmem:[#allocation5 + $0x6e8] ss:$16 sps:$4 sm:$0xff]  }
 0x4d5   :  { %3650 = vmatpush1.bf16.msra.mxu1 %v5528_v20  ;;  %v5620_v20 = vld [vmem:[#allocation5 + $0x704] ss:$16 sps:$4 sm:$0xff]  }
 0x4d6   :  { %3822 = vmatpush1.bf16.msra.mxu0 %v5531_v43  ;;  %3651 = vmatprep.subr.bf16.mxu1 %v5536_v42  ;;  %v5623_v43 = vld [vmem:[#allocation5 + $0x70c] ss:$16 sps:$4 sm:$0xff]   ;;  %v5618_v42 = vld [vmem:[#allocation5 + $0x700] ss:$16 sps:$4 sm:$0xff]  }
 0x4d7   :  { %3823 = vmatprep.subr.bf16.mxu0 %v5539_v28  ;;  %v5621_v28 = vld [vmem:[#allocation5 + $0x708] ss:$16 sps:$4 sm:$0xff]  }
 0x4d9   :  { %3652 = vmatpush1.bf16.msra.mxu1 %v5534_v8  ;;  %v5626_v8 = vld [vmem:[#allocation5 + $0x724] ss:$16 sps:$4 sm:$0xff]  }
 0x4da   :  { %3824 = vmatpush1.bf16.msra.mxu0 %v5537_v54  ;;  %3653 = vmatprep.subr.bf16.mxu1 %v5542_v63  ;;  %v5629_v54 = vld [vmem:[#allocation5 + $0x72c] ss:$16 sps:$4 sm:$0xff]   ;;  %v5624_v63 = vld [vmem:[#allocation5 + $0x720] ss:$16 sps:$4 sm:$0xff]  }
 0x4db   :  { %3825 = vmatprep.subr.bf16.mxu0 %v5545_v59  ;;  %v5627_v59 = vld [vmem:[#allocation5 + $0x728] ss:$16 sps:$4 sm:$0xff]  }
 0x4dd   :  { %3654 = vmatpush1.bf16.msra.mxu1 %v5540_v1  ;;  %v5632_v1 = vld [vmem:[#allocation5 + $0x744] ss:$16 sps:$4 sm:$0xff]  }
 0x4de   :  { %3826 = vmatpush1.bf16.msra.mxu0 %v5543_v3  ;;  %3655 = vmatprep.subr.bf16.mxu1 %v5548_v31  ;;  %v5635_v3 = vld [vmem:[#allocation5 + $0x74c] ss:$16 sps:$4 sm:$0xff]   ;;  %v5630_v31 = vld [vmem:[#allocation5 + $0x740] ss:$16 sps:$4 sm:$0xff]  }
 0x4df   :  { %3827 = vmatprep.subr.bf16.mxu0 %v5551_v49  ;;  %v5633_v49 = vld [vmem:[#allocation5 + $0x748] ss:$16 sps:$4 sm:$0xff]  }
 0x4e1   :  { %3656 = vmatpush1.bf16.msra.mxu1 %v5546_v13  ;;  %v5638_v13 = vld [vmem:[#allocation5 + $0x764] ss:$16 sps:$4 sm:$0xff]  }
 0x4e2   :  { %3828 = vmatpush1.bf16.msra.mxu0 %v5549_v36  ;;  %3657 = vmatprep.subr.bf16.mxu1 %v5554_v55  ;;  %v5641_v36 = vld [vmem:[#allocation5 + $0x76c] ss:$16 sps:$4 sm:$0xff]   ;;  %v5636_v55 = vld [vmem:[#allocation5 + $0x760] ss:$16 sps:$4 sm:$0xff]  }
 0x4e3   :  { %3829 = vmatprep.subr.bf16.mxu0 %v5557_v37  ;;  %v5639_v37 = vld [vmem:[#allocation5 + $0x768] ss:$16 sps:$4 sm:$0xff]  }
 0x4e5   :  { %3658 = vmatpush1.bf16.msra.mxu1 %v5552_v39  ;;  %v5644_v39 = vld [vmem:[#allocation5 + $0x784] ss:$16 sps:$4 sm:$0xff]  }
 0x4e6   :  { %3830 = vmatpush1.bf16.msra.mxu0 %v5555_v41  ;;  %3659 = vmatprep.subr.bf16.mxu1 %v5560_v16  ;;  %v5647_v41 = vld [vmem:[#allocation5 + $0x78c] ss:$16 sps:$4 sm:$0xff]   ;;  %v5642_v16 = vld [vmem:[#allocation5 + $0x780] ss:$16 sps:$4 sm:$0xff]  }
 0x4e7   :  { %3831 = vmatprep.subr.bf16.mxu0 %v5563_v34  ;;  %v5645_v34 = vld [vmem:[#allocation5 + $0x788] ss:$16 sps:$4 sm:$0xff]  }
 0x4e9   :  { %3660 = vmatpush1.bf16.msra.mxu1 %v5558_v19  ;;  %v5650_v19 = vld [vmem:[#allocation5 + $0x7a4] ss:$16 sps:$4 sm:$0xff]  }
 0x4ea   :  { %3832 = vmatpush1.bf16.msra.mxu0 %v5561_v27  ;;  %3661 = vmatprep.subr.bf16.mxu1 %v5566_v15  ;;  %v5653_v27 = vld [vmem:[#allocation5 + $0x7ac] ss:$16 sps:$4 sm:$0xff]   ;;  %v5648_v15 = vld [vmem:[#allocation5 + $0x7a0] ss:$16 sps:$4 sm:$0xff]  }
 0x4eb   :  { %3833 = vmatprep.subr.bf16.mxu0 %v5569_v18  ;;  %v5651_v18 = vld [vmem:[#allocation5 + $0x7a8] ss:$16 sps:$4 sm:$0xff]  }
 0x4ed   :  { %3662 = vmatpush1.bf16.msra.mxu1 %v5564_v47  ;;  %v5656_v47 = vld [vmem:[#allocation5 + $0x7c4] ss:$16 sps:$4 sm:$0xff]  }
 0x4ee   :  { %3834 = vmatpush1.bf16.msra.mxu0 %v5567_v21  ;;  %3674 = vmatprep.subr.bf16.mxu1 %v5572_v45  ;;  %v5659_v21 = vld [vmem:[#allocation5 + $0x7cc] ss:$16 sps:$4 sm:$0xff]   ;;  %v5654_v45 = vld [vmem:[#allocation5 + $0x7c0] ss:$16 sps:$4 sm:$0xff]  }
 0x4ef   :  { %3846 = vmatprep.subr.bf16.mxu0 %v5575_v5  ;;  %v5657_v5 = vld [vmem:[#allocation5 + $0x7c8] ss:$16 sps:$4 sm:$0xff]  }
 0x4f0   :  { %3664 = vmatmul.mubr.bf16.vlgmr.msra.gmra.mrb[152].mxu1 %v6545_v14 }
 0x4f1   :  { %3836 = vmatmul.mubr.bf16.vlgmr.msra.gmra.mrb[152].mxu0 %v6545_v14  ;;  %3675 = vmatpush1.bf16.msra.mxu1 %v5570_v25  ;;  %v5593_v14 = vld [vmem:[#allocation5 + $0x66c] ss:$16 sps:$4 sm:$0xff]   ;;  %v5662_v25 = vld [vmem:[#allocation5 + $0x7e4] ss:$16 sps:$4 sm:$0xff]  }
 0x4f2   :  { %3706 = vmatprep.mubr.bf16.mxu1 %v6555_v46  ;;  %3847 = vmatpush1.bf16.msra.mxu0 %v5573_v0  ;;  %v5665_v0 = vld [vmem:[#allocation5 + $0x7ec] ss:$16 sps:$4 sm:$0xff]  }
 0x4f3   :  { %3878 = vmatprep.mubr.bf16.mxu0 %v6555_v46  ;;  %3676 = vmatprep.subr.bf16.mxu1 %v5578_v48  ;;  %v5594_v46 = vld [vmem:[#allocation5 + $0x680] ss:$16 sps:$4 sm:$0xff]  }
 0x4f4   :  { %3848 = vmatprep.subr.bf16.mxu0 %v5581_v60  ;;  %v5660_v48 = vld [vmem:[#allocation5 + $0x7e0] ss:$16 sps:$4 sm:$0xff]   ;;  %v5663_v60 = vld [vmem:[#allocation5 + $0x7e8] ss:$16 sps:$4 sm:$0xff]  }
 0x4f5   :  { %3677 = vmatpush1.bf16.msra.mxu1 %v5576_v51  ;;  %v5668_v51 = vld [vmem:[#allocation7 + $0x4] ss:$8 sps:$4 sm:$0xff]  }
 0x4f6   :  { %3849 = vmatpush1.bf16.msra.mxu0 %v5579_v52  ;;  %3678 = vmatprep.subr.bf16.mxu1 %v5584_v38  ;;  %v5666_v52 = vld [vmem:[#allocation7] ss:$8 sps:$4 sm:$0xff]   ;;  %v5671_v38 = vld [vmem:[#allocation7 + $0x14] ss:$8 sps:$4 sm:$0xff]  }
 0x4f7   :  { %3850 = vmatprep.subr.bf16.mxu0 %v5587_v33  ;;  %v5669_v33 = vld [vmem:[#allocation7 + $0x10] ss:$8 sps:$4 sm:$0xff]  }
 0x4f9   :  { %3679 = vmatpush1.bf16.msra.mxu1 %v5582_v12  ;;  %v5674_v12 = vld [vmem:[#allocation7 + $0x24] ss:$8 sps:$4 sm:$0xff]  }
 0x4fa   :  { %3851 = vmatpush1.bf16.msra.mxu0 %v5585_v40  ;;  %3680 = vmatprep.subr.bf16.mxu1 %v5590_v58  ;;  %v5672_v40 = vld [vmem:[#allocation7 + $0x20] ss:$8 sps:$4 sm:$0xff]   ;;  %v5677_v58 = vld [vmem:[#allocation7 + $0x34] ss:$8 sps:$4 sm:$0xff]  }
 0x4fb   :  { %3852 = vmatprep.subr.bf16.mxu0 %v5593_v14  ;;  %v5675_v14 = vld [vmem:[#allocation7 + $0x30] ss:$8 sps:$4 sm:$0xff]  }
 0x4fd   :  { %3681 = vmatpush1.bf16.msra.mxu1 %v5588_v61  ;;  %v5680_v61 = vld [vmem:[#allocation7 + $0x44] ss:$8 sps:$4 sm:$0xff]  }
 0x4fe   :  { %3853 = vmatpush1.bf16.msra.mxu0 %v5591_v62  ;;  %3682 = vmatprep.subr.bf16.mxu1 %v5596_v2  ;;  %v5678_v62 = vld [vmem:[#allocation7 + $0x40] ss:$8 sps:$4 sm:$0xff]   ;;  %v5683_v2 = vld [vmem:[#allocation7 + $0x54] ss:$8 sps:$4 sm:$0xff]  }
 0x4ff   :  { %3854 = vmatprep.subr.bf16.mxu0 %v5599_v56  ;;  %v5681_v56 = vld [vmem:[#allocation7 + $0x50] ss:$8 sps:$4 sm:$0xff]  }
 0x501   :  { %3683 = vmatpush1.bf16.msra.mxu1 %v5594_v46  ;;  %v5684_v46 = vld [vmem:[#allocation7 + $0x60] ss:$8 sps:$4 sm:$0xff]  }
 0x502   :  { %3855 = vmatpush1.bf16.msra.mxu0 %v5597_v7  ;;  %3684 = vmatprep.subr.bf16.mxu1 %v5602_v9  ;;  %v5689_v7 = vld [vmem:[#allocation7 + $0x74] ss:$8 sps:$4 sm:$0xff]   ;;  %v5687_v9 = vld [vmem:[#allocation7 + $0x70] ss:$8 sps:$4 sm:$0xff]  }
 0x503   :  { %3856 = vmatprep.subr.bf16.mxu0 %v5605_v10  ;;  %v5692_v10 = vld [vmem:[#allocation7 + $0x84] ss:$8 sps:$4 sm:$0xff]  }
 0x505   :  { %3685 = vmatpush1.bf16.msra.mxu1 %v5600_v11  ;;  %v5690_v11 = vld [vmem:[#allocation7 + $0x80] ss:$8 sps:$4 sm:$0xff]  }
 0x506   :  { %3857 = vmatpush1.bf16.msra.mxu0 %v5603_v6  ;;  %3686 = vmatprep.subr.bf16.mxu1 %v5608_v50  ;;  %v5695_v6 = vld [vmem:[#allocation7 + $0x94] ss:$8 sps:$4 sm:$0xff]   ;;  %v5693_v50 = vld [vmem:[#allocation7 + $0x90] ss:$8 sps:$4 sm:$0xff]  }
 0x507   :  { %3858 = vmatprep.subr.bf16.mxu0 %v5611_v53  ;;  %v5698_v53 = vld [vmem:[#allocation7 + $0xa4] ss:$8 sps:$4 sm:$0xff]  }
 0x509   :  { %3687 = vmatpush1.bf16.msra.mxu1 %v5606_v17  ;;  %v5696_v17 = vld [vmem:[#allocation7 + $0xa0] ss:$8 sps:$4 sm:$0xff]  }
 0x50a   :  { %3859 = vmatpush1.bf16.msra.mxu0 %v5609_v23  ;;  %3688 = vmatprep.subr.bf16.mxu1 %v5614_v26  ;;  %v5701_v23 = vld [vmem:[#allocation7 + $0xb4] ss:$8 sps:$4 sm:$0xff]   ;;  %v5699_v26 = vld [vmem:[#allocation7 + $0xb0] ss:$8 sps:$4 sm:$0xff]  }
 0x50b   :  { %3860 = vmatprep.subr.bf16.mxu0 %v5617_v30  ;;  %v5704_v30 = vld [vmem:[#allocation7 + $0xc4] ss:$8 sps:$4 sm:$0xff]  }
 0x50d   :  { %3689 = vmatpush1.bf16.msra.mxu1 %v5612_v29  ;;  %v5702_v29 = vld [vmem:[#allocation7 + $0xc0] ss:$8 sps:$4 sm:$0xff]  }
 0x50e   :  { %3861 = vmatpush1.bf16.msra.mxu0 %v5615_v22  ;;  %3690 = vmatprep.subr.bf16.mxu1 %v5620_v20  ;;  %v5707_v22 = vld [vmem:[#allocation7 + $0xd4] ss:$8 sps:$4 sm:$0xff]   ;;  %v5705_v20 = vld [vmem:[#allocation7 + $0xd0] ss:$8 sps:$4 sm:$0xff]  }
 0x50f   :  { %3862 = vmatprep.subr.bf16.mxu0 %v5623_v43  ;;  %v5710_v43 = vld [vmem:[#allocation7 + $0xe4] ss:$8 sps:$4 sm:$0xff]  }
 0x511   :  { %3691 = vmatpush1.bf16.msra.mxu1 %v5618_v42  ;;  %v5708_v42 = vld [vmem:[#allocation7 + $0xe0] ss:$8 sps:$4 sm:$0xff]  }
 0x512   :  { %3863 = vmatpush1.bf16.msra.mxu0 %v5621_v28  ;;  %3692 = vmatprep.subr.bf16.mxu1 %v5626_v8  ;;  %v5713_v28 = vld [vmem:[#allocation7 + $0xf4] ss:$8 sps:$4 sm:$0xff]   ;;  %v5711_v8 = vld [vmem:[#allocation7 + $0xf0] ss:$8 sps:$4 sm:$0xff]  }
 0x513   :  { %3864 = vmatprep.subr.bf16.mxu0 %v5629_v54  ;;  %v5716_v54 = vld [vmem:[#allocation7 + $0x104] ss:$8 sps:$4 sm:$0xff]  }
 0x515   :  { %3693 = vmatpush1.bf16.msra.mxu1 %v5624_v63  ;;  %v2243_v63 = vld [vmem:[%s6613_s8] sm:$0xf]  ;;  %s5868_s8 = smov [#allocation8]  }
 0x516   :  { %3865 = vmatpush1.bf16.msra.mxu0 %v5627_v59  ;;  %3694 = vmatprep.subr.bf16.mxu1 %v5632_v1  ;;  %v2248_v59 = vrot.slane %v2243_v63, %v1877_v44  ;;  %v2256_v1 = vrot.slane %v2243_v63, %v1885_v32  ;;  %s4396_s22 = sshll.u32 %s5868_s8, 4  ;;  %s4397_s22 = int_to_ptr.vmem [resolvable:$true] %s4396_s22 }
 0x517   :  { %3866 = vmatprep.subr.bf16.mxu0 %v5635_v3  ;;  %v2252_v3 = vrot.slane %v2243_v63, %v1881_v57  ;;  %s5828_s25 = scalar_lea.vmem %s4397_s22, 512  ;;  %p5833_p11 = scmp.lt.s32.totalorder %s4397_s22, %s4397_s22 }
 0x518   :  { %p5829_p10 = scmp.ne.s32.totalorder %s4397_s22, %s5828_s25  ;;  %p5834_p12 = scmp.lt.s32.totalorder %s5828_s25, %s5828_s25 }
 0x519   :  { %3695 = vmatpush1.bf16.msra.mxu1 %v5630_v31  ;;  %v2260_v31 = vrot.slane %v2243_v63, %v1889_v4  ;;  %v5752_v63 = vld [vmem:[#allocation7 + $0x1c4] ss:$8 sps:$4 sm:$0xff]  }
 0x51a   :  { %3867 = vmatpush1.bf16.msra.mxu0 %v5633_v49  ;;  %3696 = vmatprep.subr.bf16.mxu1 %v5638_v13  ;;  %p5835_p13 = por %p5834_p12, %p5833_p11 }
 0x51b   :  { %3868 = vmatprep.subr.bf16.mxu0 %v5641_v36 }
 0x51c   :  { %p5836_p0 = pnand %p5835_p13, %p5829_p10 }
 0x51d   :  { %3697 = vmatpush1.bf16.msra.mxu1 %v5636_v55 }
 0x51e   :  { %3869 = vmatpush1.bf16.msra.mxu0 %v5639_v37  ;;  %3698 = vmatprep.subr.bf16.mxu1 %v5644_v39 }
 0x51f   :  { %3870 = vmatprep.subr.bf16.mxu0 %v5647_v41 }
 0x521   :  { %3699 = vmatpush1.bf16.msra.mxu1 %v5642_v16 }
 0x522   :  { %3871 = vmatpush1.bf16.msra.mxu0 %v5645_v34  ;;  %3700 = vmatprep.subr.bf16.mxu1 %v5650_v19 }
 0x523   :  { %3872 = vmatprep.subr.bf16.mxu0 %v5653_v27 }
 0x525   :  { %3701 = vmatpush1.bf16.msra.mxu1 %v5648_v15 }
 0x526   :  { %3873 = vmatpush1.bf16.msra.mxu0 %v5651_v18  ;;  %3702 = vmatprep.subr.bf16.mxu1 %v5656_v47 }
 0x527   :  { %3874 = vmatprep.subr.bf16.mxu0 %v5659_v21 }
 0x529   :  { %3703 = vmatpush1.bf16.msra.mxu1 %v5654_v45 }
 0x52a   :  { %3875 = vmatpush1.bf16.msra.mxu0 %v5657_v5  ;;  %3704 = vmatprep.subr.bf16.mxu1 %v5662_v25 }
 0x52b   :  { %3876 = vmatprep.subr.bf16.mxu0 %v5665_v0 }
 0x52d   :  { %3705 = vmatpush1.bf16.msra.mxu1 %v5660_v48 }
 0x52e   :  { %3877 = vmatpush1.bf16.msra.mxu0 %v5663_v60  ;;  %4301 = vmatprep.subr.bf16.mxu1 %v5668_v51 }
 0x530   :  { %3707 = vmatmul.mubr.bf16.vlgmr.msra.gmra.mrb[152].mxu1 %v6553_v24 }
 0x531   :  { %3879 = vmatmul.mubr.bf16.vlgmr.msra.gmra.mrb[152].mxu0 %v6553_v24  ;;  %4302 = vmatpush1.bf16.msra.mxu1 %v5666_v52  ;;  %v5686_v24 = vld [vmem:[#allocation7 + $0x64] ss:$8 sps:$4 sm:$0xff]  }
 0x532   :  { %4303 = vmatprep.subr.bf16.mxu1 %v5671_v38 }
 0x535   :  { %4304 = vmatpush1.bf16.msra.mxu1 %v5669_v33 }
 0x536   :  { %4305 = vmatprep.subr.bf16.mxu1 %v5674_v12 }
 0x539   :  { %4306 = vmatpush1.bf16.msra.mxu1 %v5672_v40 }
 0x53a   :  { %4307 = vmatprep.subr.bf16.mxu1 %v5677_v58 }
 0x53d   :  { %4308 = vmatpush1.bf16.msra.mxu1 %v5675_v14 }
 0x53e   :  { %4309 = vmatprep.subr.bf16.mxu1 %v5680_v61 }
 0x541   :  { %4310 = vmatpush1.bf16.msra.mxu1 %v5678_v62  ;;  %v5714_v62 = vld [vmem:[#allocation7 + $0x100] ss:$8 sps:$4 sm:$0xff]  }
 0x542   :  { %4311 = vmatprep.subr.bf16.mxu1 %v5683_v2 }
 0x545   :  { %4312 = vmatpush1.bf16.msra.mxu1 %v5681_v56  ;;  %v5719_v56 = vld [vmem:[#allocation7 + $0x114] ss:$8 sps:$4 sm:$0xff]  }
 0x546   :  { %4313 = vmatprep.subr.bf16.mxu1 %v5686_v24  ;;  %v5717_v24 = vld [vmem:[#allocation7 + $0x110] ss:$8 sps:$4 sm:$0xff]  }
 0x549   :  { %4314 = vmatpush1.bf16.msra.mxu1 %v5684_v46  ;;  %v5722_v46 = vld [vmem:[#allocation7 + $0x124] ss:$8 sps:$4 sm:$0xff]  }
 0x54a   :  { %4315 = vmatprep.subr.bf16.mxu1 %v5689_v7  ;;  %v5720_v7 = vld [vmem:[#allocation7 + $0x120] ss:$8 sps:$4 sm:$0xff]  }
 0x54d   :  { %4316 = vmatpush1.bf16.msra.mxu1 %v5687_v9  ;;  %v5725_v9 = vld [vmem:[#allocation7 + $0x134] ss:$8 sps:$4 sm:$0xff]  }
 0x54e   :  { %4317 = vmatprep.subr.bf16.mxu1 %v5692_v10  ;;  %v5723_v10 = vld [vmem:[#allocation7 + $0x130] ss:$8 sps:$4 sm:$0xff]  }
 0x551   :  { %4318 = vmatpush1.bf16.msra.mxu1 %v5690_v11  ;;  %v5728_v11 = vld [vmem:[#allocation7 + $0x144] ss:$8 sps:$4 sm:$0xff]  }
 0x552   :  { %4319 = vmatprep.subr.bf16.mxu1 %v5695_v6  ;;  %v5726_v6 = vld [vmem:[#allocation7 + $0x140] ss:$8 sps:$4 sm:$0xff]  }
 0x555   :  { %4320 = vmatpush1.bf16.msra.mxu1 %v5693_v50  ;;  %v5731_v50 = vld [vmem:[#allocation7 + $0x154] ss:$8 sps:$4 sm:$0xff]  }
 0x556   :  { %4321 = vmatprep.subr.bf16.mxu1 %v5698_v53  ;;  %v5729_v53 = vld [vmem:[#allocation7 + $0x150] ss:$8 sps:$4 sm:$0xff]  }
 0x559   :  { %4322 = vmatpush1.bf16.msra.mxu1 %v5696_v17  ;;  %v5734_v17 = vld [vmem:[#allocation7 + $0x164] ss:$8 sps:$4 sm:$0xff]  }
 0x55a   :  { %4323 = vmatprep.subr.bf16.mxu1 %v5701_v23  ;;  %v5732_v23 = vld [vmem:[#allocation7 + $0x160] ss:$8 sps:$4 sm:$0xff]  }
 0x55d   :  { %4324 = vmatpush1.bf16.msra.mxu1 %v5699_v26  ;;  %v5737_v26 = vld [vmem:[#allocation7 + $0x174] ss:$8 sps:$4 sm:$0xff]  }
 0x55e   :  { %4325 = vmatprep.subr.bf16.mxu1 %v5704_v30  ;;  %v5735_v30 = vld [vmem:[#allocation7 + $0x170] ss:$8 sps:$4 sm:$0xff]  }
 0x561   :  { %4326 = vmatpush1.bf16.msra.mxu1 %v5702_v29  ;;  %v5740_v29 = vld [vmem:[#allocation7 + $0x184] ss:$8 sps:$4 sm:$0xff]  }
 0x562   :  { %4327 = vmatprep.subr.bf16.mxu1 %v5707_v22  ;;  %v5738_v22 = vld [vmem:[#allocation7 + $0x180] ss:$8 sps:$4 sm:$0xff]  }
 0x565   :  { %4328 = vmatpush1.bf16.msra.mxu1 %v5705_v20  ;;  %v5743_v20 = vld [vmem:[#allocation7 + $0x194] ss:$8 sps:$4 sm:$0xff]  }
 0x566   :  { %4329 = vmatprep.subr.bf16.mxu1 %v5710_v43  ;;  %v5741_v43 = vld [vmem:[#allocation7 + $0x190] ss:$8 sps:$4 sm:$0xff]  }
 0x569   :  { %4330 = vmatpush1.bf16.msra.mxu1 %v5708_v42  ;;  %v5746_v42 = vld [vmem:[#allocation7 + $0x1a4] ss:$8 sps:$4 sm:$0xff]  }
 0x56a   :  { %4331 = vmatprep.subr.bf16.mxu1 %v5713_v28  ;;  %v5744_v28 = vld [vmem:[#allocation7 + $0x1a0] ss:$8 sps:$4 sm:$0xff]  }
 0x56d   :  { %4332 = vmatpush1.bf16.msra.mxu1 %v5711_v8  ;;  %v5749_v8 = vld [vmem:[#allocation7 + $0x1b4] ss:$8 sps:$4 sm:$0xff]  }
 0x56e   :  { %4344 = vmatprep.subr.bf16.mxu1 %v5716_v54  ;;  %v5747_v54 = vld [vmem:[#allocation7 + $0x1b0] ss:$8 sps:$4 sm:$0xff]  }
 0x603   :  { %v3708_v49 = vpop.f32.mrb[152].mxu1 }
 0x604   :  { %v5089_v13 = vadd.f32 %v3708_v49, %v2248_v59  ;;  %v3880_v36 = vpop.f32.mrb[152].mxu0  ;;  %v3710_v55 = vpop.f32.mrb[153].mxu1  ;;  %v5756_v49 = vld [vmem:[#allocation7 + $0x1e0] ss:$8 sps:$4 sm:$0xff]  }
 0x605   :  { %v5093_v37 = vadd.f32 %v3880_v36, %v2256_v1  ;;  %v5090_v39 = vadd.f32 %v3710_v55, %v2252_v3  ;;  %v3882_v41 = vpop.f32.mrb[153].mxu0  ;;  %v3712_v16 = vpop.f32.mrb[154].mxu1  ;;  %v5759_v36 = vld [vmem:[#allocation7 + $0x1f0] ss:$8 sps:$4 sm:$0xff]  }
 0x606   :  { %v3897_v34 = vmul.f32 0.1, %v5089_v13  ;;  %v5094_v19 = vadd.f32 %v3882_v41, %v2260_v31  ;;  %v5091_v44 = vadd.f32 %v3712_v16, %v2248_v59  ;;  %v3884_v27 = vpop.f32.mrb[154].mxu0  ;;  %v3714_v15 = vpop.f32.mrb[155].mxu1  ;;  %vm3889_vm13 = vcmp.ge.f32.partialorder %v5089_v13, 0.0 }
 0x607   :  { %vm3891_vm14 = vcmp.ge.f32.partialorder %v5093_v37, 0.0  ;;  %v3899_v32 = vmul.f32 0.1, %v5093_v37  ;;  %vm3890_vm15 = vcmp.ge.f32.partialorder %v5090_v39, 0.0  ;;  %v3886_v35 = vpop.f32.mrb[155].mxu0  ;;  %v5095_v18 = vadd.f32 %v3884_v27, %v2256_v1 }
 0x608   :  { %vm3893_vm1 = vcmp.ge.f32.partialorder %v5091_v44, 0.0  ;;  %v3898_v57 = vmul.f32 0.1, %v5090_v39  ;;  %v3901_v4 = vmul.f32 0.1, %v5091_v44  ;;  %v5092_v47 = vadd.f32 %v3714_v15, %v2252_v3 }
 0x609   :  { %v3905_v21 = vsel %vm3889_vm13, %v5089_v13, %v3897_v34  ;;  %vm3892_vm2 = vcmp.ge.f32.partialorder %v5094_v19, 0.0  ;;  %v3900_v45 = vmul.f32 0.1, %v5094_v19  ;;  %v5096_v5 = vadd.f32 %v3886_v35, %v2260_v31  ;;  %v5750_v59 = vld [vmem:[#allocation7 + $0x1c0] ss:$8 sps:$4 sm:$0xff]  }
 0x60a   :  { %v3909_v25 = vsel %vm3893_vm1, %v5091_v44, %v3901_v4  ;;  %vm3895_vm3 = vcmp.ge.f32.partialorder %v5095_v18, 0.0  ;;  %v3903_v0 = vmul.f32 0.1, %v5095_v18  ;;  %vm3894_vm5 = vcmp.ge.f32.partialorder %v5092_v47, 0.0  ;;  %v5755_v1 = vld [vmem:[#allocation7 + $0x1d4] ss:$8 sps:$4 sm:$0xff]  }
 0x60b   :  { %v3913_v48 = vpack.c.bf16 %v3909_v25, %v3905_v21  ;;  %v3902_v60 = vmul.f32 0.1, %v5092_v47  ;;  %vm3896_vm6 = vcmp.ge.f32.partialorder %v5096_v5, 0.0  ;;  %v3904_v51 = vmul.f32 0.1, %v5096_v5 }
 0x60c   :  { %v6579_v52 = vsel %vm3891_vm14, %v5093_v37, %v3899_v32  ;;  %v6581_v38 = vsel %vm3895_vm3, %v5095_v18, %v3903_v0  ;;  %v3906_v33 = vsel %vm3890_vm15, %v5090_v39, %v3898_v57  ;;  %v3908_v58 = vsel %vm3892_vm2, %v5094_v19, %v3900_v45  ;;  %v5753_v3 = vld [vmem:[#allocation7 + $0x1d0] ss:$8 sps:$4 sm:$0xff]   ;;  %v5758_v31 = vld [vmem:[#allocation7 + $0x1e4] ss:$8 sps:$4 sm:$0xff]   ;;  %v5761_v13 = vld [vmem:[#allocation7 + $0x1f4] ss:$8 sps:$4 sm:$0xff]  }
 0x60d   :  { %v3915_v12 = vpack.c.bf16 %v6581_v38, %v6579_v52  ;;  %v3910_v40 = vsel %vm3894_vm5, %v5092_v47, %v3902_v60  ;;  %v3912_v14 = vsel %vm3896_vm6, %v5096_v5, %v3904_v51 }
 0x60e   :  { %v3914_v61 = vpack.c.bf16 %v3910_v40, %v3906_v33  ;;  %v3916_v2 = vpack.c.bf16 %v3912_v14, %v3908_v58 }
 0x610   :  { %4333 = vmatprep.mubr.bf16.mxu1 %v3914_v61 }
 0x611   :  { %4334 = vmatmul.mubr.bf16.vlgmr.msra.gmra.mrb[156].mxu1 %v3913_v48 }
 0x612   :  { %4345 = vmatpush1.bf16.msra.mxu1 %v5714_v62  ;;  %4376 = vmatprep.mubr.bf16.mxu1 %v3916_v2 }
 0x613   :  { %4346 = vmatprep.subr.bf16.mxu1 %v5719_v56 }
 0x616   :  { %4347 = vmatpush1.bf16.msra.mxu1 %v5717_v24 }
 0x617   :  { %4348 = vmatprep.subr.bf16.mxu1 %v5722_v46 }
 0x61a   :  { %4349 = vmatpush1.bf16.msra.mxu1 %v5720_v7 }
 0x61b   :  { %4350 = vmatprep.subr.bf16.mxu1 %v5725_v9 }
 0x61e   :  { %4351 = vmatpush1.bf16.msra.mxu1 %v5723_v10 }
 0x61f   :  { %4352 = vmatprep.subr.bf16.mxu1 %v5728_v11 }
 0x622   :  { %4353 = vmatpush1.bf16.msra.mxu1 %v5726_v6 }
 0x623   :  { %4354 = vmatprep.subr.bf16.mxu1 %v5731_v50 }
 0x626   :  { %4355 = vmatpush1.bf16.msra.mxu1 %v5729_v53 }
 0x627   :  { %4356 = vmatprep.subr.bf16.mxu1 %v5734_v17 }
 0x62a   :  { %4357 = vmatpush1.bf16.msra.mxu1 %v5732_v23 }
 0x62b   :  { %4358 = vmatprep.subr.bf16.mxu1 %v5737_v26 }
 0x62e   :  { %4359 = vmatpush1.bf16.msra.mxu1 %v5735_v30 }
 0x62f   :  { %4360 = vmatprep.subr.bf16.mxu1 %v5740_v29 }
 0x632   :  { %4361 = vmatpush1.bf16.msra.mxu1 %v5738_v22 }
 0x633   :  { %4362 = vmatprep.subr.bf16.mxu1 %v5743_v20 }
 0x636   :  { %4363 = vmatpush1.bf16.msra.mxu1 %v5741_v43 }
 0x637   :  { %4364 = vmatprep.subr.bf16.mxu1 %v5746_v42 }
 0x63a   :  { %4365 = vmatpush1.bf16.msra.mxu1 %v5744_v28 }
 0x63b   :  { %4366 = vmatprep.subr.bf16.mxu1 %v5749_v8 }
 0x63e   :  { %4367 = vmatpush1.bf16.msra.mxu1 %v5747_v54 }
 0x63f   :  { %4368 = vmatprep.subr.bf16.mxu1 %v5752_v63 }
 0x642   :  { %4369 = vmatpush1.bf16.msra.mxu1 %v5750_v59 }
 0x643   :  { %4370 = vmatprep.subr.bf16.mxu1 %v5755_v1 }
 0x646   :  { %4371 = vmatpush1.bf16.msra.mxu1 %v5753_v3 }
 0x647   :  { %4372 = vmatprep.subr.bf16.mxu1 %v5758_v31 }
 0x64a   :  { %4373 = vmatpush1.bf16.msra.mxu1 %v5756_v49 }
 0x64b   :  { %4374 = vmatprep.subr.bf16.mxu1 %v5761_v13 }
 0x64e   :  { %4375 = vmatpush1.bf16.msra.mxu1 %v5759_v36 }
 0x651   :  { %4377 = vmatmul.mubr.bf16.vlgmr.msra.gmra.mrb[156].mxu1 %v3915_v12 }
 0x724   :  { %v4378_v55 = vpop.f32.mrb[156].mxu1 }
 0x725   :  { %4387 = vst [vmem:[#allocation8] sm:$0xff] %v4378_v55  ;;  %v4380_v37 = vpop.f32.mrb[157].mxu1 }
 0x726   :  { %4388 = vst [vmem:[#allocation8 + $0x8] sm:$0xff] %v4380_v37  ;;  %v4382_v39 = vpop.f32.mrb[158].mxu1 }
 0x727   :  { %4389 = vst [vmem:[#allocation8 + $0x10] sm:$0xff] %v4382_v39  ;;  %v4384_v41 = vpop.f32.mrb[159].mxu1 }
 0x728   :  { %4390 = vst [vmem:[#allocation8 + $0x18] sm:$0xff] %v4384_v41 }
 0x729   :  { %5839 = shalt.err (!%p5836_p0)
}
 0x72a   :  { %s5840_s29 = scalar_lea.hbm %s6615_s10, 512 }
 0x72b   :  { %p5841_p1 = scmp.ne.s32.totalorder %s6615_s10, %s5840_s29  ;;  %p5844_p2 = scmp.lt.u32.totalorder %s5840_s29, %s6615_s10 }
 0x72d   :  { %p5846_p3 = pnand %p5844_p2, %p5841_p1 }
 0x72f   :  { %5849 = shalt.err (!%p5846_p3)
}
 0x730   :  { %4402 = dma.vmem_to_hbm [thread:$0]  %s4397_s22, 512, %s6615_s10, [#allocation4], %s5857_s23, %s5857_s23, %s5858_s24  }
 0x731   :  { %5854 = dma.done.wait [#allocation4], 512  }
 0x732   :  { %5855 = vsyncadd [#allocation4], 4294966784 }
 0x733   :  { %4406 = vsyncpa [#allocation3], 1 }
 0x734   :  { %4407 = vsyncpa [#allocation6], 1 }
 0x735   :  { %4408 = vsyncpa [#allocation4], 1 }

</bundles_post_ra>
